<compile_context>
chip_gen: v7x
topology: tpu7x:2x2x1
jax: 0.10.0
libtpu: 0.0.40
codegen_flags: <defaults>
</compile_context>

<pallas_src>
import functools
import math

import numpy as np

import jax
import jax.numpy as jnp
from jax import lax
from jax.experimental import pallas as pl
from jax.experimental.pallas import tpu as pltpu

BN_EPS = 1e-5
BN_SCALE = 1.0 / math.sqrt(1.0 + BN_EPS)


def _sigmoid(z):
    # numerically-stable logistic built only from exp/where (EUP path).
    pos = 1.0 / (1.0 + jnp.exp(-z))
    ez = jnp.exp(z)
    neg = ez / (1.0 + ez)
    return jnp.where(z >= 0, pos, neg)


# ----------------------------------------------------------------------------
# Fused LGGNet kernel: one grid step == one batch element.
# ----------------------------------------------------------------------------
def _lggnet_kernel(x_ref, wb_ref, cb_ref, caw1_ref, caw2_ref, hsa_ref,
                   lw_ref, lb_ref, rm_ref, gsym_ref, gw_ref, gb_ref,
                   fcw_ref, fcb_ref,
                   o_ref,
                   sq_ref, z_ref, pad_ref, feat_ref,
                   *, num_T, T_cat, T_half, pool_k, pool_s, branch_geom, hid):
    R = gsym_ref.shape[0]

    # ---- temporal stage: all 3 inception conv branches as one banded matmul ----
    x = x_ref[0]                                                     # (E, T)
    conv = jnp.dot(x, wb_ref[...], preferred_element_type=jnp.float32) + cb_ref[...]
    sq_ref[...] = conv * conv                                        # PowerLayer: x^2

    # AvgPool(1, pool_k, stride pool_s) per (branch, channel); raw pooled -> z scratch,
    # laid out as (E, num_T*T_cat) with column = channel*T_cat + concatenated position.
    inv_k = 1.0 / float(pool_k)
    seg = 0
    col = 0
    for (t_conv, t_pool) in branch_geom:
        r_i = lax.broadcasted_iota(jnp.int32, (t_conv, t_pool), 0)
        p_i = lax.broadcasted_iota(jnp.int32, (t_conv, t_pool), 1)
        pmat = ((r_i >= p_i * pool_s) &
                (r_i < p_i * pool_s + pool_k)).astype(jnp.float32) * inv_k
        for c in range(num_T):
            slab = sq_ref[:, seg + c * t_conv: seg + (c + 1) * t_conv]   # (E, t_conv)
            z_ref[:, c * T_cat + col: c * T_cat + col + t_pool] = jnp.dot(
                slab, pmat, preferred_element_type=jnp.float32)
        seg += num_T * t_conv
        col += t_pool

    # PowerLayer log + bn_t1 (eval, default running stats)
    zlog = jnp.log(z_ref[...]) * BN_SCALE                            # (E, num_T*T_cat)

    # ---- CBAM channel attention (channel dim = electrodes E, on sublanes) ----
    n_hw = float(num_T * T_cat)
    avg_e = jnp.sum(zlog, axis=1, keepdims=True) * (1.0 / n_hw)      # (E, 1)
    max_e = jnp.max(zlog, axis=1, keepdims=True)                     # (E, 1)

    def _mlp(v):
        a = jnp.maximum(jnp.dot(caw1_ref[...], v,
                                preferred_element_type=jnp.float32), 0.0)
        return jnp.dot(caw2_ref[...], a, preferred_element_type=jnp.float32)

    ch_scale = _sigmoid(_mlp(avg_e) + _mlp(max_e))                   # (E, 1)
    zca = zlog * ch_scale                                            # channel-attended
    z_ref[...] = zca                                                 # keep for sliced reads

    # ---- CBAM spatial attention: 7x7 conv over (H=num_T, W=T_cat) maps ----
    E = x_ref.shape[1]
    Hp = num_T + 6
    avg_hw = jnp.sum(zca, axis=0, keepdims=True) * (1.0 / float(E))  # (1, num_T*T_cat)
    max_hw = jnp.max(zca, axis=0, keepdims=True)                     # (1, num_T*T_cat)
    # padded scratch stacks [avg | max] maps on sublanes: rows [0,Hp) avg, [Hp,2Hp) max.
    pad_ref[...] = jnp.zeros(pad_ref.shape, jnp.float32)
    for h in range(num_T):
        pad_ref[3 + h:4 + h, 3:3 + T_cat] = avg_hw[:, h * T_cat:(h + 1) * T_cat]
        pad_ref[Hp + 3 + h:Hp + 4 + h, 3:3 + T_cat] = max_hw[:, h * T_cat:(h + 1) * T_cat]

    # 7x7 cross-correlation == sum over the 7 kernel columns dj of a banded
    # (num_T, 2*Hp) @ (2*Hp, T_cat) matmul against the dj-shifted lane window
    # of the padded maps (weights prebuilt host-side into hsa: (7, num_T, 2*Hp)).
    score = jnp.zeros((num_T, T_cat), jnp.float32)
    for dj in range(7):
        score = score + jnp.dot(hsa_ref[dj], pad_ref[:, dj:dj + T_cat],
                                preferred_element_type=jnp.float32)
    sp_scale = _sigmoid(score)                                       # (num_T, T_cat)

    # ---- apply spatial attention + AvgPool(1,2) + flatten (fused per channel) ----
    w_i = lax.broadcasted_iota(jnp.int32, (T_cat, T_half), 0)
    q_i = lax.broadcasted_iota(jnp.int32, (T_cat, T_half), 1)
    apmat = ((w_i == 2 * q_i) | (w_i == 2 * q_i + 1)).astype(jnp.float32) * 0.5
    for h in range(num_T):
        seg_v = z_ref[:, h * T_cat:(h + 1) * T_cat] * sp_scale[h:h + 1, :]  # (E, T_cat)
        feat_ref[:, h * T_half:(h + 1) * T_half] = jnp.dot(
            seg_v, apmat, preferred_element_type=jnp.float32)

    # ---- local filter + region aggregation + adjacency + bn_g1 + GCN + bn_g2 + fc ----
    feat = feat_ref[...]                                             # (E, F)
    y = jnp.maximum(feat * lw_ref[...] - lb_ref[...], 0.0)
    agg = jnp.dot(rm_ref[...], y, preferred_element_type=jnp.float32)    # (R, F)

    adj0 = lax.dot_general(agg, agg, (((1,), (1,)), ((), ())),
                           preferred_element_type=jnp.float32)           # (R, R)
    adj = jnp.maximum(adj0 * gsym_ref[...], 0.0)
    ri = lax.broadcasted_iota(jnp.int32, (R, R), 0)
    ci = lax.broadcasted_iota(jnp.int32, (R, R), 1)
    adj = adj + (ri == ci).astype(jnp.float32)                           # + I
    rs_r = jnp.sum(adj, axis=1, keepdims=True)
    rs_r = rs_r + (rs_r == 0).astype(jnp.float32)
    rs_c = jnp.sum(adj, axis=0, keepdims=True)                           # adj is symmetric
    rs_c = rs_c + (rs_c == 0).astype(jnp.float32)
    adj_n = lax.rsqrt(rs_r) * adj * lax.rsqrt(rs_c)                      # D^-1/2 A D^-1/2

    xg = agg * BN_SCALE                                                  # bn_g1 (eval)
    h1 = jnp.dot(xg, gw_ref[...], preferred_element_type=jnp.float32) - gb_ref[...]
    h2 = jnp.maximum(jnp.dot(adj_n, h1, preferred_element_type=jnp.float32), 0.0)
    h2 = h2 * BN_SCALE                                                   # bn_g2 (eval)

    # final Linear, accumulated per region (avoids an in-kernel (R,hid)->(1,R*hid) reshape)
    out = fcb_ref[...]                                                   # (1, out_size)
    for r in range(R):
        out = out + jnp.dot(h2[r:r + 1, :], fcw_ref[r * hid:(r + 1) * hid, :],
                            preferred_element_type=jnp.float32)
    o_ref[0] = out


# ----------------------------------------------------------------------------
# Wrapper: weight preprocessing (tiny, weight-only glue) + one pallas_call.
# ----------------------------------------------------------------------------
def _banded_conv(w, T):
    """Fold Conv2d(1, num_T, (1, K)) weights into a (T, num_T*T_conv) banded matrix."""
    num_T, K = w.shape
    T_conv = T - K + 1
    t = np.arange(T)[:, None]
    tau = np.arange(T_conv)[None, :]
    k = t - tau                                    # (T, T_conv)
    valid = (k >= 0) & (k < K)
    k_cl = np.clip(k, 0, K - 1)
    g = w[:, k_cl]                                 # (num_T, T, T_conv) single gather
    g = jnp.where(jnp.asarray(valid)[None, :, :], g, 0.0)
    return jnp.transpose(g, (1, 0, 2)).reshape(T, num_T * T_conv)


def lggnet_forward(params, x, *, region_list, pool_k, pool_s, num_T, hid, out_size):
    B, Cin, E, T = x.shape
    assert Cin == 1
    x3 = x[:, 0]                                   # (B, E, T)

    wts = [params["w_t1"], params["w_t2"], params["w_t3"]]
    bts = [params["b_t1"], params["b_t2"], params["b_t3"]]
    Ks = [int(w.shape[1]) for w in wts]
    T_convs = [T - K + 1 for K in Ks]
    T_pools = [(tc - pool_k) // pool_s + 1 for tc in T_convs]
    T_cat = sum(T_pools)
    T_half = T_cat // 2
    F_dim = num_T * T_half
    R = len(region_list)
    C_conv = num_T * sum(T_convs)
    Hp = num_T + 6                                 # padded map height (pad=3 each side)

    # Banded conv matrix (all 3 branches) + matching bias row.
    wb = jnp.concatenate([_banded_conv(w, T) for w in wts], axis=1)          # (T, C_conv)
    cbias = jnp.concatenate(
        [jnp.repeat(b.astype(jnp.float32), tc) for b, tc in zip(bts, T_convs)]
    ).reshape(1, C_conv)

    # Spatial-attention 7x7 conv weights folded, per kernel column dj, into a banded
    # (num_T, 2*Hp) slab acting on the sublane-stacked [avg | max] padded maps.
    basis = np.zeros((2, 7, num_T, 2 * Hp), np.float32)
    for m in range(2):
        for di in range(7):
            for h in range(num_T):
                basis[m, di, h, m * Hp + h + di] = 1.0
    hsa = jnp.einsum("mdhc,mdj->jhc", jnp.asarray(basis),
                     params["sa_w"].reshape(2, 7, 7).astype(jnp.float32))    # (7,num_T,2Hp)

    # Host-side constants (no traced .at[].set loops).
    rm_np = np.zeros((R, E), np.float32)
    for r, reg in enumerate(region_list):
        rm_np[r, list(reg)] = 1.0 / len(reg)
    rm = jnp.asarray(rm_np)

    gsym = params["global_adj"] + jnp.transpose(params["global_adj"])
    local_b2 = params["local_b"].reshape(E, 1)
    gcn_b2 = params["gcn_b"].reshape(1, hid)
    fc_wT = jnp.transpose(params["fc_w"])                                    # (R*hid, out)
    fc_b2 = params["fc_b"].reshape(1, out_size)

    kernel = functools.partial(
        _lggnet_kernel,
        num_T=num_T, T_cat=T_cat, T_half=T_half,
        pool_k=pool_k, pool_s=pool_s,
        branch_geom=tuple(zip(T_convs, T_pools)), hid=hid)

    out3 = pl.pallas_call(
        kernel,
        out_shape=jax.ShapeDtypeStruct((B, 1, out_size), jnp.float32),
        grid=(B,),
        in_specs=[
            pl.BlockSpec((1, E, T), lambda b: (b, 0, 0)),            # x
            pl.BlockSpec((T, C_conv), lambda b: (0, 0)),             # banded conv weights
            pl.BlockSpec((1, C_conv), lambda b: (0, 0)),             # conv bias row
            pl.BlockSpec((E // 2, E), lambda b: (0, 0)),             # CBAM fc1
            pl.BlockSpec((E, E // 2), lambda b: (0, 0)),             # CBAM fc2
            pl.BlockSpec((7, num_T, 2 * Hp), lambda b: (0, 0, 0)),   # spatial conv slabs
            pl.BlockSpec((E, F_dim), lambda b: (0, 0)),              # local filter weight
            pl.BlockSpec((E, 1), lambda b: (0, 0)),                  # local filter bias
            pl.BlockSpec((R, E), lambda b: (0, 0)),                  # region aggregation
            pl.BlockSpec((R, R), lambda b: (0, 0)),                  # global adj (sym)
            pl.BlockSpec((F_dim, hid), lambda b: (0, 0)),            # gcn weight
            pl.BlockSpec((1, hid), lambda b: (0, 0)),                # gcn bias
            pl.BlockSpec((R * hid, out_size), lambda b: (0, 0)),     # fc weight^T
            pl.BlockSpec((1, out_size), lambda b: (0, 0)),           # fc bias
        ],
        out_specs=pl.BlockSpec((1, 1, out_size), lambda b: (b, 0, 0)),
        scratch_shapes=[
            pltpu.VMEM((E, C_conv), jnp.float32),                    # squared conv
            pltpu.VMEM((E, num_T * T_cat), jnp.float32),             # CBAM slab (E, HW)
            pltpu.VMEM((2 * Hp, T_cat + 6), jnp.float32),            # padded [avg|max] maps
            pltpu.VMEM((E, F_dim), jnp.float32),                     # pooled features
        ],
        compiler_params=pltpu.CompilerParams(dimension_semantics=("parallel",)),
    )(x3, wb, cbias, params["ca_w1"], params["ca_w2"], hsa,
      params["local_w"], local_b2, rm, gsym, params["gcn_w"], gcn_b2, fc_wT, fc_b2)

    return out3.reshape(B, out_size)


if __name__ == "__main__":
    # Small configuration (consistent with the module's constructor).
    B, Cin, E, T = 2, 1, 8, 64          # batch, in_channels, num_electrodes, chunk_size
    sr = 64                             # sampling_rate
    num_T = 16
    hid = 8
    pool_k, pool_s = 8, 4
    out_size = 2
    region_list = ((0, 1), (2, 3), (4, 5), (6, 7))
    R = len(region_list)

    Ks = [int(0.5 * sr), int(0.25 * sr), int(0.125 * sr)]          # 32, 16, 8
    T_cat = sum((T - K + 1 - pool_k) // pool_s + 1 for K in Ks)    # 7 + 11 + 13 = 31
    F_dim = num_T * (T_cat // 2)                                   # feature_dim = 240

    key = jax.random.PRNGKey(0)
    keys = jax.random.split(key, 17)
    kx = keys[0]
    kp = keys[1:]
    x = jax.random.normal(kx, (B, Cin, E, T), jnp.float32)

    params = {
        "w_t1": jax.random.normal(kp[0], (num_T, Ks[0]), jnp.float32) * 0.1,
        "b_t1": jax.random.normal(kp[1], (num_T,), jnp.float32) * 0.01,
        "w_t2": jax.random.normal(kp[2], (num_T, Ks[1]), jnp.float32) * 0.1,
        "b_t2": jax.random.normal(kp[3], (num_T,), jnp.float32) * 0.01,
        "w_t3": jax.random.normal(kp[4], (num_T, Ks[2]), jnp.float32) * 0.1,
        "b_t3": jax.random.normal(kp[5], (num_T,), jnp.float32) * 0.01,
        "ca_w1": jax.random.normal(kp[6], (E // 2, E), jnp.float32) * 0.2,
        "ca_w2": jax.random.normal(kp[7], (E, E // 2), jnp.float32) * 0.2,
        "sa_w": jax.random.normal(kp[8], (1, 2, 7, 7), jnp.float32) * 0.1,
        "local_w": jax.random.normal(kp[9], (E, F_dim), jnp.float32) * 0.1,
        "local_b": jnp.zeros((1, E, 1), jnp.float32),
        "global_adj": jax.random.normal(kp[10], (R, R), jnp.float32) * 0.1,
        "gcn_w": jax.random.normal(kp[11], (F_dim, hid), jnp.float32) * 0.1,
        "gcn_b": jnp.zeros((1, 1, hid), jnp.float32),
        "fc_w": jax.random.normal(kp[12], (out_size, R * hid), jnp.float32) * 0.1,
        "fc_b": jax.random.normal(kp[13], (out_size,), jnp.float32) * 0.01,
    }

    fwd = jax.jit(functools.partial(
        lggnet_forward, region_list=region_list, pool_k=pool_k, pool_s=pool_s,
        num_T=num_T, hid=hid, out_size=out_size))

    out = fwd(params, x)
    jax.block_until_ready(out)
    assert out.shape == (B, out_size)
    assert bool(jnp.all(jnp.isfinite(out)))
    print("KERNEL_OK")
</pallas_src>

<mosaic_0001>
module attributes {stable_mosaic.version = 11 : i64} {
  func.func @_lggnet_kernel(%arg0: i32, %arg1: memref<1x8x64xf32, #tpu.memory_space<vmem>>, %arg2: memref<64x2224xf32, #tpu.memory_space<vmem>>, %arg3: memref<1x2224xf32, #tpu.memory_space<vmem>>, %arg4: memref<4x8xf32, #tpu.memory_space<vmem>>, %arg5: memref<8x4xf32, #tpu.memory_space<vmem>>, %arg6: memref<7x16x44xf32, #tpu.memory_space<vmem>>, %arg7: memref<8x240xf32, #tpu.memory_space<vmem>>, %arg8: memref<8x1xf32, #tpu.memory_space<vmem>>, %arg9: memref<4x8xf32, #tpu.memory_space<vmem>>, %arg10: memref<4x4xf32, #tpu.memory_space<vmem>>, %arg11: memref<240x8xf32, #tpu.memory_space<vmem>>, %arg12: memref<1x8xf32, #tpu.memory_space<vmem>>, %arg13: memref<32x2xf32, #tpu.memory_space<vmem>>, %arg14: memref<1x2xf32, #tpu.memory_space<vmem>>, %arg15: memref<1x1x2xf32, #tpu.memory_space<vmem>>, %arg16: memref<8x2224xf32, #tpu.memory_space<vmem>>, %arg17: memref<8x496xf32, #tpu.memory_space<vmem>>, %arg18: memref<44x37xf32, #tpu.memory_space<vmem>>, %arg19: memref<8x240xf32, #tpu.memory_space<vmem>>) attributes {dimension_semantics = [#tpu.dimension_semantics<parallel>], iteration_bounds = array<i64: 2>, scalar_prefetch = 0 : i64, scratch_operands = 4 : i64, tpu.core_type = #tpu.core_type<tc>, window_params = [{transform_indices = @transform_0, window_bounds = array<i64: 1, 8, 64>}, {pipeline_mode = #tpu.pipeline_mode<synchronous>, transform_indices = @transform_1, window_bounds = array<i64: 64, 2224>}, {pipeline_mode = #tpu.pipeline_mode<synchronous>, transform_indices = @transform_2, window_bounds = array<i64: 1, 2224>}, {pipeline_mode = #tpu.pipeline_mode<synchronous>, transform_indices = @transform_3, window_bounds = array<i64: 4, 8>}, {pipeline_mode = #tpu.pipeline_mode<synchronous>, transform_indices = @transform_4, window_bounds = array<i64: 8, 4>}, {pipeline_mode = #tpu.pipeline_mode<synchronous>, transform_indices = @transform_5, window_bounds = array<i64: 7, 16, 44>}, {pipeline_mode = #tpu.pipeline_mode<synchronous>, transform_indices = @transform_6, window_bounds = array<i64: 8, 240>}, {pipeline_mode = #tpu.pipeline_mode<synchronous>, transform_indices = @transform_7, window_bounds = array<i64: 8, 1>}, {pipeline_mode = #tpu.pipeline_mode<synchronous>, transform_indices = @transform_8, window_bounds = array<i64: 4, 8>}, {pipeline_mode = #tpu.pipeline_mode<synchronous>, transform_indices = @transform_9, window_bounds = array<i64: 4, 4>}, {pipeline_mode = #tpu.pipeline_mode<synchronous>, transform_indices = @transform_10, window_bounds = array<i64: 240, 8>}, {pipeline_mode = #tpu.pipeline_mode<synchronous>, transform_indices = @transform_11, window_bounds = array<i64: 1, 8>}, {pipeline_mode = #tpu.pipeline_mode<synchronous>, transform_indices = @transform_12, window_bounds = array<i64: 32, 2>}, {pipeline_mode = #tpu.pipeline_mode<synchronous>, transform_indices = @transform_13, window_bounds = array<i64: 1, 2>}, {transform_indices = @transform_14, window_bounds = array<i64: 1, 1, 2>}]} {
    %c0 = arith.constant 0 : index
    %c0_0 = arith.constant 0 : index
    %c0_1 = arith.constant 0 : index
    %0 = vector.load %arg1[%c0, %c0_0, %c0_1] : memref<1x8x64xf32, #tpu.memory_space<vmem>>, vector<1x8x64xf32>
    %1 = vector.shape_cast %0 : vector<1x8x64xf32> to vector<8x64xf32>
    %c0_2 = arith.constant 0 : index
    %c0_3 = arith.constant 0 : index
    %2 = vector.load %arg2[%c0_2, %c0_3] : memref<64x2224xf32, #tpu.memory_space<vmem>>, vector<64x2224xf32>
    %cst = arith.constant dense<0.000000e+00> : vector<8x2224xf32>
    %3 = tpu.matmul %1, %2, %cst {dimension_numbers = #tpu.dot_dimension_numbers<[1], [0], [0], [1], [0, 0, 1, 1], [], []>} : vector<8x64xf32>, vector<64x2224xf32>, vector<8x2224xf32> -> vector<8x2224xf32>
    %c0_4 = arith.constant 0 : index
    %c0_5 = arith.constant 0 : index
    %4 = vector.load %arg3[%c0_4, %c0_5] : memref<1x2224xf32, #tpu.memory_space<vmem>>, vector<1x2224xf32>
    %5 = vector.broadcast %4 : vector<1x2224xf32> to vector<8x2224xf32>
    %6 = arith.addf %3, %5 : vector<8x2224xf32>
    %7 = arith.mulf %6, %6 : vector<8x2224xf32>
    %c0_6 = arith.constant 0 : index
    %c0_7 = arith.constant 0 : index
    %8 = vector.load %arg16[%c0_6, %c0_7] : memref<8x2224xf32, #tpu.memory_space<vmem>>, vector<8x2224xf32>
    tpu.vector_store %arg16[%c0_6, %c0_7], %7 {strides = array<i32>} : memref<8x2224xf32, #tpu.memory_space<vmem>>, vector<8x2224xf32>,
    %9 = tpu.iota {dimensions = array<i32: 0>} : vector<33x7xi32>
    %10 = tpu.iota {dimensions = array<i32: 1>} : vector<33x7xi32>
    %c4_i32 = arith.constant 4 : i32
    %11 = vector.broadcast %c4_i32 : i32 to vector<33x7xi32>
    %12 = arith.muli %10, %11 : vector<33x7xi32>
    %13 = arith.cmpi sge, %9, %12 : vector<33x7xi32>
    %c4_i32_8 = arith.constant 4 : i32
    %14 = vector.broadcast %c4_i32_8 : i32 to vector<33x7xi32>
    %15 = arith.muli %10, %14 : vector<33x7xi32>
    %c8_i32 = arith.constant 8 : i32
    %16 = vector.broadcast %c8_i32 : i32 to vector<33x7xi32>
    %17 = arith.addi %15, %16 : vector<33x7xi32>
    %18 = arith.cmpi slt, %9, %17 : vector<33x7xi32>
    %19 = arith.andi %13, %18 : vector<33x7xi1>
    %20 = arith.extui %19 : vector<33x7xi1> to vector<33x7xi32>
    %21 = arith.sitofp %20 : vector<33x7xi32> to vector<33x7xf32>
    %cst_9 = arith.constant 1.250000e-01 : f32
    %22 = vector.broadcast %cst_9 : f32 to vector<33x7xf32>
    %23 = arith.mulf %21, %22 : vector<33x7xf32>
    %c0_10 = arith.constant 0 : index
    %c0_11 = arith.constant 0 : index
    %24 = vector.load %arg16[%c0_10, %c0_11] : memref<8x2224xf32, #tpu.memory_space<vmem>>, vector<8x33xf32>
    %cst_12 = arith.constant dense<0.000000e+00> : vector<8x7xf32>
    %25 = tpu.matmul %24, %23, %cst_12 {dimension_numbers = #tpu.dot_dimension_numbers<[1], [0], [0], [1], [0, 0, 1, 1], [], []>} : vector<8x33xf32>, vector<33x7xf32>, vector<8x7xf32> -> vector<8x7xf32>
    %c0_13 = arith.constant 0 : index
    %c0_14 = arith.constant 0 : index
    %26 = vector.load %arg17[%c0_13, %c0_14] : memref<8x496xf32, #tpu.memory_space<vmem>>, vector<8x7xf32>
    tpu.vector_store %arg17[%c0_13, %c0_14], %25 {strides = array<i32>} : memref<8x496xf32, #tpu.memory_space<vmem>>, vector<8x7xf32>,
    %c0_15 = arith.constant 0 : index
    %c33 = arith.constant 33 : index
    %27 = vector.load %arg16[%c0_15, %c33] : memref<8x2224xf32, #tpu.memory_space<vmem>>, vector<8x33xf32>
    %cst_16 = arith.constant dense<0.000000e+00> : vector<8x7xf32>
    %28 = tpu.matmul %27, %23, %cst_16 {dimension_numbers = #tpu.dot_dimension_numbers<[1], [0], [0], [1], [0, 0, 1, 1], [], []>} : vector<8x33xf32>, vector<33x7xf32>, vector<8x7xf32> -> vector<8x7xf32>
    %c0_17 = arith.constant 0 : index
    %c31 = arith.constant 31 : index
    %29 = vector.load %arg17[%c0_17, %c31] : memref<8x496xf32, #tpu.memory_space<vmem>>, vector<8x7xf32>
    tpu.vector_store %arg17[%c0_17, %c31], %28 {strides = array<i32>} : memref<8x496xf32, #tpu.memory_space<vmem>>, vector<8x7xf32>,
    %c0_18 = arith.constant 0 : index
    %c66 = arith.constant 66 : index
    %30 = vector.load %arg16[%c0_18, %c66] : memref<8x2224xf32, #tpu.memory_space<vmem>>, vector<8x33xf32>
    %cst_19 = arith.constant dense<0.000000e+00> : vector<8x7xf32>
    %31 = tpu.matmul %30, %23, %cst_19 {dimension_numbers = #tpu.dot_dimension_numbers<[1], [0], [0], [1], [0, 0, 1, 1], [], []>} : vector<8x33xf32>, vector<33x7xf32>, vector<8x7xf32> -> vector<8x7xf32>
    %c0_20 = arith.constant 0 : index
    %c62 = arith.constant 62 : index
    %32 = vector.load %arg17[%c0_20, %c62] : memref<8x496xf32, #tpu.memory_space<vmem>>, vector<8x7xf32>
    tpu.vector_store %arg17[%c0_20, %c62], %31 {strides = array<i32>} : memref<8x496xf32, #tpu.memory_space<vmem>>, vector<8x7xf32>,
    %c0_21 = arith.constant 0 : index
    %c99 = arith.constant 99 : index
    %33 = vector.load %arg16[%c0_21, %c99] : memref<8x2224xf32, #tpu.memory_space<vmem>>, vector<8x33xf32>
    %cst_22 = arith.constant dense<0.000000e+00> : vector<8x7xf32>
    %34 = tpu.matmul %33, %23, %cst_22 {dimension_numbers = #tpu.dot_dimension_numbers<[1], [0], [0], [1], [0, 0, 1, 1], [], []>} : vector<8x33xf32>, vector<33x7xf32>, vector<8x7xf32> -> vector<8x7xf32>
    %c0_23 = arith.constant 0 : index
    %c93 = arith.constant 93 : index
    %35 = vector.load %arg17[%c0_23, %c93] : memref<8x496xf32, #tpu.memory_space<vmem>>, vector<8x7xf32>
    tpu.vector_store %arg17[%c0_23, %c93], %34 {strides = array<i32>} : memref<8x496xf32, #tpu.memory_space<vmem>>, vector<8x7xf32>,
    %c0_24 = arith.constant 0 : index
    %c132 = arith.constant 132 : index
    %36 = vector.load %arg16[%c0_24, %c132] : memref<8x2224xf32, #tpu.memory_space<vmem>>, vector<8x33xf32>
    %cst_25 = arith.constant dense<0.000000e+00> : vector<8x7xf32>
    %37 = tpu.matmul %36, %23, %cst_25 {dimension_numbers = #tpu.dot_dimension_numbers<[1], [0], [0], [1], [0, 0, 1, 1], [], []>} : vector<8x33xf32>, vector<33x7xf32>, vector<8x7xf32> -> vector<8x7xf32>
    %c0_26 = arith.constant 0 : index
    %c124 = arith.constant 124 : index
    %38 = vector.load %arg17[%c0_26, %c124] : memref<8x496xf32, #tpu.memory_space<vmem>>, vector<8x7xf32>
    tpu.vector_store %arg17[%c0_26, %c124], %37 {strides = array<i32>} : memref<8x496xf32, #tpu.memory_space<vmem>>, vector<8x7xf32>,
    %c0_27 = arith.constant 0 : index
    %c165 = arith.constant 165 : index
    %39 = vector.load %arg16[%c0_27, %c165] : memref<8x2224xf32, #tpu.memory_space<vmem>>, vector<8x33xf32>
    %cst_28 = arith.constant dense<0.000000e+00> : vector<8x7xf32>
    %40 = tpu.matmul %39, %23, %cst_28 {dimension_numbers = #tpu.dot_dimension_numbers<[1], [0], [0], [1], [0, 0, 1, 1], [], []>} : vector<8x33xf32>, vector<33x7xf32>, vector<8x7xf32> -> vector<8x7xf32>
    %c0_29 = arith.constant 0 : index
    %c155 = arith.constant 155 : index
    %41 = vector.load %arg17[%c0_29, %c155] : memref<8x496xf32, #tpu.memory_space<vmem>>, vector<8x7xf32>
    tpu.vector_store %arg17[%c0_29, %c155], %40 {strides = array<i32>} : memref<8x496xf32, #tpu.memory_space<vmem>>, vector<8x7xf32>,
    %c0_30 = arith.constant 0 : index
    %c198 = arith.constant 198 : index
    %42 = vector.load %arg16[%c0_30, %c198] : memref<8x2224xf32, #tpu.memory_space<vmem>>, vector<8x33xf32>
    %cst_31 = arith.constant dense<0.000000e+00> : vector<8x7xf32>
    %43 = tpu.matmul %42, %23, %cst_31 {dimension_numbers = #tpu.dot_dimension_numbers<[1], [0], [0], [1], [0, 0, 1, 1], [], []>} : vector<8x33xf32>, vector<33x7xf32>, vector<8x7xf32> -> vector<8x7xf32>
    %c0_32 = arith.constant 0 : index
    %c186 = arith.constant 186 : index
    %44 = vector.load %arg17[%c0_32, %c186] : memref<8x496xf32, #tpu.memory_space<vmem>>, vector<8x7xf32>
    tpu.vector_store %arg17[%c0_32, %c186], %43 {strides = array<i32>} : memref<8x496xf32, #tpu.memory_space<vmem>>, vector<8x7xf32>,
    %c0_33 = arith.constant 0 : index
    %c231 = arith.constant 231 : index
    %45 = vector.load %arg16[%c0_33, %c231] : memref<8x2224xf32, #tpu.memory_space<vmem>>, vector<8x33xf32>
    %cst_34 = arith.constant dense<0.000000e+00> : vector<8x7xf32>
    %46 = tpu.matmul %45, %23, %cst_34 {dimension_numbers = #tpu.dot_dimension_numbers<[1], [0], [0], [1], [0, 0, 1, 1], [], []>} : vector<8x33xf32>, vector<33x7xf32>, vector<8x7xf32> -> vector<8x7xf32>
    %c0_35 = arith.constant 0 : index
    %c217 = arith.constant 217 : index
    %47 = vector.load %arg17[%c0_35, %c217] : memref<8x496xf32, #tpu.memory_space<vmem>>, vector<8x7xf32>
    tpu.vector_store %arg17[%c0_35, %c217], %46 {strides = array<i32>} : memref<8x496xf32, #tpu.memory_space<vmem>>, vector<8x7xf32>,
    %c0_36 = arith.constant 0 : index
    %c264 = arith.constant 264 : index
    %48 = vector.load %arg16[%c0_36, %c264] : memref<8x2224xf32, #tpu.memory_space<vmem>>, vector<8x33xf32>
    %cst_37 = arith.constant dense<0.000000e+00> : vector<8x7xf32>
    %49 = tpu.matmul %48, %23, %cst_37 {dimension_numbers = #tpu.dot_dimension_numbers<[1], [0], [0], [1], [0, 0, 1, 1], [], []>} : vector<8x33xf32>, vector<33x7xf32>, vector<8x7xf32> -> vector<8x7xf32>
    %c0_38 = arith.constant 0 : index
    %c248 = arith.constant 248 : index
    %50 = vector.load %arg17[%c0_38, %c248] : memref<8x496xf32, #tpu.memory_space<vmem>>, vector<8x7xf32>
    tpu.vector_store %arg17[%c0_38, %c248], %49 {strides = array<i32>} : memref<8x496xf32, #tpu.memory_space<vmem>>, vector<8x7xf32>,
    %c0_39 = arith.constant 0 : index
    %c297 = arith.constant 297 : index
    %51 = vector.load %arg16[%c0_39, %c297] : memref<8x2224xf32, #tpu.memory_space<vmem>>, vector<8x33xf32>
    %cst_40 = arith.constant dense<0.000000e+00> : vector<8x7xf32>
    %52 = tpu.matmul %51, %23, %cst_40 {dimension_numbers = #tpu.dot_dimension_numbers<[1], [0], [0], [1], [0, 0, 1, 1], [], []>} : vector<8x33xf32>, vector<33x7xf32>, vector<8x7xf32> -> vector<8x7xf32>
    %c0_41 = arith.constant 0 : index
    %c279 = arith.constant 279 : index
    %53 = vector.load %arg17[%c0_41, %c279] : memref<8x496xf32, #tpu.memory_space<vmem>>, vector<8x7xf32>
    tpu.vector_store %arg17[%c0_41, %c279], %52 {strides = array<i32>} : memref<8x496xf32, #tpu.memory_space<vmem>>, vector<8x7xf32>,
    %c0_42 = arith.constant 0 : index
    %c330 = arith.constant 330 : index
    %54 = vector.load %arg16[%c0_42, %c330] : memref<8x2224xf32, #tpu.memory_space<vmem>>, vector<8x33xf32>
    %cst_43 = arith.constant dense<0.000000e+00> : vector<8x7xf32>
    %55 = tpu.matmul %54, %23, %cst_43 {dimension_numbers = #tpu.dot_dimension_numbers<[1], [0], [0], [1], [0, 0, 1, 1], [], []>} : vector<8x33xf32>, vector<33x7xf32>, vector<8x7xf32> -> vector<8x7xf32>
    %c0_44 = arith.constant 0 : index
    %c310 = arith.constant 310 : index
    %56 = vector.load %arg17[%c0_44, %c310] : memref<8x496xf32, #tpu.memory_space<vmem>>, vector<8x7xf32>
    tpu.vector_store %arg17[%c0_44, %c310], %55 {strides = array<i32>} : memref<8x496xf32, #tpu.memory_space<vmem>>, vector<8x7xf32>,
    %c0_45 = arith.constant 0 : index
    %c363 = arith.constant 363 : index
    %57 = vector.load %arg16[%c0_45, %c363] : memref<8x2224xf32, #tpu.memory_space<vmem>>, vector<8x33xf32>
    %cst_46 = arith.constant dense<0.000000e+00> : vector<8x7xf32>
    %58 = tpu.matmul %57, %23, %cst_46 {dimension_numbers = #tpu.dot_dimension_numbers<[1], [0], [0], [1], [0, 0, 1, 1], [], []>} : vector<8x33xf32>, vector<33x7xf32>, vector<8x7xf32> -> vector<8x7xf32>
    %c0_47 = arith.constant 0 : index
    %c341 = arith.constant 341 : index
    %59 = vector.load %arg17[%c0_47, %c341] : memref<8x496xf32, #tpu.memory_space<vmem>>, vector<8x7xf32>
    tpu.vector_store %arg17[%c0_47, %c341], %58 {strides = array<i32>} : memref<8x496xf32, #tpu.memory_space<vmem>>, vector<8x7xf32>,
    %c0_48 = arith.constant 0 : index
    %c396 = arith.constant 396 : index
    %60 = vector.load %arg16[%c0_48, %c396] : memref<8x2224xf32, #tpu.memory_space<vmem>>, vector<8x33xf32>
    %cst_49 = arith.constant dense<0.000000e+00> : vector<8x7xf32>
    %61 = tpu.matmul %60, %23, %cst_49 {dimension_numbers = #tpu.dot_dimension_numbers<[1], [0], [0], [1], [0, 0, 1, 1], [], []>} : vector<8x33xf32>, vector<33x7xf32>, vector<8x7xf32> -> vector<8x7xf32>
    %c0_50 = arith.constant 0 : index
    %c372 = arith.constant 372 : index
    %62 = vector.load %arg17[%c0_50, %c372] : memref<8x496xf32, #tpu.memory_space<vmem>>, vector<8x7xf32>
    tpu.vector_store %arg17[%c0_50, %c372], %61 {strides = array<i32>} : memref<8x496xf32, #tpu.memory_space<vmem>>, vector<8x7xf32>,
    %c0_51 = arith.constant 0 : index
    %c429 = arith.constant 429 : index
    %63 = vector.load %arg16[%c0_51, %c429] : memref<8x2224xf32, #tpu.memory_space<vmem>>, vector<8x33xf32>
    %cst_52 = arith.constant dense<0.000000e+00> : vector<8x7xf32>
    %64 = tpu.matmul %63, %23, %cst_52 {dimension_numbers = #tpu.dot_dimension_numbers<[1], [0], [0], [1], [0, 0, 1, 1], [], []>} : vector<8x33xf32>, vector<33x7xf32>, vector<8x7xf32> -> vector<8x7xf32>
    %c0_53 = arith.constant 0 : index
    %c403 = arith.constant 403 : index
    %65 = vector.load %arg17[%c0_53, %c403] : memref<8x496xf32, #tpu.memory_space<vmem>>, vector<8x7xf32>
    tpu.vector_store %arg17[%c0_53, %c403], %64 {strides = array<i32>} : memref<8x496xf32, #tpu.memory_space<vmem>>, vector<8x7xf32>,
    %c0_54 = arith.constant 0 : index
    %c462 = arith.constant 462 : index
    %66 = vector.load %arg16[%c0_54, %c462] : memref<8x2224xf32, #tpu.memory_space<vmem>>, vector<8x33xf32>
    %cst_55 = arith.constant dense<0.000000e+00> : vector<8x7xf32>
    %67 = tpu.matmul %66, %23, %cst_55 {dimension_numbers = #tpu.dot_dimension_numbers<[1], [0], [0], [1], [0, 0, 1, 1], [], []>} : vector<8x33xf32>, vector<33x7xf32>, vector<8x7xf32> -> vector<8x7xf32>
    %c0_56 = arith.constant 0 : index
    %c434 = arith.constant 434 : index
    %68 = vector.load %arg17[%c0_56, %c434] : memref<8x496xf32, #tpu.memory_space<vmem>>, vector<8x7xf32>
    tpu.vector_store %arg17[%c0_56, %c434], %67 {strides = array<i32>} : memref<8x496xf32, #tpu.memory_space<vmem>>, vector<8x7xf32>,
    %c0_57 = arith.constant 0 : index
    %c495 = arith.constant 495 : index
    %69 = vector.load %arg16[%c0_57, %c495] : memref<8x2224xf32, #tpu.memory_space<vmem>>, vector<8x33xf32>
    %cst_58 = arith.constant dense<0.000000e+00> : vector<8x7xf32>
    %70 = tpu.matmul %69, %23, %cst_58 {dimension_numbers = #tpu.dot_dimension_numbers<[1], [0], [0], [1], [0, 0, 1, 1], [], []>} : vector<8x33xf32>, vector<33x7xf32>, vector<8x7xf32> -> vector<8x7xf32>
    %c0_59 = arith.constant 0 : index
    %c465 = arith.constant 465 : index
    %71 = vector.load %arg17[%c0_59, %c465] : memref<8x496xf32, #tpu.memory_space<vmem>>, vector<8x7xf32>
    tpu.vector_store %arg17[%c0_59, %c465], %70 {strides = array<i32>} : memref<8x496xf32, #tpu.memory_space<vmem>>, vector<8x7xf32>,
    %72 = tpu.iota {dimensions = array<i32: 0>} : vector<49x11xi32>
    %73 = tpu.iota {dimensions = array<i32: 1>} : vector<49x11xi32>
    %c4_i32_60 = arith.constant 4 : i32
    %74 = vector.broadcast %c4_i32_60 : i32 to vector<49x11xi32>
    %75 = arith.muli %73, %74 : vector<49x11xi32>
    %76 = arith.cmpi sge, %72, %75 : vector<49x11xi32>
    %c4_i32_61 = arith.constant 4 : i32
    %77 = vector.broadcast %c4_i32_61 : i32 to vector<49x11xi32>
    %78 = arith.muli %73, %77 : vector<49x11xi32>
    %c8_i32_62 = arith.constant 8 : i32
    %79 = vector.broadcast %c8_i32_62 : i32 to vector<49x11xi32>
    %80 = arith.addi %78, %79 : vector<49x11xi32>
    %81 = arith.cmpi slt, %72, %80 : vector<49x11xi32>
    %82 = arith.andi %76, %81 : vector<49x11xi1>
    %83 = arith.extui %82 : vector<49x11xi1> to vector<49x11xi32>
    %84 = arith.sitofp %83 : vector<49x11xi32> to vector<49x11xf32>
    %cst_63 = arith.constant 1.250000e-01 : f32
    %85 = vector.broadcast %cst_63 : f32 to vector<49x11xf32>
    %86 = arith.mulf %84, %85 : vector<49x11xf32>
    %c0_64 = arith.constant 0 : index
    %c528 = arith.constant 528 : index
    %87 = vector.load %arg16[%c0_64, %c528] : memref<8x2224xf32, #tpu.memory_space<vmem>>, vector<8x49xf32>
    %cst_65 = arith.constant dense<0.000000e+00> : vector<8x11xf32>
    %88 = tpu.matmul %87, %86, %cst_65 {dimension_numbers = #tpu.dot_dimension_numbers<[1], [0], [0], [1], [0, 0, 1, 1], [], []>} : vector<8x49xf32>, vector<49x11xf32>, vector<8x11xf32> -> vector<8x11xf32>
    %c0_66 = arith.constant 0 : index
    %c7 = arith.constant 7 : index
    %89 = vector.load %arg17[%c0_66, %c7] : memref<8x496xf32, #tpu.memory_space<vmem>>, vector<8x11xf32>
    tpu.vector_store %arg17[%c0_66, %c7], %88 {strides = array<i32>} : memref<8x496xf32, #tpu.memory_space<vmem>>, vector<8x11xf32>,
    %c0_67 = arith.constant 0 : index
    %c577 = arith.constant 577 : index
    %90 = vector.load %arg16[%c0_67, %c577] : memref<8x2224xf32, #tpu.memory_space<vmem>>, vector<8x49xf32>
    %cst_68 = arith.constant dense<0.000000e+00> : vector<8x11xf32>
    %91 = tpu.matmul %90, %86, %cst_68 {dimension_numbers = #tpu.dot_dimension_numbers<[1], [0], [0], [1], [0, 0, 1, 1], [], []>} : vector<8x49xf32>, vector<49x11xf32>, vector<8x11xf32> -> vector<8x11xf32>
    %c0_69 = arith.constant 0 : index
    %c38 = arith.constant 38 : index
    %92 = vector.load %arg17[%c0_69, %c38] : memref<8x496xf32, #tpu.memory_space<vmem>>, vector<8x11xf32>
    tpu.vector_store %arg17[%c0_69, %c38], %91 {strides = array<i32>} : memref<8x496xf32, #tpu.memory_space<vmem>>, vector<8x11xf32>,
    %c0_70 = arith.constant 0 : index
    %c626 = arith.constant 626 : index
    %93 = vector.load %arg16[%c0_70, %c626] : memref<8x2224xf32, #tpu.memory_space<vmem>>, vector<8x49xf32>
    %cst_71 = arith.constant dense<0.000000e+00> : vector<8x11xf32>
    %94 = tpu.matmul %93, %86, %cst_71 {dimension_numbers = #tpu.dot_dimension_numbers<[1], [0], [0], [1], [0, 0, 1, 1], [], []>} : vector<8x49xf32>, vector<49x11xf32>, vector<8x11xf32> -> vector<8x11xf32>
    %c0_72 = arith.constant 0 : index
    %c69 = arith.constant 69 : index
    %95 = vector.load %arg17[%c0_72, %c69] : memref<8x496xf32, #tpu.memory_space<vmem>>, vector<8x11xf32>
    tpu.vector_store %arg17[%c0_72, %c69], %94 {strides = array<i32>} : memref<8x496xf32, #tpu.memory_space<vmem>>, vector<8x11xf32>,
    %c0_73 = arith.constant 0 : index
    %c675 = arith.constant 675 : index
    %96 = vector.load %arg16[%c0_73, %c675] : memref<8x2224xf32, #tpu.memory_space<vmem>>, vector<8x49xf32>
    %cst_74 = arith.constant dense<0.000000e+00> : vector<8x11xf32>
    %97 = tpu.matmul %96, %86, %cst_74 {dimension_numbers = #tpu.dot_dimension_numbers<[1], [0], [0], [1], [0, 0, 1, 1], [], []>} : vector<8x49xf32>, vector<49x11xf32>, vector<8x11xf32> -> vector<8x11xf32>
    %c0_75 = arith.constant 0 : index
    %c100 = arith.constant 100 : index
    %98 = vector.load %arg17[%c0_75, %c100] : memref<8x496xf32, #tpu.memory_space<vmem>>, vector<8x11xf32>
    tpu.vector_store %arg17[%c0_75, %c100], %97 {strides = array<i32>} : memref<8x496xf32, #tpu.memory_space<vmem>>, vector<8x11xf32>,
    %c0_76 = arith.constant 0 : index
    %c724 = arith.constant 724 : index
    %99 = vector.load %arg16[%c0_76, %c724] : memref<8x2224xf32, #tpu.memory_space<vmem>>, vector<8x49xf32>
    %cst_77 = arith.constant dense<0.000000e+00> : vector<8x11xf32>
    %100 = tpu.matmul %99, %86, %cst_77 {dimension_numbers = #tpu.dot_dimension_numbers<[1], [0], [0], [1], [0, 0, 1, 1], [], []>} : vector<8x49xf32>, vector<49x11xf32>, vector<8x11xf32> -> vector<8x11xf32>
    %c0_78 = arith.constant 0 : index
    %c131 = arith.constant 131 : index
    %101 = vector.load %arg17[%c0_78, %c131] : memref<8x496xf32, #tpu.memory_space<vmem>>, vector<8x11xf32>
    tpu.vector_store %arg17[%c0_78, %c131], %100 {strides = array<i32>} : memref<8x496xf32, #tpu.memory_space<vmem>>, vector<8x11xf32>,
    %c0_79 = arith.constant 0 : index
    %c773 = arith.constant 773 : index
    %102 = vector.load %arg16[%c0_79, %c773] : memref<8x2224xf32, #tpu.memory_space<vmem>>, vector<8x49xf32>
    %cst_80 = arith.constant dense<0.000000e+00> : vector<8x11xf32>
    %103 = tpu.matmul %102, %86, %cst_80 {dimension_numbers = #tpu.dot_dimension_numbers<[1], [0], [0], [1], [0, 0, 1, 1], [], []>} : vector<8x49xf32>, vector<49x11xf32>, vector<8x11xf32> -> vector<8x11xf32>
    %c0_81 = arith.constant 0 : index
    %c162 = arith.constant 162 : index
    %104 = vector.load %arg17[%c0_81, %c162] : memref<8x496xf32, #tpu.memory_space<vmem>>, vector<8x11xf32>
    tpu.vector_store %arg17[%c0_81, %c162], %103 {strides = array<i32>} : memref<8x496xf32, #tpu.memory_space<vmem>>, vector<8x11xf32>,
    %c0_82 = arith.constant 0 : index
    %c822 = arith.constant 822 : index
    %105 = vector.load %arg16[%c0_82, %c822] : memref<8x2224xf32, #tpu.memory_space<vmem>>, vector<8x49xf32>
    %cst_83 = arith.constant dense<0.000000e+00> : vector<8x11xf32>
    %106 = tpu.matmul %105, %86, %cst_83 {dimension_numbers = #tpu.dot_dimension_numbers<[1], [0], [0], [1], [0, 0, 1, 1], [], []>} : vector<8x49xf32>, vector<49x11xf32>, vector<8x11xf32> -> vector<8x11xf32>
    %c0_84 = arith.constant 0 : index
    %c193 = arith.constant 193 : index
    %107 = vector.load %arg17[%c0_84, %c193] : memref<8x496xf32, #tpu.memory_space<vmem>>, vector<8x11xf32>
    tpu.vector_store %arg17[%c0_84, %c193], %106 {strides = array<i32>} : memref<8x496xf32, #tpu.memory_space<vmem>>, vector<8x11xf32>,
    %c0_85 = arith.constant 0 : index
    %c871 = arith.constant 871 : index
    %108 = vector.load %arg16[%c0_85, %c871] : memref<8x2224xf32, #tpu.memory_space<vmem>>, vector<8x49xf32>
    %cst_86 = arith.constant dense<0.000000e+00> : vector<8x11xf32>
    %109 = tpu.matmul %108, %86, %cst_86 {dimension_numbers = #tpu.dot_dimension_numbers<[1], [0], [0], [1], [0, 0, 1, 1], [], []>} : vector<8x49xf32>, vector<49x11xf32>, vector<8x11xf32> -> vector<8x11xf32>
    %c0_87 = arith.constant 0 : index
    %c224 = arith.constant 224 : index
    %110 = vector.load %arg17[%c0_87, %c224] : memref<8x496xf32, #tpu.memory_space<vmem>>, vector<8x11xf32>
    tpu.vector_store %arg17[%c0_87, %c224], %109 {strides = array<i32>} : memref<8x496xf32, #tpu.memory_space<vmem>>, vector<8x11xf32>,
    %c0_88 = arith.constant 0 : index
    %c920 = arith.constant 920 : index
    %111 = vector.load %arg16[%c0_88, %c920] : memref<8x2224xf32, #tpu.memory_space<vmem>>, vector<8x49xf32>
    %cst_89 = arith.constant dense<0.000000e+00> : vector<8x11xf32>
    %112 = tpu.matmul %111, %86, %cst_89 {dimension_numbers = #tpu.dot_dimension_numbers<[1], [0], [0], [1], [0, 0, 1, 1], [], []>} : vector<8x49xf32>, vector<49x11xf32>, vector<8x11xf32> -> vector<8x11xf32>
    %c0_90 = arith.constant 0 : index
    %c255 = arith.constant 255 : index
    %113 = vector.load %arg17[%c0_90, %c255] : memref<8x496xf32, #tpu.memory_space<vmem>>, vector<8x11xf32>
    tpu.vector_store %arg17[%c0_90, %c255], %112 {strides = array<i32>} : memref<8x496xf32, #tpu.memory_space<vmem>>, vector<8x11xf32>,
    %c0_91 = arith.constant 0 : index
    %c969 = arith.constant 969 : index
    %114 = vector.load %arg16[%c0_91, %c969] : memref<8x2224xf32, #tpu.memory_space<vmem>>, vector<8x49xf32>
    %cst_92 = arith.constant dense<0.000000e+00> : vector<8x11xf32>
    %115 = tpu.matmul %114, %86, %cst_92 {dimension_numbers = #tpu.dot_dimension_numbers<[1], [0], [0], [1], [0, 0, 1, 1], [], []>} : vector<8x49xf32>, vector<49x11xf32>, vector<8x11xf32> -> vector<8x11xf32>
    %c0_93 = arith.constant 0 : index
    %c286 = arith.constant 286 : index
    %116 = vector.load %arg17[%c0_93, %c286] : memref<8x496xf32, #tpu.memory_space<vmem>>, vector<8x11xf32>
    tpu.vector_store %arg17[%c0_93, %c286], %115 {strides = array<i32>} : memref<8x496xf32, #tpu.memory_space<vmem>>, vector<8x11xf32>,
    %c0_94 = arith.constant 0 : index
    %c1018 = arith.constant 1018 : index
    %117 = vector.load %arg16[%c0_94, %c1018] : memref<8x2224xf32, #tpu.memory_space<vmem>>, vector<8x49xf32>
    %cst_95 = arith.constant dense<0.000000e+00> : vector<8x11xf32>
    %118 = tpu.matmul %117, %86, %cst_95 {dimension_numbers = #tpu.dot_dimension_numbers<[1], [0], [0], [1], [0, 0, 1, 1], [], []>} : vector<8x49xf32>, vector<49x11xf32>, vector<8x11xf32> -> vector<8x11xf32>
    %c0_96 = arith.constant 0 : index
    %c317 = arith.constant 317 : index
    %119 = vector.load %arg17[%c0_96, %c317] : memref<8x496xf32, #tpu.memory_space<vmem>>, vector<8x11xf32>
    tpu.vector_store %arg17[%c0_96, %c317], %118 {strides = array<i32>} : memref<8x496xf32, #tpu.memory_space<vmem>>, vector<8x11xf32>,
    %c0_97 = arith.constant 0 : index
    %c1067 = arith.constant 1067 : index
    %120 = vector.load %arg16[%c0_97, %c1067] : memref<8x2224xf32, #tpu.memory_space<vmem>>, vector<8x49xf32>
    %cst_98 = arith.constant dense<0.000000e+00> : vector<8x11xf32>
    %121 = tpu.matmul %120, %86, %cst_98 {dimension_numbers = #tpu.dot_dimension_numbers<[1], [0], [0], [1], [0, 0, 1, 1], [], []>} : vector<8x49xf32>, vector<49x11xf32>, vector<8x11xf32> -> vector<8x11xf32>
    %c0_99 = arith.constant 0 : index
    %c348 = arith.constant 348 : index
    %122 = vector.load %arg17[%c0_99, %c348] : memref<8x496xf32, #tpu.memory_space<vmem>>, vector<8x11xf32>
    tpu.vector_store %arg17[%c0_99, %c348], %121 {strides = array<i32>} : memref<8x496xf32, #tpu.memory_space<vmem>>, vector<8x11xf32>,
    %c0_100 = arith.constant 0 : index
    %c1116 = arith.constant 1116 : index
    %123 = vector.load %arg16[%c0_100, %c1116] : memref<8x2224xf32, #tpu.memory_space<vmem>>, vector<8x49xf32>
    %cst_101 = arith.constant dense<0.000000e+00> : vector<8x11xf32>
    %124 = tpu.matmul %123, %86, %cst_101 {dimension_numbers = #tpu.dot_dimension_numbers<[1], [0], [0], [1], [0, 0, 1, 1], [], []>} : vector<8x49xf32>, vector<49x11xf32>, vector<8x11xf32> -> vector<8x11xf32>
    %c0_102 = arith.constant 0 : index
    %c379 = arith.constant 379 : index
    %125 = vector.load %arg17[%c0_102, %c379] : memref<8x496xf32, #tpu.memory_space<vmem>>, vector<8x11xf32>
    tpu.vector_store %arg17[%c0_102, %c379], %124 {strides = array<i32>} : memref<8x496xf32, #tpu.memory_space<vmem>>, vector<8x11xf32>,
    %c0_103 = arith.constant 0 : index
    %c1165 = arith.constant 1165 : index
    %126 = vector.load %arg16[%c0_103, %c1165] : memref<8x2224xf32, #tpu.memory_space<vmem>>, vector<8x49xf32>
    %cst_104 = arith.constant dense<0.000000e+00> : vector<8x11xf32>
    %127 = tpu.matmul %126, %86, %cst_104 {dimension_numbers = #tpu.dot_dimension_numbers<[1], [0], [0], [1], [0, 0, 1, 1], [], []>} : vector<8x49xf32>, vector<49x11xf32>, vector<8x11xf32> -> vector<8x11xf32>
    %c0_105 = arith.constant 0 : index
    %c410 = arith.constant 410 : index
    %128 = vector.load %arg17[%c0_105, %c410] : memref<8x496xf32, #tpu.memory_space<vmem>>, vector<8x11xf32>
    tpu.vector_store %arg17[%c0_105, %c410], %127 {strides = array<i32>} : memref<8x496xf32, #tpu.memory_space<vmem>>, vector<8x11xf32>,
    %c0_106 = arith.constant 0 : index
    %c1214 = arith.constant 1214 : index
    %129 = vector.load %arg16[%c0_106, %c1214] : memref<8x2224xf32, #tpu.memory_space<vmem>>, vector<8x49xf32>
    %cst_107 = arith.constant dense<0.000000e+00> : vector<8x11xf32>
    %130 = tpu.matmul %129, %86, %cst_107 {dimension_numbers = #tpu.dot_dimension_numbers<[1], [0], [0], [1], [0, 0, 1, 1], [], []>} : vector<8x49xf32>, vector<49x11xf32>, vector<8x11xf32> -> vector<8x11xf32>
    %c0_108 = arith.constant 0 : index
    %c441 = arith.constant 441 : index
    %131 = vector.load %arg17[%c0_108, %c441] : memref<8x496xf32, #tpu.memory_space<vmem>>, vector<8x11xf32>
    tpu.vector_store %arg17[%c0_108, %c441], %130 {strides = array<i32>} : memref<8x496xf32, #tpu.memory_space<vmem>>, vector<8x11xf32>,
    %c0_109 = arith.constant 0 : index
    %c1263 = arith.constant 1263 : index
    %132 = vector.load %arg16[%c0_109, %c1263] : memref<8x2224xf32, #tpu.memory_space<vmem>>, vector<8x49xf32>
    %cst_110 = arith.constant dense<0.000000e+00> : vector<8x11xf32>
    %133 = tpu.matmul %132, %86, %cst_110 {dimension_numbers = #tpu.dot_dimension_numbers<[1], [0], [0], [1], [0, 0, 1, 1], [], []>} : vector<8x49xf32>, vector<49x11xf32>, vector<8x11xf32> -> vector<8x11xf32>
    %c0_111 = arith.constant 0 : index
    %c472 = arith.constant 472 : index
    %134 = vector.load %arg17[%c0_111, %c472] : memref<8x496xf32, #tpu.memory_space<vmem>>, vector<8x11xf32>
    tpu.vector_store %arg17[%c0_111, %c472], %133 {strides = array<i32>} : memref<8x496xf32, #tpu.memory_space<vmem>>, vector<8x11xf32>,
    %135 = tpu.iota {dimensions = array<i32: 0>} : vector<57x13xi32>
    %136 = tpu.iota {dimensions = array<i32: 1>} : vector<57x13xi32>
    %c4_i32_112 = arith.constant 4 : i32
    %137 = vector.broadcast %c4_i32_112 : i32 to vector<57x13xi32>
    %138 = arith.muli %136, %137 : vector<57x13xi32>
    %139 = arith.cmpi sge, %135, %138 : vector<57x13xi32>
    %c4_i32_113 = arith.constant 4 : i32
    %140 = vector.broadcast %c4_i32_113 : i32 to vector<57x13xi32>
    %141 = arith.muli %136, %140 : vector<57x13xi32>
    %c8_i32_114 = arith.constant 8 : i32
    %142 = vector.broadcast %c8_i32_114 : i32 to vector<57x13xi32>
    %143 = arith.addi %141, %142 : vector<57x13xi32>
    %144 = arith.cmpi slt, %135, %143 : vector<57x13xi32>
    %145 = arith.andi %139, %144 : vector<57x13xi1>
    %146 = arith.extui %145 : vector<57x13xi1> to vector<57x13xi32>
    %147 = arith.sitofp %146 : vector<57x13xi32> to vector<57x13xf32>
    %cst_115 = arith.constant 1.250000e-01 : f32
    %148 = vector.broadcast %cst_115 : f32 to vector<57x13xf32>
    %149 = arith.mulf %147, %148 : vector<57x13xf32>
    %c0_116 = arith.constant 0 : index
    %c1312 = arith.constant 1312 : index
    %150 = vector.load %arg16[%c0_116, %c1312] : memref<8x2224xf32, #tpu.memory_space<vmem>>, vector<8x57xf32>
    %cst_117 = arith.constant dense<0.000000e+00> : vector<8x13xf32>
    %151 = tpu.matmul %150, %149, %cst_117 {dimension_numbers = #tpu.dot_dimension_numbers<[1], [0], [0], [1], [0, 0, 1, 1], [], []>} : vector<8x57xf32>, vector<57x13xf32>, vector<8x13xf32> -> vector<8x13xf32>
    %c0_118 = arith.constant 0 : index
    %c18 = arith.constant 18 : index
    %152 = vector.load %arg17[%c0_118, %c18] : memref<8x496xf32, #tpu.memory_space<vmem>>, vector<8x13xf32>
    tpu.vector_store %arg17[%c0_118, %c18], %151 {strides = array<i32>} : memref<8x496xf32, #tpu.memory_space<vmem>>, vector<8x13xf32>,
    %c0_119 = arith.constant 0 : index
    %c1369 = arith.constant 1369 : index
    %153 = vector.load %arg16[%c0_119, %c1369] : memref<8x2224xf32, #tpu.memory_space<vmem>>, vector<8x57xf32>
    %cst_120 = arith.constant dense<0.000000e+00> : vector<8x13xf32>
    %154 = tpu.matmul %153, %149, %cst_120 {dimension_numbers = #tpu.dot_dimension_numbers<[1], [0], [0], [1], [0, 0, 1, 1], [], []>} : vector<8x57xf32>, vector<57x13xf32>, vector<8x13xf32> -> vector<8x13xf32>
    %c0_121 = arith.constant 0 : index
    %c49 = arith.constant 49 : index
    %155 = vector.load %arg17[%c0_121, %c49] : memref<8x496xf32, #tpu.memory_space<vmem>>, vector<8x13xf32>
    tpu.vector_store %arg17[%c0_121, %c49], %154 {strides = array<i32>} : memref<8x496xf32, #tpu.memory_space<vmem>>, vector<8x13xf32>,
    %c0_122 = arith.constant 0 : index
    %c1426 = arith.constant 1426 : index
    %156 = vector.load %arg16[%c0_122, %c1426] : memref<8x2224xf32, #tpu.memory_space<vmem>>, vector<8x57xf32>
    %cst_123 = arith.constant dense<0.000000e+00> : vector<8x13xf32>
    %157 = tpu.matmul %156, %149, %cst_123 {dimension_numbers = #tpu.dot_dimension_numbers<[1], [0], [0], [1], [0, 0, 1, 1], [], []>} : vector<8x57xf32>, vector<57x13xf32>, vector<8x13xf32> -> vector<8x13xf32>
    %c0_124 = arith.constant 0 : index
    %c80 = arith.constant 80 : index
    %158 = vector.load %arg17[%c0_124, %c80] : memref<8x496xf32, #tpu.memory_space<vmem>>, vector<8x13xf32>
    tpu.vector_store %arg17[%c0_124, %c80], %157 {strides = array<i32>} : memref<8x496xf32, #tpu.memory_space<vmem>>, vector<8x13xf32>,
    %c0_125 = arith.constant 0 : index
    %c1483 = arith.constant 1483 : index
    %159 = vector.load %arg16[%c0_125, %c1483] : memref<8x2224xf32, #tpu.memory_space<vmem>>, vector<8x57xf32>
    %cst_126 = arith.constant dense<0.000000e+00> : vector<8x13xf32>
    %160 = tpu.matmul %159, %149, %cst_126 {dimension_numbers = #tpu.dot_dimension_numbers<[1], [0], [0], [1], [0, 0, 1, 1], [], []>} : vector<8x57xf32>, vector<57x13xf32>, vector<8x13xf32> -> vector<8x13xf32>
    %c0_127 = arith.constant 0 : index
    %c111 = arith.constant 111 : index
    %161 = vector.load %arg17[%c0_127, %c111] : memref<8x496xf32, #tpu.memory_space<vmem>>, vector<8x13xf32>
    tpu.vector_store %arg17[%c0_127, %c111], %160 {strides = array<i32>} : memref<8x496xf32, #tpu.memory_space<vmem>>, vector<8x13xf32>,
    %c0_128 = arith.constant 0 : index
    %c1540 = arith.constant 1540 : index
    %162 = vector.load %arg16[%c0_128, %c1540] : memref<8x2224xf32, #tpu.memory_space<vmem>>, vector<8x57xf32>
    %cst_129 = arith.constant dense<0.000000e+00> : vector<8x13xf32>
    %163 = tpu.matmul %162, %149, %cst_129 {dimension_numbers = #tpu.dot_dimension_numbers<[1], [0], [0], [1], [0, 0, 1, 1], [], []>} : vector<8x57xf32>, vector<57x13xf32>, vector<8x13xf32> -> vector<8x13xf32>
    %c0_130 = arith.constant 0 : index
    %c142 = arith.constant 142 : index
    %164 = vector.load %arg17[%c0_130, %c142] : memref<8x496xf32, #tpu.memory_space<vmem>>, vector<8x13xf32>
    tpu.vector_store %arg17[%c0_130, %c142], %163 {strides = array<i32>} : memref<8x496xf32, #tpu.memory_space<vmem>>, vector<8x13xf32>,
    %c0_131 = arith.constant 0 : index
    %c1597 = arith.constant 1597 : index
    %165 = vector.load %arg16[%c0_131, %c1597] : memref<8x2224xf32, #tpu.memory_space<vmem>>, vector<8x57xf32>
    %cst_132 = arith.constant dense<0.000000e+00> : vector<8x13xf32>
    %166 = tpu.matmul %165, %149, %cst_132 {dimension_numbers = #tpu.dot_dimension_numbers<[1], [0], [0], [1], [0, 0, 1, 1], [], []>} : vector<8x57xf32>, vector<57x13xf32>, vector<8x13xf32> -> vector<8x13xf32>
    %c0_133 = arith.constant 0 : index
    %c173 = arith.constant 173 : index
    %167 = vector.load %arg17[%c0_133, %c173] : memref<8x496xf32, #tpu.memory_space<vmem>>, vector<8x13xf32>
    tpu.vector_store %arg17[%c0_133, %c173], %166 {strides = array<i32>} : memref<8x496xf32, #tpu.memory_space<vmem>>, vector<8x13xf32>,
    %c0_134 = arith.constant 0 : index
    %c1654 = arith.constant 1654 : index
    %168 = vector.load %arg16[%c0_134, %c1654] : memref<8x2224xf32, #tpu.memory_space<vmem>>, vector<8x57xf32>
    %cst_135 = arith.constant dense<0.000000e+00> : vector<8x13xf32>
    %169 = tpu.matmul %168, %149, %cst_135 {dimension_numbers = #tpu.dot_dimension_numbers<[1], [0], [0], [1], [0, 0, 1, 1], [], []>} : vector<8x57xf32>, vector<57x13xf32>, vector<8x13xf32> -> vector<8x13xf32>
    %c0_136 = arith.constant 0 : index
    %c204 = arith.constant 204 : index
    %170 = vector.load %arg17[%c0_136, %c204] : memref<8x496xf32, #tpu.memory_space<vmem>>, vector<8x13xf32>
    tpu.vector_store %arg17[%c0_136, %c204], %169 {strides = array<i32>} : memref<8x496xf32, #tpu.memory_space<vmem>>, vector<8x13xf32>,
    %c0_137 = arith.constant 0 : index
    %c1711 = arith.constant 1711 : index
    %171 = vector.load %arg16[%c0_137, %c1711] : memref<8x2224xf32, #tpu.memory_space<vmem>>, vector<8x57xf32>
    %cst_138 = arith.constant dense<0.000000e+00> : vector<8x13xf32>
    %172 = tpu.matmul %171, %149, %cst_138 {dimension_numbers = #tpu.dot_dimension_numbers<[1], [0], [0], [1], [0, 0, 1, 1], [], []>} : vector<8x57xf32>, vector<57x13xf32>, vector<8x13xf32> -> vector<8x13xf32>
    %c0_139 = arith.constant 0 : index
    %c235 = arith.constant 235 : index
    %173 = vector.load %arg17[%c0_139, %c235] : memref<8x496xf32, #tpu.memory_space<vmem>>, vector<8x13xf32>
    tpu.vector_store %arg17[%c0_139, %c235], %172 {strides = array<i32>} : memref<8x496xf32, #tpu.memory_space<vmem>>, vector<8x13xf32>,
    %c0_140 = arith.constant 0 : index
    %c1768 = arith.constant 1768 : index
    %174 = vector.load %arg16[%c0_140, %c1768] : memref<8x2224xf32, #tpu.memory_space<vmem>>, vector<8x57xf32>
    %cst_141 = arith.constant dense<0.000000e+00> : vector<8x13xf32>
    %175 = tpu.matmul %174, %149, %cst_141 {dimension_numbers = #tpu.dot_dimension_numbers<[1], [0], [0], [1], [0, 0, 1, 1], [], []>} : vector<8x57xf32>, vector<57x13xf32>, vector<8x13xf32> -> vector<8x13xf32>
    %c0_142 = arith.constant 0 : index
    %c266 = arith.constant 266 : index
    %176 = vector.load %arg17[%c0_142, %c266] : memref<8x496xf32, #tpu.memory_space<vmem>>, vector<8x13xf32>
    tpu.vector_store %arg17[%c0_142, %c266], %175 {strides = array<i32>} : memref<8x496xf32, #tpu.memory_space<vmem>>, vector<8x13xf32>,
    %c0_143 = arith.constant 0 : index
    %c1825 = arith.constant 1825 : index
    %177 = vector.load %arg16[%c0_143, %c1825] : memref<8x2224xf32, #tpu.memory_space<vmem>>, vector<8x57xf32>
    %cst_144 = arith.constant dense<0.000000e+00> : vector<8x13xf32>
    %178 = tpu.matmul %177, %149, %cst_144 {dimension_numbers = #tpu.dot_dimension_numbers<[1], [0], [0], [1], [0, 0, 1, 1], [], []>} : vector<8x57xf32>, vector<57x13xf32>, vector<8x13xf32> -> vector<8x13xf32>
    %c0_145 = arith.constant 0 : index
    %c297_146 = arith.constant 297 : index
    %179 = vector.load %arg17[%c0_145, %c297_146] : memref<8x496xf32, #tpu.memory_space<vmem>>, vector<8x13xf32>
    tpu.vector_store %arg17[%c0_145, %c297_146], %178 {strides = array<i32>} : memref<8x496xf32, #tpu.memory_space<vmem>>, vector<8x13xf32>,
    %c0_147 = arith.constant 0 : index
    %c1882 = arith.constant 1882 : index
    %180 = vector.load %arg16[%c0_147, %c1882] : memref<8x2224xf32, #tpu.memory_space<vmem>>, vector<8x57xf32>
    %cst_148 = arith.constant dense<0.000000e+00> : vector<8x13xf32>
    %181 = tpu.matmul %180, %149, %cst_148 {dimension_numbers = #tpu.dot_dimension_numbers<[1], [0], [0], [1], [0, 0, 1, 1], [], []>} : vector<8x57xf32>, vector<57x13xf32>, vector<8x13xf32> -> vector<8x13xf32>
    %c0_149 = arith.constant 0 : index
    %c328 = arith.constant 328 : index
    %182 = vector.load %arg17[%c0_149, %c328] : memref<8x496xf32, #tpu.memory_space<vmem>>, vector<8x13xf32>
    tpu.vector_store %arg17[%c0_149, %c328], %181 {strides = array<i32>} : memref<8x496xf32, #tpu.memory_space<vmem>>, vector<8x13xf32>,
    %c0_150 = arith.constant 0 : index
    %c1939 = arith.constant 1939 : index
    %183 = vector.load %arg16[%c0_150, %c1939] : memref<8x2224xf32, #tpu.memory_space<vmem>>, vector<8x57xf32>
    %cst_151 = arith.constant dense<0.000000e+00> : vector<8x13xf32>
    %184 = tpu.matmul %183, %149, %cst_151 {dimension_numbers = #tpu.dot_dimension_numbers<[1], [0], [0], [1], [0, 0, 1, 1], [], []>} : vector<8x57xf32>, vector<57x13xf32>, vector<8x13xf32> -> vector<8x13xf32>
    %c0_152 = arith.constant 0 : index
    %c359 = arith.constant 359 : index
    %185 = vector.load %arg17[%c0_152, %c359] : memref<8x496xf32, #tpu.memory_space<vmem>>, vector<8x13xf32>
    tpu.vector_store %arg17[%c0_152, %c359], %184 {strides = array<i32>} : memref<8x496xf32, #tpu.memory_space<vmem>>, vector<8x13xf32>,
    %c0_153 = arith.constant 0 : index
    %c1996 = arith.constant 1996 : index
    %186 = vector.load %arg16[%c0_153, %c1996] : memref<8x2224xf32, #tpu.memory_space<vmem>>, vector<8x57xf32>
    %cst_154 = arith.constant dense<0.000000e+00> : vector<8x13xf32>
    %187 = tpu.matmul %186, %149, %cst_154 {dimension_numbers = #tpu.dot_dimension_numbers<[1], [0], [0], [1], [0, 0, 1, 1], [], []>} : vector<8x57xf32>, vector<57x13xf32>, vector<8x13xf32> -> vector<8x13xf32>
    %c0_155 = arith.constant 0 : index
    %c390 = arith.constant 390 : index
    %188 = vector.load %arg17[%c0_155, %c390] : memref<8x496xf32, #tpu.memory_space<vmem>>, vector<8x13xf32>
    tpu.vector_store %arg17[%c0_155, %c390], %187 {strides = array<i32>} : memref<8x496xf32, #tpu.memory_space<vmem>>, vector<8x13xf32>,
    %c0_156 = arith.constant 0 : index
    %c2053 = arith.constant 2053 : index
    %189 = vector.load %arg16[%c0_156, %c2053] : memref<8x2224xf32, #tpu.memory_space<vmem>>, vector<8x57xf32>
    %cst_157 = arith.constant dense<0.000000e+00> : vector<8x13xf32>
    %190 = tpu.matmul %189, %149, %cst_157 {dimension_numbers = #tpu.dot_dimension_numbers<[1], [0], [0], [1], [0, 0, 1, 1], [], []>} : vector<8x57xf32>, vector<57x13xf32>, vector<8x13xf32> -> vector<8x13xf32>
    %c0_158 = arith.constant 0 : index
    %c421 = arith.constant 421 : index
    %191 = vector.load %arg17[%c0_158, %c421] : memref<8x496xf32, #tpu.memory_space<vmem>>, vector<8x13xf32>
    tpu.vector_store %arg17[%c0_158, %c421], %190 {strides = array<i32>} : memref<8x496xf32, #tpu.memory_space<vmem>>, vector<8x13xf32>,
    %c0_159 = arith.constant 0 : index
    %c2110 = arith.constant 2110 : index
    %192 = vector.load %arg16[%c0_159, %c2110] : memref<8x2224xf32, #tpu.memory_space<vmem>>, vector<8x57xf32>
    %cst_160 = arith.constant dense<0.000000e+00> : vector<8x13xf32>
    %193 = tpu.matmul %192, %149, %cst_160 {dimension_numbers = #tpu.dot_dimension_numbers<[1], [0], [0], [1], [0, 0, 1, 1], [], []>} : vector<8x57xf32>, vector<57x13xf32>, vector<8x13xf32> -> vector<8x13xf32>
    %c0_161 = arith.constant 0 : index
    %c452 = arith.constant 452 : index
    %194 = vector.load %arg17[%c0_161, %c452] : memref<8x496xf32, #tpu.memory_space<vmem>>, vector<8x13xf32>
    tpu.vector_store %arg17[%c0_161, %c452], %193 {strides = array<i32>} : memref<8x496xf32, #tpu.memory_space<vmem>>, vector<8x13xf32>,
    %c0_162 = arith.constant 0 : index
    %c2167 = arith.constant 2167 : index
    %195 = vector.load %arg16[%c0_162, %c2167] : memref<8x2224xf32, #tpu.memory_space<vmem>>, vector<8x57xf32>
    %cst_163 = arith.constant dense<0.000000e+00> : vector<8x13xf32>
    %196 = tpu.matmul %195, %149, %cst_163 {dimension_numbers = #tpu.dot_dimension_numbers<[1], [0], [0], [1], [0, 0, 1, 1], [], []>} : vector<8x57xf32>, vector<57x13xf32>, vector<8x13xf32> -> vector<8x13xf32>
    %c0_164 = arith.constant 0 : index
    %c483 = arith.constant 483 : index
    %197 = vector.load %arg17[%c0_164, %c483] : memref<8x496xf32, #tpu.memory_space<vmem>>, vector<8x13xf32>
    tpu.vector_store %arg17[%c0_164, %c483], %196 {strides = array<i32>} : memref<8x496xf32, #tpu.memory_space<vmem>>, vector<8x13xf32>,
    %c0_165 = arith.constant 0 : index
    %c0_166 = arith.constant 0 : index
    %198 = vector.load %arg17[%c0_165, %c0_166] : memref<8x496xf32, #tpu.memory_space<vmem>>, vector<8x496xf32>
    %199 = math.log %198 : vector<8x496xf32>
    %cst_167 = arith.constant 0.999994993 : f32
    %200 = vector.broadcast %cst_167 : f32 to vector<8x496xf32>
    %201 = arith.mulf %199, %200 : vector<8x496xf32>
    %cst_168 = arith.constant dense<0.000000e+00> : vector<8xf32>
    %202 = vector.multi_reduction <add>, %201, %cst_168 [1] : vector<8x496xf32> to vector<8xf32>
    %203 = vector.shape_cast %202 : vector<8xf32> to vector<8x1xf32>
    %cst_169 = arith.constant 0.00201612897 : f32
    %204 = vector.broadcast %cst_169 : f32 to vector<8x1xf32>
    %205 = arith.mulf %203, %204 : vector<8x1xf32>
    %cst_170 = arith.constant dense<0xFF800000> : vector<8xf32>
    %206 = vector.multi_reduction <maximumf>, %201, %cst_170 [1] : vector<8x496xf32> to vector<8xf32>
    %207 = vector.shape_cast %206 : vector<8xf32> to vector<8x1xf32>
    %c0_171 = arith.constant 0 : index
    %c0_172 = arith.constant 0 : index
    %208 = vector.load %arg4[%c0_171, %c0_172] : memref<4x8xf32, #tpu.memory_space<vmem>>, vector<4x8xf32>
    %cst_173 = arith.constant dense<0.000000e+00> : vector<4x1xf32>
    %209 = tpu.matmul %208, %205, %cst_173 {dimension_numbers = #tpu.dot_dimension_numbers<[1], [0], [0], [1], [0, 0, 1, 1], [], []>} : vector<4x8xf32>, vector<8x1xf32>, vector<4x1xf32> -> vector<4x1xf32>
    %cst_174 = arith.constant 0.000000e+00 : f32
    %210 = vector.broadcast %cst_174 : f32 to vector<4x1xf32>
    %211 = arith.maximumf %209, %210 : vector<4x1xf32>
    %c0_175 = arith.constant 0 : index
    %c0_176 = arith.constant 0 : index
    %212 = vector.load %arg5[%c0_175, %c0_176] : memref<8x4xf32, #tpu.memory_space<vmem>>, vector<8x4xf32>
    %cst_177 = arith.constant dense<0.000000e+00> : vector<8x1xf32>
    %213 = tpu.matmul %212, %211, %cst_177 {dimension_numbers = #tpu.dot_dimension_numbers<[1], [0], [0], [1], [0, 0, 1, 1], [], []>} : vector<8x4xf32>, vector<4x1xf32>, vector<8x1xf32> -> vector<8x1xf32>
    %c0_178 = arith.constant 0 : index
    %c0_179 = arith.constant 0 : index
    %214 = vector.load %arg4[%c0_178, %c0_179] : memref<4x8xf32, #tpu.memory_space<vmem>>, vector<4x8xf32>
    %cst_180 = arith.constant dense<0.000000e+00> : vector<4x1xf32>
    %215 = tpu.matmul %214, %207, %cst_180 {dimension_numbers = #tpu.dot_dimension_numbers<[1], [0], [0], [1], [0, 0, 1, 1], [], []>} : vector<4x8xf32>, vector<8x1xf32>, vector<4x1xf32> -> vector<4x1xf32>
    %cst_181 = arith.constant 0.000000e+00 : f32
    %216 = vector.broadcast %cst_181 : f32 to vector<4x1xf32>
    %217 = arith.maximumf %215, %216 : vector<4x1xf32>
    %c0_182 = arith.constant 0 : index
    %c0_183 = arith.constant 0 : index
    %218 = vector.load %arg5[%c0_182, %c0_183] : memref<8x4xf32, #tpu.memory_space<vmem>>, vector<8x4xf32>
    %cst_184 = arith.constant dense<0.000000e+00> : vector<8x1xf32>
    %219 = tpu.matmul %218, %217, %cst_184 {dimension_numbers = #tpu.dot_dimension_numbers<[1], [0], [0], [1], [0, 0, 1, 1], [], []>} : vector<8x4xf32>, vector<4x1xf32>, vector<8x1xf32> -> vector<8x1xf32>
    %220 = arith.addf %213, %219 : vector<8x1xf32>
    %cst_185 = arith.constant 0.000000e+00 : f32
    %221 = vector.broadcast %cst_185 : f32 to vector<8x1xf32>
    %222 = arith.subf %221, %220 : vector<8x1xf32>
    %223 = math.exp %222 : vector<8x1xf32>
    %cst_186 = arith.constant 1.000000e+00 : f32
    %224 = vector.broadcast %cst_186 : f32 to vector<8x1xf32>
    %225 = arith.addf %224, %223 : vector<8x1xf32>
    %cst_187 = arith.constant 1.000000e+00 : f32
    %226 = vector.broadcast %cst_187 : f32 to vector<8x1xf32>
    %227 = arith.divf %226, %225 : vector<8x1xf32>
    %228 = math.exp %220 : vector<8x1xf32>
    %cst_188 = arith.constant 1.000000e+00 : f32
    %229 = vector.broadcast %cst_188 : f32 to vector<8x1xf32>
    %230 = arith.addf %229, %228 : vector<8x1xf32>
    %231 = arith.divf %228, %230 : vector<8x1xf32>
    %cst_189 = arith.constant 0.000000e+00 : f32
    %232 = vector.broadcast %cst_189 : f32 to vector<8x1xf32>
    %233 = arith.cmpf oge, %220, %232 : vector<8x1xf32>
    %234 = arith.select %233, %227, %231 : vector<8x1xi1>, vector<8x1xf32>
    %235 = vector.broadcast %234 : vector<8x1xf32> to vector<8x496xf32>
    %236 = arith.mulf %201, %235 : vector<8x496xf32>
    %c0_190 = arith.constant 0 : index
    %c0_191 = arith.constant 0 : index
    %237 = vector.load %arg17[%c0_190, %c0_191] : memref<8x496xf32, #tpu.memory_space<vmem>>, vector<8x496xf32>
    tpu.vector_store %arg17[%c0_190, %c0_191], %236 {strides = array<i32>} : memref<8x496xf32, #tpu.memory_space<vmem>>, vector<8x496xf32>,
    %cst_192 = arith.constant dense<0.000000e+00> : vector<496xf32>
    %238 = vector.multi_reduction <add>, %236, %cst_192 [0] : vector<8x496xf32> to vector<496xf32>
    %239 = vector.shape_cast %238 : vector<496xf32> to vector<1x496xf32>
    %cst_193 = arith.constant 1.250000e-01 : f32
    %240 = vector.broadcast %cst_193 : f32 to vector<1x496xf32>
    %241 = arith.mulf %239, %240 : vector<1x496xf32>
    %cst_194 = arith.constant dense<0xFF800000> : vector<496xf32>
    %242 = vector.multi_reduction <maximumf>, %236, %cst_194 [0] : vector<8x496xf32> to vector<496xf32>
    %243 = vector.shape_cast %242 : vector<496xf32> to vector<1x496xf32>
    %cst_195 = arith.constant 0.000000e+00 : f32
    %244 = vector.broadcast %cst_195 : f32 to vector<44x37xf32>
    %c0_196 = arith.constant 0 : index
    %c0_197 = arith.constant 0 : index
    %245 = vector.load %arg18[%c0_196, %c0_197] : memref<44x37xf32, #tpu.memory_space<vmem>>, vector<44x37xf32>
    tpu.vector_store %arg18[%c0_196, %c0_197], %244 {strides = array<i32>} : memref<44x37xf32, #tpu.memory_space<vmem>>, vector<44x37xf32>,
    %246 = vector.extract_strided_slice %241 {offsets = [0, 0], sizes = [1, 31], strides = [1, 1]} : vector<1x496xf32> to vector<1x31xf32>
    %c3 = arith.constant 3 : index
    %c3_198 = arith.constant 3 : index
    %247 = vector.load %arg18[%c3, %c3_198] : memref<44x37xf32, #tpu.memory_space<vmem>>, vector<1x31xf32>
    tpu.vector_store %arg18[%c3, %c3_198], %246 {strides = array<i32>} : memref<44x37xf32, #tpu.memory_space<vmem>>, vector<1x31xf32>,
    %248 = vector.extract_strided_slice %243 {offsets = [0, 0], sizes = [1, 31], strides = [1, 1]} : vector<1x496xf32> to vector<1x31xf32>
    %c25 = arith.constant 25 : index
    %c3_199 = arith.constant 3 : index
    %249 = vector.load %arg18[%c25, %c3_199] : memref<44x37xf32, #tpu.memory_space<vmem>>, vector<1x31xf32>
    tpu.vector_store %arg18[%c25, %c3_199], %248 {strides = array<i32>} : memref<44x37xf32, #tpu.memory_space<vmem>>, vector<1x31xf32>,
    %250 = vector.extract_strided_slice %241 {offsets = [0, 31], sizes = [1, 31], strides = [1, 1]} : vector<1x496xf32> to vector<1x31xf32>
    %c4 = arith.constant 4 : index
    %c3_200 = arith.constant 3 : index
    %251 = vector.load %arg18[%c4, %c3_200] : memref<44x37xf32, #tpu.memory_space<vmem>>, vector<1x31xf32>
    tpu.vector_store %arg18[%c4, %c3_200], %250 {strides = array<i32>} : memref<44x37xf32, #tpu.memory_space<vmem>>, vector<1x31xf32>,
    %252 = vector.extract_strided_slice %243 {offsets = [0, 31], sizes = [1, 31], strides = [1, 1]} : vector<1x496xf32> to vector<1x31xf32>
    %c26 = arith.constant 26 : index
    %c3_201 = arith.constant 3 : index
    %253 = vector.load %arg18[%c26, %c3_201] : memref<44x37xf32, #tpu.memory_space<vmem>>, vector<1x31xf32>
    tpu.vector_store %arg18[%c26, %c3_201], %252 {strides = array<i32>} : memref<44x37xf32, #tpu.memory_space<vmem>>, vector<1x31xf32>,
    %254 = vector.extract_strided_slice %241 {offsets = [0, 62], sizes = [1, 31], strides = [1, 1]} : vector<1x496xf32> to vector<1x31xf32>
    %c5 = arith.constant 5 : index
    %c3_202 = arith.constant 3 : index
    %255 = vector.load %arg18[%c5, %c3_202] : memref<44x37xf32, #tpu.memory_space<vmem>>, vector<1x31xf32>
    tpu.vector_store %arg18[%c5, %c3_202], %254 {strides = array<i32>} : memref<44x37xf32, #tpu.memory_space<vmem>>, vector<1x31xf32>,
    %256 = vector.extract_strided_slice %243 {offsets = [0, 62], sizes = [1, 31], strides = [1, 1]} : vector<1x496xf32> to vector<1x31xf32>
    %c27 = arith.constant 27 : index
    %c3_203 = arith.constant 3 : index
    %257 = vector.load %arg18[%c27, %c3_203] : memref<44x37xf32, #tpu.memory_space<vmem>>, vector<1x31xf32>
    tpu.vector_store %arg18[%c27, %c3_203], %256 {strides = array<i32>} : memref<44x37xf32, #tpu.memory_space<vmem>>, vector<1x31xf32>,
    %258 = vector.extract_strided_slice %241 {offsets = [0, 93], sizes = [1, 31], strides = [1, 1]} : vector<1x496xf32> to vector<1x31xf32>
    %c6 = arith.constant 6 : index
    %c3_204 = arith.constant 3 : index
    %259 = vector.load %arg18[%c6, %c3_204] : memref<44x37xf32, #tpu.memory_space<vmem>>, vector<1x31xf32>
    tpu.vector_store %arg18[%c6, %c3_204], %258 {strides = array<i32>} : memref<44x37xf32, #tpu.memory_space<vmem>>, vector<1x31xf32>,
    %260 = vector.extract_strided_slice %243 {offsets = [0, 93], sizes = [1, 31], strides = [1, 1]} : vector<1x496xf32> to vector<1x31xf32>
    %c28 = arith.constant 28 : index
    %c3_205 = arith.constant 3 : index
    %261 = vector.load %arg18[%c28, %c3_205] : memref<44x37xf32, #tpu.memory_space<vmem>>, vector<1x31xf32>
    tpu.vector_store %arg18[%c28, %c3_205], %260 {strides = array<i32>} : memref<44x37xf32, #tpu.memory_space<vmem>>, vector<1x31xf32>,
    %262 = vector.extract_strided_slice %241 {offsets = [0, 124], sizes = [1, 31], strides = [1, 1]} : vector<1x496xf32> to vector<1x31xf32>
    %c7_206 = arith.constant 7 : index
    %c3_207 = arith.constant 3 : index
    %263 = vector.load %arg18[%c7_206, %c3_207] : memref<44x37xf32, #tpu.memory_space<vmem>>, vector<1x31xf32>
    tpu.vector_store %arg18[%c7_206, %c3_207], %262 {strides = array<i32>} : memref<44x37xf32, #tpu.memory_space<vmem>>, vector<1x31xf32>,
    %264 = vector.extract_strided_slice %243 {offsets = [0, 124], sizes = [1, 31], strides = [1, 1]} : vector<1x496xf32> to vector<1x31xf32>
    %c29 = arith.constant 29 : index
    %c3_208 = arith.constant 3 : index
    %265 = vector.load %arg18[%c29, %c3_208] : memref<44x37xf32, #tpu.memory_space<vmem>>, vector<1x31xf32>
    tpu.vector_store %arg18[%c29, %c3_208], %264 {strides = array<i32>} : memref<44x37xf32, #tpu.memory_space<vmem>>, vector<1x31xf32>,
    %266 = vector.extract_strided_slice %241 {offsets = [0, 155], sizes = [1, 31], strides = [1, 1]} : vector<1x496xf32> to vector<1x31xf32>
    %c8 = arith.constant 8 : index
    %c3_209 = arith.constant 3 : index
    %267 = vector.load %arg18[%c8, %c3_209] : memref<44x37xf32, #tpu.memory_space<vmem>>, vector<1x31xf32>
    tpu.vector_store %arg18[%c8, %c3_209], %266 {strides = array<i32>} : memref<44x37xf32, #tpu.memory_space<vmem>>, vector<1x31xf32>,
    %268 = vector.extract_strided_slice %243 {offsets = [0, 155], sizes = [1, 31], strides = [1, 1]} : vector<1x496xf32> to vector<1x31xf32>
    %c30 = arith.constant 30 : index
    %c3_210 = arith.constant 3 : index
    %269 = vector.load %arg18[%c30, %c3_210] : memref<44x37xf32, #tpu.memory_space<vmem>>, vector<1x31xf32>
    tpu.vector_store %arg18[%c30, %c3_210], %268 {strides = array<i32>} : memref<44x37xf32, #tpu.memory_space<vmem>>, vector<1x31xf32>,
    %270 = vector.extract_strided_slice %241 {offsets = [0, 186], sizes = [1, 31], strides = [1, 1]} : vector<1x496xf32> to vector<1x31xf32>
    %c9 = arith.constant 9 : index
    %c3_211 = arith.constant 3 : index
    %271 = vector.load %arg18[%c9, %c3_211] : memref<44x37xf32, #tpu.memory_space<vmem>>, vector<1x31xf32>
    tpu.vector_store %arg18[%c9, %c3_211], %270 {strides = array<i32>} : memref<44x37xf32, #tpu.memory_space<vmem>>, vector<1x31xf32>,
    %272 = vector.extract_strided_slice %243 {offsets = [0, 186], sizes = [1, 31], strides = [1, 1]} : vector<1x496xf32> to vector<1x31xf32>
    %c31_212 = arith.constant 31 : index
    %c3_213 = arith.constant 3 : index
    %273 = vector.load %arg18[%c31_212, %c3_213] : memref<44x37xf32, #tpu.memory_space<vmem>>, vector<1x31xf32>
    tpu.vector_store %arg18[%c31_212, %c3_213], %272 {strides = array<i32>} : memref<44x37xf32, #tpu.memory_space<vmem>>, vector<1x31xf32>,
    %274 = vector.extract_strided_slice %241 {offsets = [0, 217], sizes = [1, 31], strides = [1, 1]} : vector<1x496xf32> to vector<1x31xf32>
    %c10 = arith.constant 10 : index
    %c3_214 = arith.constant 3 : index
    %275 = vector.load %arg18[%c10, %c3_214] : memref<44x37xf32, #tpu.memory_space<vmem>>, vector<1x31xf32>
    tpu.vector_store %arg18[%c10, %c3_214], %274 {strides = array<i32>} : memref<44x37xf32, #tpu.memory_space<vmem>>, vector<1x31xf32>,
    %276 = vector.extract_strided_slice %243 {offsets = [0, 217], sizes = [1, 31], strides = [1, 1]} : vector<1x496xf32> to vector<1x31xf32>
    %c32 = arith.constant 32 : index
    %c3_215 = arith.constant 3 : index
    %277 = vector.load %arg18[%c32, %c3_215] : memref<44x37xf32, #tpu.memory_space<vmem>>, vector<1x31xf32>
    tpu.vector_store %arg18[%c32, %c3_215], %276 {strides = array<i32>} : memref<44x37xf32, #tpu.memory_space<vmem>>, vector<1x31xf32>,
    %278 = vector.extract_strided_slice %241 {offsets = [0, 248], sizes = [1, 31], strides = [1, 1]} : vector<1x496xf32> to vector<1x31xf32>
    %c11 = arith.constant 11 : index
    %c3_216 = arith.constant 3 : index
    %279 = vector.load %arg18[%c11, %c3_216] : memref<44x37xf32, #tpu.memory_space<vmem>>, vector<1x31xf32>
    tpu.vector_store %arg18[%c11, %c3_216], %278 {strides = array<i32>} : memref<44x37xf32, #tpu.memory_space<vmem>>, vector<1x31xf32>,
    %280 = vector.extract_strided_slice %243 {offsets = [0, 248], sizes = [1, 31], strides = [1, 1]} : vector<1x496xf32> to vector<1x31xf32>
    %c33_217 = arith.constant 33 : index
    %c3_218 = arith.constant 3 : index
    %281 = vector.load %arg18[%c33_217, %c3_218] : memref<44x37xf32, #tpu.memory_space<vmem>>, vector<1x31xf32>
    tpu.vector_store %arg18[%c33_217, %c3_218], %280 {strides = array<i32>} : memref<44x37xf32, #tpu.memory_space<vmem>>, vector<1x31xf32>,
    %282 = vector.extract_strided_slice %241 {offsets = [0, 279], sizes = [1, 31], strides = [1, 1]} : vector<1x496xf32> to vector<1x31xf32>
    %c12 = arith.constant 12 : index
    %c3_219 = arith.constant 3 : index
    %283 = vector.load %arg18[%c12, %c3_219] : memref<44x37xf32, #tpu.memory_space<vmem>>, vector<1x31xf32>
    tpu.vector_store %arg18[%c12, %c3_219], %282 {strides = array<i32>} : memref<44x37xf32, #tpu.memory_space<vmem>>, vector<1x31xf32>,
    %284 = vector.extract_strided_slice %243 {offsets = [0, 279], sizes = [1, 31], strides = [1, 1]} : vector<1x496xf32> to vector<1x31xf32>
    %c34 = arith.constant 34 : index
    %c3_220 = arith.constant 3 : index
    %285 = vector.load %arg18[%c34, %c3_220] : memref<44x37xf32, #tpu.memory_space<vmem>>, vector<1x31xf32>
    tpu.vector_store %arg18[%c34, %c3_220], %284 {strides = array<i32>} : memref<44x37xf32, #tpu.memory_space<vmem>>, vector<1x31xf32>,
    %286 = vector.extract_strided_slice %241 {offsets = [0, 310], sizes = [1, 31], strides = [1, 1]} : vector<1x496xf32> to vector<1x31xf32>
    %c13 = arith.constant 13 : index
    %c3_221 = arith.constant 3 : index
    %287 = vector.load %arg18[%c13, %c3_221] : memref<44x37xf32, #tpu.memory_space<vmem>>, vector<1x31xf32>
    tpu.vector_store %arg18[%c13, %c3_221], %286 {strides = array<i32>} : memref<44x37xf32, #tpu.memory_space<vmem>>, vector<1x31xf32>,
    %288 = vector.extract_strided_slice %243 {offsets = [0, 310], sizes = [1, 31], strides = [1, 1]} : vector<1x496xf32> to vector<1x31xf32>
    %c35 = arith.constant 35 : index
    %c3_222 = arith.constant 3 : index
    %289 = vector.load %arg18[%c35, %c3_222] : memref<44x37xf32, #tpu.memory_space<vmem>>, vector<1x31xf32>
    tpu.vector_store %arg18[%c35, %c3_222], %288 {strides = array<i32>} : memref<44x37xf32, #tpu.memory_space<vmem>>, vector<1x31xf32>,
    %290 = vector.extract_strided_slice %241 {offsets = [0, 341], sizes = [1, 31], strides = [1, 1]} : vector<1x496xf32> to vector<1x31xf32>
    %c14 = arith.constant 14 : index
    %c3_223 = arith.constant 3 : index
    %291 = vector.load %arg18[%c14, %c3_223] : memref<44x37xf32, #tpu.memory_space<vmem>>, vector<1x31xf32>
    tpu.vector_store %arg18[%c14, %c3_223], %290 {strides = array<i32>} : memref<44x37xf32, #tpu.memory_space<vmem>>, vector<1x31xf32>,
    %292 = vector.extract_strided_slice %243 {offsets = [0, 341], sizes = [1, 31], strides = [1, 1]} : vector<1x496xf32> to vector<1x31xf32>
    %c36 = arith.constant 36 : index
    %c3_224 = arith.constant 3 : index
    %293 = vector.load %arg18[%c36, %c3_224] : memref<44x37xf32, #tpu.memory_space<vmem>>, vector<1x31xf32>
    tpu.vector_store %arg18[%c36, %c3_224], %292 {strides = array<i32>} : memref<44x37xf32, #tpu.memory_space<vmem>>, vector<1x31xf32>,
    %294 = vector.extract_strided_slice %241 {offsets = [0, 372], sizes = [1, 31], strides = [1, 1]} : vector<1x496xf32> to vector<1x31xf32>
    %c15 = arith.constant 15 : index
    %c3_225 = arith.constant 3 : index
    %295 = vector.load %arg18[%c15, %c3_225] : memref<44x37xf32, #tpu.memory_space<vmem>>, vector<1x31xf32>
    tpu.vector_store %arg18[%c15, %c3_225], %294 {strides = array<i32>} : memref<44x37xf32, #tpu.memory_space<vmem>>, vector<1x31xf32>,
    %296 = vector.extract_strided_slice %243 {offsets = [0, 372], sizes = [1, 31], strides = [1, 1]} : vector<1x496xf32> to vector<1x31xf32>
    %c37 = arith.constant 37 : index
    %c3_226 = arith.constant 3 : index
    %297 = vector.load %arg18[%c37, %c3_226] : memref<44x37xf32, #tpu.memory_space<vmem>>, vector<1x31xf32>
    tpu.vector_store %arg18[%c37, %c3_226], %296 {strides = array<i32>} : memref<44x37xf32, #tpu.memory_space<vmem>>, vector<1x31xf32>,
    %298 = vector.extract_strided_slice %241 {offsets = [0, 403], sizes = [1, 31], strides = [1, 1]} : vector<1x496xf32> to vector<1x31xf32>
    %c16 = arith.constant 16 : index
    %c3_227 = arith.constant 3 : index
    %299 = vector.load %arg18[%c16, %c3_227] : memref<44x37xf32, #tpu.memory_space<vmem>>, vector<1x31xf32>
    tpu.vector_store %arg18[%c16, %c3_227], %298 {strides = array<i32>} : memref<44x37xf32, #tpu.memory_space<vmem>>, vector<1x31xf32>,
    %300 = vector.extract_strided_slice %243 {offsets = [0, 403], sizes = [1, 31], strides = [1, 1]} : vector<1x496xf32> to vector<1x31xf32>
    %c38_228 = arith.constant 38 : index
    %c3_229 = arith.constant 3 : index
    %301 = vector.load %arg18[%c38_228, %c3_229] : memref<44x37xf32, #tpu.memory_space<vmem>>, vector<1x31xf32>
    tpu.vector_store %arg18[%c38_228, %c3_229], %300 {strides = array<i32>} : memref<44x37xf32, #tpu.memory_space<vmem>>, vector<1x31xf32>,
    %302 = vector.extract_strided_slice %241 {offsets = [0, 434], sizes = [1, 31], strides = [1, 1]} : vector<1x496xf32> to vector<1x31xf32>
    %c17 = arith.constant 17 : index
    %c3_230 = arith.constant 3 : index
    %303 = vector.load %arg18[%c17, %c3_230] : memref<44x37xf32, #tpu.memory_space<vmem>>, vector<1x31xf32>
    tpu.vector_store %arg18[%c17, %c3_230], %302 {strides = array<i32>} : memref<44x37xf32, #tpu.memory_space<vmem>>, vector<1x31xf32>,
    %304 = vector.extract_strided_slice %243 {offsets = [0, 434], sizes = [1, 31], strides = [1, 1]} : vector<1x496xf32> to vector<1x31xf32>
    %c39 = arith.constant 39 : index
    %c3_231 = arith.constant 3 : index
    %305 = vector.load %arg18[%c39, %c3_231] : memref<44x37xf32, #tpu.memory_space<vmem>>, vector<1x31xf32>
    tpu.vector_store %arg18[%c39, %c3_231], %304 {strides = array<i32>} : memref<44x37xf32, #tpu.memory_space<vmem>>, vector<1x31xf32>,
    %306 = vector.extract_strided_slice %241 {offsets = [0, 465], sizes = [1, 31], strides = [1, 1]} : vector<1x496xf32> to vector<1x31xf32>
    %c18_232 = arith.constant 18 : index
    %c3_233 = arith.constant 3 : index
    %307 = vector.load %arg18[%c18_232, %c3_233] : memref<44x37xf32, #tpu.memory_space<vmem>>, vector<1x31xf32>
    tpu.vector_store %arg18[%c18_232, %c3_233], %306 {strides = array<i32>} : memref<44x37xf32, #tpu.memory_space<vmem>>, vector<1x31xf32>,
    %308 = vector.extract_strided_slice %243 {offsets = [0, 465], sizes = [1, 31], strides = [1, 1]} : vector<1x496xf32> to vector<1x31xf32>
    %c40 = arith.constant 40 : index
    %c3_234 = arith.constant 3 : index
    %309 = vector.load %arg18[%c40, %c3_234] : memref<44x37xf32, #tpu.memory_space<vmem>>, vector<1x31xf32>
    tpu.vector_store %arg18[%c40, %c3_234], %308 {strides = array<i32>} : memref<44x37xf32, #tpu.memory_space<vmem>>, vector<1x31xf32>,
    %cst_235 = arith.constant 0.000000e+00 : f32
    %310 = vector.broadcast %cst_235 : f32 to vector<16x31xf32>
    %c0_236 = arith.constant 0 : index
    %c0_237 = arith.constant 0 : index
    %c0_238 = arith.constant 0 : index
    %311 = vector.load %arg6[%c0_236, %c0_237, %c0_238] : memref<7x16x44xf32, #tpu.memory_space<vmem>>, vector<1x16x44xf32>
    %312 = vector.shape_cast %311 : vector<1x16x44xf32> to vector<16x44xf32>
    %c0_239 = arith.constant 0 : index
    %c0_240 = arith.constant 0 : index
    %313 = vector.load %arg18[%c0_239, %c0_240] : memref<44x37xf32, #tpu.memory_space<vmem>>, vector<44x31xf32>
    %cst_241 = arith.constant dense<0.000000e+00> : vector<16x31xf32>
    %314 = tpu.matmul %312, %313, %cst_241 {dimension_numbers = #tpu.dot_dimension_numbers<[1], [0], [0], [1], [0, 0, 1, 1], [], []>} : vector<16x44xf32>, vector<44x31xf32>, vector<16x31xf32> -> vector<16x31xf32>
    %315 = arith.addf %310, %314 : vector<16x31xf32>
    %c1 = arith.constant 1 : index
    %c0_242 = arith.constant 0 : index
    %c0_243 = arith.constant 0 : index
    %316 = vector.load %arg6[%c1, %c0_242, %c0_243] : memref<7x16x44xf32, #tpu.memory_space<vmem>>, vector<1x16x44xf32>
    %317 = vector.shape_cast %316 : vector<1x16x44xf32> to vector<16x44xf32>
    %c0_244 = arith.constant 0 : index
    %c1_245 = arith.constant 1 : index
    %318 = vector.load %arg18[%c0_244, %c1_245] : memref<44x37xf32, #tpu.memory_space<vmem>>, vector<44x31xf32>
    %cst_246 = arith.constant dense<0.000000e+00> : vector<16x31xf32>
    %319 = tpu.matmul %317, %318, %cst_246 {dimension_numbers = #tpu.dot_dimension_numbers<[1], [0], [0], [1], [0, 0, 1, 1], [], []>} : vector<16x44xf32>, vector<44x31xf32>, vector<16x31xf32> -> vector<16x31xf32>
    %320 = arith.addf %315, %319 : vector<16x31xf32>
    %c2 = arith.constant 2 : index
    %c0_247 = arith.constant 0 : index
    %c0_248 = arith.constant 0 : index
    %321 = vector.load %arg6[%c2, %c0_247, %c0_248] : memref<7x16x44xf32, #tpu.memory_space<vmem>>, vector<1x16x44xf32>
    %322 = vector.shape_cast %321 : vector<1x16x44xf32> to vector<16x44xf32>
    %c0_249 = arith.constant 0 : index
    %c2_250 = arith.constant 2 : index
    %323 = vector.load %arg18[%c0_249, %c2_250] : memref<44x37xf32, #tpu.memory_space<vmem>>, vector<44x31xf32>
    %cst_251 = arith.constant dense<0.000000e+00> : vector<16x31xf32>
    %324 = tpu.matmul %322, %323, %cst_251 {dimension_numbers = #tpu.dot_dimension_numbers<[1], [0], [0], [1], [0, 0, 1, 1], [], []>} : vector<16x44xf32>, vector<44x31xf32>, vector<16x31xf32> -> vector<16x31xf32>
    %325 = arith.addf %320, %324 : vector<16x31xf32>
    %c3_252 = arith.constant 3 : index
    %c0_253 = arith.constant 0 : index
    %c0_254 = arith.constant 0 : index
    %326 = vector.load %arg6[%c3_252, %c0_253, %c0_254] : memref<7x16x44xf32, #tpu.memory_space<vmem>>, vector<1x16x44xf32>
    %327 = vector.shape_cast %326 : vector<1x16x44xf32> to vector<16x44xf32>
    %c0_255 = arith.constant 0 : index
    %c3_256 = arith.constant 3 : index
    %328 = vector.load %arg18[%c0_255, %c3_256] : memref<44x37xf32, #tpu.memory_space<vmem>>, vector<44x31xf32>
    %cst_257 = arith.constant dense<0.000000e+00> : vector<16x31xf32>
    %329 = tpu.matmul %327, %328, %cst_257 {dimension_numbers = #tpu.dot_dimension_numbers<[1], [0], [0], [1], [0, 0, 1, 1], [], []>} : vector<16x44xf32>, vector<44x31xf32>, vector<16x31xf32> -> vector<16x31xf32>
    %330 = arith.addf %325, %329 : vector<16x31xf32>
    %c4_258 = arith.constant 4 : index
    %c0_259 = arith.constant 0 : index
    %c0_260 = arith.constant 0 : index
    %331 = vector.load %arg6[%c4_258, %c0_259, %c0_260] : memref<7x16x44xf32, #tpu.memory_space<vmem>>, vector<1x16x44xf32>
    %332 = vector.shape_cast %331 : vector<1x16x44xf32> to vector<16x44xf32>
    %c0_261 = arith.constant 0 : index
    %c4_262 = arith.constant 4 : index
    %333 = vector.load %arg18[%c0_261, %c4_262] : memref<44x37xf32, #tpu.memory_space<vmem>>, vector<44x31xf32>
    %cst_263 = arith.constant dense<0.000000e+00> : vector<16x31xf32>
    %334 = tpu.matmul %332, %333, %cst_263 {dimension_numbers = #tpu.dot_dimension_numbers<[1], [0], [0], [1], [0, 0, 1, 1], [], []>} : vector<16x44xf32>, vector<44x31xf32>, vector<16x31xf32> -> vector<16x31xf32>
    %335 = arith.addf %330, %334 : vector<16x31xf32>
    %c5_264 = arith.constant 5 : index
    %c0_265 = arith.constant 0 : index
    %c0_266 = arith.constant 0 : index
    %336 = vector.load %arg6[%c5_264, %c0_265, %c0_266] : memref<7x16x44xf32, #tpu.memory_space<vmem>>, vector<1x16x44xf32>
    %337 = vector.shape_cast %336 : vector<1x16x44xf32> to vector<16x44xf32>
    %c0_267 = arith.constant 0 : index
    %c5_268 = arith.constant 5 : index
    %338 = vector.load %arg18[%c0_267, %c5_268] : memref<44x37xf32, #tpu.memory_space<vmem>>, vector<44x31xf32>
    %cst_269 = arith.constant dense<0.000000e+00> : vector<16x31xf32>
    %339 = tpu.matmul %337, %338, %cst_269 {dimension_numbers = #tpu.dot_dimension_numbers<[1], [0], [0], [1], [0, 0, 1, 1], [], []>} : vector<16x44xf32>, vector<44x31xf32>, vector<16x31xf32> -> vector<16x31xf32>
    %340 = arith.addf %335, %339 : vector<16x31xf32>
    %c6_270 = arith.constant 6 : index
    %c0_271 = arith.constant 0 : index
    %c0_272 = arith.constant 0 : index
    %341 = vector.load %arg6[%c6_270, %c0_271, %c0_272] : memref<7x16x44xf32, #tpu.memory_space<vmem>>, vector<1x16x44xf32>
    %342 = vector.shape_cast %341 : vector<1x16x44xf32> to vector<16x44xf32>
    %c0_273 = arith.constant 0 : index
    %c6_274 = arith.constant 6 : index
    %343 = vector.load %arg18[%c0_273, %c6_274] : memref<44x37xf32, #tpu.memory_space<vmem>>, vector<44x31xf32>
    %cst_275 = arith.constant dense<0.000000e+00> : vector<16x31xf32>
    %344 = tpu.matmul %342, %343, %cst_275 {dimension_numbers = #tpu.dot_dimension_numbers<[1], [0], [0], [1], [0, 0, 1, 1], [], []>} : vector<16x44xf32>, vector<44x31xf32>, vector<16x31xf32> -> vector<16x31xf32>
    %345 = arith.addf %340, %344 : vector<16x31xf32>
    %cst_276 = arith.constant 0.000000e+00 : f32
    %346 = vector.broadcast %cst_276 : f32 to vector<16x31xf32>
    %347 = arith.subf %346, %345 : vector<16x31xf32>
    %348 = math.exp %347 : vector<16x31xf32>
    %cst_277 = arith.constant 1.000000e+00 : f32
    %349 = vector.broadcast %cst_277 : f32 to vector<16x31xf32>
    %350 = arith.addf %349, %348 : vector<16x31xf32>
    %cst_278 = arith.constant 1.000000e+00 : f32
    %351 = vector.broadcast %cst_278 : f32 to vector<16x31xf32>
    %352 = arith.divf %351, %350 : vector<16x31xf32>
    %353 = math.exp %345 : vector<16x31xf32>
    %cst_279 = arith.constant 1.000000e+00 : f32
    %354 = vector.broadcast %cst_279 : f32 to vector<16x31xf32>
    %355 = arith.addf %354, %353 : vector<16x31xf32>
    %356 = arith.divf %353, %355 : vector<16x31xf32>
    %cst_280 = arith.constant 0.000000e+00 : f32
    %357 = vector.broadcast %cst_280 : f32 to vector<16x31xf32>
    %358 = arith.cmpf oge, %345, %357 : vector<16x31xf32>
    %359 = arith.select %358, %352, %356 : vector<16x31xi1>, vector<16x31xf32>
    %360 = tpu.iota {dimensions = array<i32: 0>} : vector<31x15xi32>
    %361 = tpu.iota {dimensions = array<i32: 1>} : vector<31x15xi32>
    %c2_i32 = arith.constant 2 : i32
    %362 = vector.broadcast %c2_i32 : i32 to vector<31x15xi32>
    %363 = arith.muli %362, %361 : vector<31x15xi32>
    %364 = arith.cmpi eq, %360, %363 : vector<31x15xi32>
    %c2_i32_281 = arith.constant 2 : i32
    %365 = vector.broadcast %c2_i32_281 : i32 to vector<31x15xi32>
    %366 = arith.muli %365, %361 : vector<31x15xi32>
    %c1_i32 = arith.constant 1 : i32
    %367 = vector.broadcast %c1_i32 : i32 to vector<31x15xi32>
    %368 = arith.addi %366, %367 : vector<31x15xi32>
    %369 = arith.cmpi eq, %360, %368 : vector<31x15xi32>
    %370 = arith.ori %364, %369 : vector<31x15xi1>
    %371 = arith.extui %370 : vector<31x15xi1> to vector<31x15xi32>
    %372 = arith.sitofp %371 : vector<31x15xi32> to vector<31x15xf32>
    %cst_282 = arith.constant 5.000000e-01 : f32
    %373 = vector.broadcast %cst_282 : f32 to vector<31x15xf32>
    %374 = arith.mulf %372, %373 : vector<31x15xf32>
    %c0_283 = arith.constant 0 : index
    %c0_284 = arith.constant 0 : index
    %375 = vector.load %arg17[%c0_283, %c0_284] : memref<8x496xf32, #tpu.memory_space<vmem>>, vector<8x31xf32>
    %376 = vector.extract_strided_slice %359 {offsets = [0, 0], sizes = [1, 31], strides = [1, 1]} : vector<16x31xf32> to vector<1x31xf32>
    %377 = vector.broadcast %376 : vector<1x31xf32> to vector<8x31xf32>
    %378 = arith.mulf %375, %377 : vector<8x31xf32>
    %cst_285 = arith.constant dense<0.000000e+00> : vector<8x15xf32>
    %379 = tpu.matmul %378, %374, %cst_285 {dimension_numbers = #tpu.dot_dimension_numbers<[1], [0], [0], [1], [0, 0, 1, 1], [], []>} : vector<8x31xf32>, vector<31x15xf32>, vector<8x15xf32> -> vector<8x15xf32>
    %c0_286 = arith.constant 0 : index
    %c0_287 = arith.constant 0 : index
    %380 = vector.load %arg19[%c0_286, %c0_287] : memref<8x240xf32, #tpu.memory_space<vmem>>, vector<8x15xf32>
    tpu.vector_store %arg19[%c0_286, %c0_287], %379 {strides = array<i32>} : memref<8x240xf32, #tpu.memory_space<vmem>>, vector<8x15xf32>,
    %c0_288 = arith.constant 0 : index
    %c31_289 = arith.constant 31 : index
    %381 = vector.load %arg17[%c0_288, %c31_289] : memref<8x496xf32, #tpu.memory_space<vmem>>, vector<8x31xf32>
    %382 = vector.extract_strided_slice %359 {offsets = [1, 0], sizes = [1, 31], strides = [1, 1]} : vector<16x31xf32> to vector<1x31xf32>
    %383 = vector.broadcast %382 : vector<1x31xf32> to vector<8x31xf32>
    %384 = arith.mulf %381, %383 : vector<8x31xf32>
    %cst_290 = arith.constant dense<0.000000e+00> : vector<8x15xf32>
    %385 = tpu.matmul %384, %374, %cst_290 {dimension_numbers = #tpu.dot_dimension_numbers<[1], [0], [0], [1], [0, 0, 1, 1], [], []>} : vector<8x31xf32>, vector<31x15xf32>, vector<8x15xf32> -> vector<8x15xf32>
    %c0_291 = arith.constant 0 : index
    %c15_292 = arith.constant 15 : index
    %386 = vector.load %arg19[%c0_291, %c15_292] : memref<8x240xf32, #tpu.memory_space<vmem>>, vector<8x15xf32>
    tpu.vector_store %arg19[%c0_291, %c15_292], %385 {strides = array<i32>} : memref<8x240xf32, #tpu.memory_space<vmem>>, vector<8x15xf32>,
    %c0_293 = arith.constant 0 : index
    %c62_294 = arith.constant 62 : index
    %387 = vector.load %arg17[%c0_293, %c62_294] : memref<8x496xf32, #tpu.memory_space<vmem>>, vector<8x31xf32>
    %388 = vector.extract_strided_slice %359 {offsets = [2, 0], sizes = [1, 31], strides = [1, 1]} : vector<16x31xf32> to vector<1x31xf32>
    %389 = vector.broadcast %388 : vector<1x31xf32> to vector<8x31xf32>
    %390 = arith.mulf %387, %389 : vector<8x31xf32>
    %cst_295 = arith.constant dense<0.000000e+00> : vector<8x15xf32>
    %391 = tpu.matmul %390, %374, %cst_295 {dimension_numbers = #tpu.dot_dimension_numbers<[1], [0], [0], [1], [0, 0, 1, 1], [], []>} : vector<8x31xf32>, vector<31x15xf32>, vector<8x15xf32> -> vector<8x15xf32>
    %c0_296 = arith.constant 0 : index
    %c30_297 = arith.constant 30 : index
    %392 = vector.load %arg19[%c0_296, %c30_297] : memref<8x240xf32, #tpu.memory_space<vmem>>, vector<8x15xf32>
    tpu.vector_store %arg19[%c0_296, %c30_297], %391 {strides = array<i32>} : memref<8x240xf32, #tpu.memory_space<vmem>>, vector<8x15xf32>,
    %c0_298 = arith.constant 0 : index
    %c93_299 = arith.constant 93 : index
    %393 = vector.load %arg17[%c0_298, %c93_299] : memref<8x496xf32, #tpu.memory_space<vmem>>, vector<8x31xf32>
    %394 = vector.extract_strided_slice %359 {offsets = [3, 0], sizes = [1, 31], strides = [1, 1]} : vector<16x31xf32> to vector<1x31xf32>
    %395 = vector.broadcast %394 : vector<1x31xf32> to vector<8x31xf32>
    %396 = arith.mulf %393, %395 : vector<8x31xf32>
    %cst_300 = arith.constant dense<0.000000e+00> : vector<8x15xf32>
    %397 = tpu.matmul %396, %374, %cst_300 {dimension_numbers = #tpu.dot_dimension_numbers<[1], [0], [0], [1], [0, 0, 1, 1], [], []>} : vector<8x31xf32>, vector<31x15xf32>, vector<8x15xf32> -> vector<8x15xf32>
    %c0_301 = arith.constant 0 : index
    %c45 = arith.constant 45 : index
    %398 = vector.load %arg19[%c0_301, %c45] : memref<8x240xf32, #tpu.memory_space<vmem>>, vector<8x15xf32>
    tpu.vector_store %arg19[%c0_301, %c45], %397 {strides = array<i32>} : memref<8x240xf32, #tpu.memory_space<vmem>>, vector<8x15xf32>,
    %c0_302 = arith.constant 0 : index
    %c124_303 = arith.constant 124 : index
    %399 = vector.load %arg17[%c0_302, %c124_303] : memref<8x496xf32, #tpu.memory_space<vmem>>, vector<8x31xf32>
    %400 = vector.extract_strided_slice %359 {offsets = [4, 0], sizes = [1, 31], strides = [1, 1]} : vector<16x31xf32> to vector<1x31xf32>
    %401 = vector.broadcast %400 : vector<1x31xf32> to vector<8x31xf32>
    %402 = arith.mulf %399, %401 : vector<8x31xf32>
    %cst_304 = arith.constant dense<0.000000e+00> : vector<8x15xf32>
    %403 = tpu.matmul %402, %374, %cst_304 {dimension_numbers = #tpu.dot_dimension_numbers<[1], [0], [0], [1], [0, 0, 1, 1], [], []>} : vector<8x31xf32>, vector<31x15xf32>, vector<8x15xf32> -> vector<8x15xf32>
    %c0_305 = arith.constant 0 : index
    %c60 = arith.constant 60 : index
    %404 = vector.load %arg19[%c0_305, %c60] : memref<8x240xf32, #tpu.memory_space<vmem>>, vector<8x15xf32>
    tpu.vector_store %arg19[%c0_305, %c60], %403 {strides = array<i32>} : memref<8x240xf32, #tpu.memory_space<vmem>>, vector<8x15xf32>,
    %c0_306 = arith.constant 0 : index
    %c155_307 = arith.constant 155 : index
    %405 = vector.load %arg17[%c0_306, %c155_307] : memref<8x496xf32, #tpu.memory_space<vmem>>, vector<8x31xf32>
    %406 = vector.extract_strided_slice %359 {offsets = [5, 0], sizes = [1, 31], strides = [1, 1]} : vector<16x31xf32> to vector<1x31xf32>
    %407 = vector.broadcast %406 : vector<1x31xf32> to vector<8x31xf32>
    %408 = arith.mulf %405, %407 : vector<8x31xf32>
    %cst_308 = arith.constant dense<0.000000e+00> : vector<8x15xf32>
    %409 = tpu.matmul %408, %374, %cst_308 {dimension_numbers = #tpu.dot_dimension_numbers<[1], [0], [0], [1], [0, 0, 1, 1], [], []>} : vector<8x31xf32>, vector<31x15xf32>, vector<8x15xf32> -> vector<8x15xf32>
    %c0_309 = arith.constant 0 : index
    %c75 = arith.constant 75 : index
    %410 = vector.load %arg19[%c0_309, %c75] : memref<8x240xf32, #tpu.memory_space<vmem>>, vector<8x15xf32>
    tpu.vector_store %arg19[%c0_309, %c75], %409 {strides = array<i32>} : memref<8x240xf32, #tpu.memory_space<vmem>>, vector<8x15xf32>,
    %c0_310 = arith.constant 0 : index
    %c186_311 = arith.constant 186 : index
    %411 = vector.load %arg17[%c0_310, %c186_311] : memref<8x496xf32, #tpu.memory_space<vmem>>, vector<8x31xf32>
    %412 = vector.extract_strided_slice %359 {offsets = [6, 0], sizes = [1, 31], strides = [1, 1]} : vector<16x31xf32> to vector<1x31xf32>
    %413 = vector.broadcast %412 : vector<1x31xf32> to vector<8x31xf32>
    %414 = arith.mulf %411, %413 : vector<8x31xf32>
    %cst_312 = arith.constant dense<0.000000e+00> : vector<8x15xf32>
    %415 = tpu.matmul %414, %374, %cst_312 {dimension_numbers = #tpu.dot_dimension_numbers<[1], [0], [0], [1], [0, 0, 1, 1], [], []>} : vector<8x31xf32>, vector<31x15xf32>, vector<8x15xf32> -> vector<8x15xf32>
    %c0_313 = arith.constant 0 : index
    %c90 = arith.constant 90 : index
    %416 = vector.load %arg19[%c0_313, %c90] : memref<8x240xf32, #tpu.memory_space<vmem>>, vector<8x15xf32>
    tpu.vector_store %arg19[%c0_313, %c90], %415 {strides = array<i32>} : memref<8x240xf32, #tpu.memory_space<vmem>>, vector<8x15xf32>,
    %c0_314 = arith.constant 0 : index
    %c217_315 = arith.constant 217 : index
    %417 = vector.load %arg17[%c0_314, %c217_315] : memref<8x496xf32, #tpu.memory_space<vmem>>, vector<8x31xf32>
    %418 = vector.extract_strided_slice %359 {offsets = [7, 0], sizes = [1, 31], strides = [1, 1]} : vector<16x31xf32> to vector<1x31xf32>
    %419 = vector.broadcast %418 : vector<1x31xf32> to vector<8x31xf32>
    %420 = arith.mulf %417, %419 : vector<8x31xf32>
    %cst_316 = arith.constant dense<0.000000e+00> : vector<8x15xf32>
    %421 = tpu.matmul %420, %374, %cst_316 {dimension_numbers = #tpu.dot_dimension_numbers<[1], [0], [0], [1], [0, 0, 1, 1], [], []>} : vector<8x31xf32>, vector<31x15xf32>, vector<8x15xf32> -> vector<8x15xf32>
    %c0_317 = arith.constant 0 : index
    %c105 = arith.constant 105 : index
    %422 = vector.load %arg19[%c0_317, %c105] : memref<8x240xf32, #tpu.memory_space<vmem>>, vector<8x15xf32>
    tpu.vector_store %arg19[%c0_317, %c105], %421 {strides = array<i32>} : memref<8x240xf32, #tpu.memory_space<vmem>>, vector<8x15xf32>,
    %c0_318 = arith.constant 0 : index
    %c248_319 = arith.constant 248 : index
    %423 = vector.load %arg17[%c0_318, %c248_319] : memref<8x496xf32, #tpu.memory_space<vmem>>, vector<8x31xf32>
    %424 = vector.extract_strided_slice %359 {offsets = [8, 0], sizes = [1, 31], strides = [1, 1]} : vector<16x31xf32> to vector<1x31xf32>
    %425 = vector.broadcast %424 : vector<1x31xf32> to vector<8x31xf32>
    %426 = arith.mulf %423, %425 : vector<8x31xf32>
    %cst_320 = arith.constant dense<0.000000e+00> : vector<8x15xf32>
    %427 = tpu.matmul %426, %374, %cst_320 {dimension_numbers = #tpu.dot_dimension_numbers<[1], [0], [0], [1], [0, 0, 1, 1], [], []>} : vector<8x31xf32>, vector<31x15xf32>, vector<8x15xf32> -> vector<8x15xf32>
    %c0_321 = arith.constant 0 : index
    %c120 = arith.constant 120 : index
    %428 = vector.load %arg19[%c0_321, %c120] : memref<8x240xf32, #tpu.memory_space<vmem>>, vector<8x15xf32>
    tpu.vector_store %arg19[%c0_321, %c120], %427 {strides = array<i32>} : memref<8x240xf32, #tpu.memory_space<vmem>>, vector<8x15xf32>,
    %c0_322 = arith.constant 0 : index
    %c279_323 = arith.constant 279 : index
    %429 = vector.load %arg17[%c0_322, %c279_323] : memref<8x496xf32, #tpu.memory_space<vmem>>, vector<8x31xf32>
    %430 = vector.extract_strided_slice %359 {offsets = [9, 0], sizes = [1, 31], strides = [1, 1]} : vector<16x31xf32> to vector<1x31xf32>
    %431 = vector.broadcast %430 : vector<1x31xf32> to vector<8x31xf32>
    %432 = arith.mulf %429, %431 : vector<8x31xf32>
    %cst_324 = arith.constant dense<0.000000e+00> : vector<8x15xf32>
    %433 = tpu.matmul %432, %374, %cst_324 {dimension_numbers = #tpu.dot_dimension_numbers<[1], [0], [0], [1], [0, 0, 1, 1], [], []>} : vector<8x31xf32>, vector<31x15xf32>, vector<8x15xf32> -> vector<8x15xf32>
    %c0_325 = arith.constant 0 : index
    %c135 = arith.constant 135 : index
    %434 = vector.load %arg19[%c0_325, %c135] : memref<8x240xf32, #tpu.memory_space<vmem>>, vector<8x15xf32>
    tpu.vector_store %arg19[%c0_325, %c135], %433 {strides = array<i32>} : memref<8x240xf32, #tpu.memory_space<vmem>>, vector<8x15xf32>,
    %c0_326 = arith.constant 0 : index
    %c310_327 = arith.constant 310 : index
    %435 = vector.load %arg17[%c0_326, %c310_327] : memref<8x496xf32, #tpu.memory_space<vmem>>, vector<8x31xf32>
    %436 = vector.extract_strided_slice %359 {offsets = [10, 0], sizes = [1, 31], strides = [1, 1]} : vector<16x31xf32> to vector<1x31xf32>
    %437 = vector.broadcast %436 : vector<1x31xf32> to vector<8x31xf32>
    %438 = arith.mulf %435, %437 : vector<8x31xf32>
    %cst_328 = arith.constant dense<0.000000e+00> : vector<8x15xf32>
    %439 = tpu.matmul %438, %374, %cst_328 {dimension_numbers = #tpu.dot_dimension_numbers<[1], [0], [0], [1], [0, 0, 1, 1], [], []>} : vector<8x31xf32>, vector<31x15xf32>, vector<8x15xf32> -> vector<8x15xf32>
    %c0_329 = arith.constant 0 : index
    %c150 = arith.constant 150 : index
    %440 = vector.load %arg19[%c0_329, %c150] : memref<8x240xf32, #tpu.memory_space<vmem>>, vector<8x15xf32>
    tpu.vector_store %arg19[%c0_329, %c150], %439 {strides = array<i32>} : memref<8x240xf32, #tpu.memory_space<vmem>>, vector<8x15xf32>,
    %c0_330 = arith.constant 0 : index
    %c341_331 = arith.constant 341 : index
    %441 = vector.load %arg17[%c0_330, %c341_331] : memref<8x496xf32, #tpu.memory_space<vmem>>, vector<8x31xf32>
    %442 = vector.extract_strided_slice %359 {offsets = [11, 0], sizes = [1, 31], strides = [1, 1]} : vector<16x31xf32> to vector<1x31xf32>
    %443 = vector.broadcast %442 : vector<1x31xf32> to vector<8x31xf32>
    %444 = arith.mulf %441, %443 : vector<8x31xf32>
    %cst_332 = arith.constant dense<0.000000e+00> : vector<8x15xf32>
    %445 = tpu.matmul %444, %374, %cst_332 {dimension_numbers = #tpu.dot_dimension_numbers<[1], [0], [0], [1], [0, 0, 1, 1], [], []>} : vector<8x31xf32>, vector<31x15xf32>, vector<8x15xf32> -> vector<8x15xf32>
    %c0_333 = arith.constant 0 : index
    %c165_334 = arith.constant 165 : index
    %446 = vector.load %arg19[%c0_333, %c165_334] : memref<8x240xf32, #tpu.memory_space<vmem>>, vector<8x15xf32>
    tpu.vector_store %arg19[%c0_333, %c165_334], %445 {strides = array<i32>} : memref<8x240xf32, #tpu.memory_space<vmem>>, vector<8x15xf32>,
    %c0_335 = arith.constant 0 : index
    %c372_336 = arith.constant 372 : index
    %447 = vector.load %arg17[%c0_335, %c372_336] : memref<8x496xf32, #tpu.memory_space<vmem>>, vector<8x31xf32>
    %448 = vector.extract_strided_slice %359 {offsets = [12, 0], sizes = [1, 31], strides = [1, 1]} : vector<16x31xf32> to vector<1x31xf32>
    %449 = vector.broadcast %448 : vector<1x31xf32> to vector<8x31xf32>
    %450 = arith.mulf %447, %449 : vector<8x31xf32>
    %cst_337 = arith.constant dense<0.000000e+00> : vector<8x15xf32>
    %451 = tpu.matmul %450, %374, %cst_337 {dimension_numbers = #tpu.dot_dimension_numbers<[1], [0], [0], [1], [0, 0, 1, 1], [], []>} : vector<8x31xf32>, vector<31x15xf32>, vector<8x15xf32> -> vector<8x15xf32>
    %c0_338 = arith.constant 0 : index
    %c180 = arith.constant 180 : index
    %452 = vector.load %arg19[%c0_338, %c180] : memref<8x240xf32, #tpu.memory_space<vmem>>, vector<8x15xf32>
    tpu.vector_store %arg19[%c0_338, %c180], %451 {strides = array<i32>} : memref<8x240xf32, #tpu.memory_space<vmem>>, vector<8x15xf32>,
    %c0_339 = arith.constant 0 : index
    %c403_340 = arith.constant 403 : index
    %453 = vector.load %arg17[%c0_339, %c403_340] : memref<8x496xf32, #tpu.memory_space<vmem>>, vector<8x31xf32>
    %454 = vector.extract_strided_slice %359 {offsets = [13, 0], sizes = [1, 31], strides = [1, 1]} : vector<16x31xf32> to vector<1x31xf32>
    %455 = vector.broadcast %454 : vector<1x31xf32> to vector<8x31xf32>
    %456 = arith.mulf %453, %455 : vector<8x31xf32>
    %cst_341 = arith.constant dense<0.000000e+00> : vector<8x15xf32>
    %457 = tpu.matmul %456, %374, %cst_341 {dimension_numbers = #tpu.dot_dimension_numbers<[1], [0], [0], [1], [0, 0, 1, 1], [], []>} : vector<8x31xf32>, vector<31x15xf32>, vector<8x15xf32> -> vector<8x15xf32>
    %c0_342 = arith.constant 0 : index
    %c195 = arith.constant 195 : index
    %458 = vector.load %arg19[%c0_342, %c195] : memref<8x240xf32, #tpu.memory_space<vmem>>, vector<8x15xf32>
    tpu.vector_store %arg19[%c0_342, %c195], %457 {strides = array<i32>} : memref<8x240xf32, #tpu.memory_space<vmem>>, vector<8x15xf32>,
    %c0_343 = arith.constant 0 : index
    %c434_344 = arith.constant 434 : index
    %459 = vector.load %arg17[%c0_343, %c434_344] : memref<8x496xf32, #tpu.memory_space<vmem>>, vector<8x31xf32>
    %460 = vector.extract_strided_slice %359 {offsets = [14, 0], sizes = [1, 31], strides = [1, 1]} : vector<16x31xf32> to vector<1x31xf32>
    %461 = vector.broadcast %460 : vector<1x31xf32> to vector<8x31xf32>
    %462 = arith.mulf %459, %461 : vector<8x31xf32>
    %cst_345 = arith.constant dense<0.000000e+00> : vector<8x15xf32>
    %463 = tpu.matmul %462, %374, %cst_345 {dimension_numbers = #tpu.dot_dimension_numbers<[1], [0], [0], [1], [0, 0, 1, 1], [], []>} : vector<8x31xf32>, vector<31x15xf32>, vector<8x15xf32> -> vector<8x15xf32>
    %c0_346 = arith.constant 0 : index
    %c210 = arith.constant 210 : index
    %464 = vector.load %arg19[%c0_346, %c210] : memref<8x240xf32, #tpu.memory_space<vmem>>, vector<8x15xf32>
    tpu.vector_store %arg19[%c0_346, %c210], %463 {strides = array<i32>} : memref<8x240xf32, #tpu.memory_space<vmem>>, vector<8x15xf32>,
    %c0_347 = arith.constant 0 : index
    %c465_348 = arith.constant 465 : index
    %465 = vector.load %arg17[%c0_347, %c465_348] : memref<8x496xf32, #tpu.memory_space<vmem>>, vector<8x31xf32>
    %466 = vector.extract_strided_slice %359 {offsets = [15, 0], sizes = [1, 31], strides = [1, 1]} : vector<16x31xf32> to vector<1x31xf32>
    %467 = vector.broadcast %466 : vector<1x31xf32> to vector<8x31xf32>
    %468 = arith.mulf %465, %467 : vector<8x31xf32>
    %cst_349 = arith.constant dense<0.000000e+00> : vector<8x15xf32>
    %469 = tpu.matmul %468, %374, %cst_349 {dimension_numbers = #tpu.dot_dimension_numbers<[1], [0], [0], [1], [0, 0, 1, 1], [], []>} : vector<8x31xf32>, vector<31x15xf32>, vector<8x15xf32> -> vector<8x15xf32>
    %c0_350 = arith.constant 0 : index
    %c225 = arith.constant 225 : index
    %470 = vector.load %arg19[%c0_350, %c225] : memref<8x240xf32, #tpu.memory_space<vmem>>, vector<8x15xf32>
    tpu.vector_store %arg19[%c0_350, %c225], %469 {strides = array<i32>} : memref<8x240xf32, #tpu.memory_space<vmem>>, vector<8x15xf32>,
    %c0_351 = arith.constant 0 : index
    %c0_352 = arith.constant 0 : index
    %471 = vector.load %arg19[%c0_351, %c0_352] : memref<8x240xf32, #tpu.memory_space<vmem>>, vector<8x240xf32>
    %c0_353 = arith.constant 0 : index
    %c0_354 = arith.constant 0 : index
    %472 = vector.load %arg7[%c0_353, %c0_354] : memref<8x240xf32, #tpu.memory_space<vmem>>, vector<8x240xf32>
    %473 = arith.mulf %471, %472 : vector<8x240xf32>
    %c0_355 = arith.constant 0 : index
    %c0_356 = arith.constant 0 : index
    %474 = vector.load %arg8[%c0_355, %c0_356] : memref<8x1xf32, #tpu.memory_space<vmem>>, vector<8x1xf32>
    %475 = vector.broadcast %474 : vector<8x1xf32> to vector<8x240xf32>
    %476 = arith.subf %473, %475 : vector<8x240xf32>
    %cst_357 = arith.constant 0.000000e+00 : f32
    %477 = vector.broadcast %cst_357 : f32 to vector<8x240xf32>
    %478 = arith.maximumf %476, %477 : vector<8x240xf32>
    %c0_358 = arith.constant 0 : index
    %c0_359 = arith.constant 0 : index
    %479 = vector.load %arg9[%c0_358, %c0_359] : memref<4x8xf32, #tpu.memory_space<vmem>>, vector<4x8xf32>
    %cst_360 = arith.constant dense<0.000000e+00> : vector<4x240xf32>
    %480 = tpu.matmul %479, %478, %cst_360 {dimension_numbers = #tpu.dot_dimension_numbers<[1], [0], [0], [1], [0, 0, 1, 1], [], []>} : vector<4x8xf32>, vector<8x240xf32>, vector<4x240xf32> -> vector<4x240xf32>
    %cst_361 = arith.constant dense<0.000000e+00> : vector<4x4xf32>
    %481 = tpu.matmul %480, %480, %cst_361 {dimension_numbers = #tpu.dot_dimension_numbers<[1], [1], [0], [0], [0, 0, 1, 0], [], []>} : vector<4x240xf32>, vector<4x240xf32>, vector<4x4xf32> -> vector<4x4xf32>
    %c0_362 = arith.constant 0 : index
    %c0_363 = arith.constant 0 : index
    %482 = vector.load %arg10[%c0_362, %c0_363] : memref<4x4xf32, #tpu.memory_space<vmem>>, vector<4x4xf32>
    %483 = arith.mulf %481, %482 : vector<4x4xf32>
    %cst_364 = arith.constant 0.000000e+00 : f32
    %484 = vector.broadcast %cst_364 : f32 to vector<4x4xf32>
    %485 = arith.maximumf %483, %484 : vector<4x4xf32>
    %486 = tpu.iota {dimensions = array<i32: 0>} : vector<4x4xi32>
    %487 = tpu.iota {dimensions = array<i32: 1>} : vector<4x4xi32>
    %488 = arith.cmpi eq, %486, %487 : vector<4x4xi32>
    %489 = arith.extui %488 : vector<4x4xi1> to vector<4x4xi32>
    %490 = arith.sitofp %489 : vector<4x4xi32> to vector<4x4xf32>
    %491 = arith.addf %485, %490 : vector<4x4xf32>
    %cst_365 = arith.constant dense<0.000000e+00> : vector<4xf32>
    %492 = vector.multi_reduction <add>, %491, %cst_365 [1] : vector<4x4xf32> to vector<4xf32>
    %493 = vector.shape_cast %492 : vector<4xf32> to vector<4x1xf32>
    %cst_366 = arith.constant 0.000000e+00 : f32
    %494 = vector.broadcast %cst_366 : f32 to vector<4x1xf32>
    %495 = arith.cmpf oeq, %493, %494 : vector<4x1xf32>
    %496 = arith.extui %495 : vector<4x1xi1> to vector<4x1xi32>
    %497 = arith.sitofp %496 : vector<4x1xi32> to vector<4x1xf32>
    %498 = arith.addf %493, %497 : vector<4x1xf32>
    %cst_367 = arith.constant dense<0.000000e+00> : vector<4xf32>
    %499 = vector.multi_reduction <add>, %491, %cst_367 [0] : vector<4x4xf32> to vector<4xf32>
    %500 = vector.shape_cast %499 : vector<4xf32> to vector<1x4xf32>
    %cst_368 = arith.constant 0.000000e+00 : f32
    %501 = vector.broadcast %cst_368 : f32 to vector<1x4xf32>
    %502 = arith.cmpf oeq, %500, %501 : vector<1x4xf32>
    %503 = arith.extui %502 : vector<1x4xi1> to vector<1x4xi32>
    %504 = arith.sitofp %503 : vector<1x4xi32> to vector<1x4xf32>
    %505 = arith.addf %500, %504 : vector<1x4xf32>
    %506 = math.rsqrt %498 : vector<4x1xf32>
    %507 = vector.broadcast %506 : vector<4x1xf32> to vector<4x4xf32>
    %508 = arith.mulf %507, %491 : vector<4x4xf32>
    %509 = math.rsqrt %505 : vector<1x4xf32>
    %510 = vector.broadcast %509 : vector<1x4xf32> to vector<4x4xf32>
    %511 = arith.mulf %508, %510 : vector<4x4xf32>
    %cst_369 = arith.constant 0.999994993 : f32
    %512 = vector.broadcast %cst_369 : f32 to vector<4x240xf32>
    %513 = arith.mulf %480, %512 : vector<4x240xf32>
    %c0_370 = arith.constant 0 : index
    %c0_371 = arith.constant 0 : index
    %514 = vector.load %arg11[%c0_370, %c0_371] : memref<240x8xf32, #tpu.memory_space<vmem>>, vector<240x8xf32>
    %cst_372 = arith.constant dense<0.000000e+00> : vector<4x8xf32>
    %515 = tpu.matmul %513, %514, %cst_372 {dimension_numbers = #tpu.dot_dimension_numbers<[1], [0], [0], [1], [0, 0, 1, 1], [], []>} : vector<4x240xf32>, vector<240x8xf32>, vector<4x8xf32> -> vector<4x8xf32>
    %c0_373 = arith.constant 0 : index
    %c0_374 = arith.constant 0 : index
    %516 = vector.load %arg12[%c0_373, %c0_374] : memref<1x8xf32, #tpu.memory_space<vmem>>, vector<1x8xf32>
    %517 = vector.broadcast %516 : vector<1x8xf32> to vector<4x8xf32>
    %518 = arith.subf %515, %517 : vector<4x8xf32>
    %cst_375 = arith.constant dense<0.000000e+00> : vector<4x8xf32>
    %519 = tpu.matmul %511, %518, %cst_375 {dimension_numbers = #tpu.dot_dimension_numbers<[1], [0], [0], [1], [0, 0, 1, 1], [], []>} : vector<4x4xf32>, vector<4x8xf32>, vector<4x8xf32> -> vector<4x8xf32>
    %cst_376 = arith.constant 0.000000e+00 : f32
    %520 = vector.broadcast %cst_376 : f32 to vector<4x8xf32>
    %521 = arith.maximumf %519, %520 : vector<4x8xf32>
    %cst_377 = arith.constant 0.999994993 : f32
    %522 = vector.broadcast %cst_377 : f32 to vector<4x8xf32>
    %523 = arith.mulf %521, %522 : vector<4x8xf32>
    %c0_378 = arith.constant 0 : index
    %c0_379 = arith.constant 0 : index
    %524 = vector.load %arg14[%c0_378, %c0_379] : memref<1x2xf32, #tpu.memory_space<vmem>>, vector<1x2xf32>
    %525 = vector.extract_strided_slice %523 {offsets = [0, 0], sizes = [1, 8], strides = [1, 1]} : vector<4x8xf32> to vector<1x8xf32>
    %c0_380 = arith.constant 0 : index
    %c0_381 = arith.constant 0 : index
    %526 = vector.load %arg13[%c0_380, %c0_381] : memref<32x2xf32, #tpu.memory_space<vmem>>, vector<8x2xf32>
    %cst_382 = arith.constant dense<0.000000e+00> : vector<1x2xf32>
    %527 = tpu.matmul %525, %526, %cst_382 {dimension_numbers = #tpu.dot_dimension_numbers<[1], [0], [0], [1], [0, 0, 1, 1], [], []>} : vector<1x8xf32>, vector<8x2xf32>, vector<1x2xf32> -> vector<1x2xf32>
    %528 = arith.addf %524, %527 : vector<1x2xf32>
    %529 = vector.extract_strided_slice %523 {offsets = [1, 0], sizes = [1, 8], strides = [1, 1]} : vector<4x8xf32> to vector<1x8xf32>
    %c8_383 = arith.constant 8 : index
    %c0_384 = arith.constant 0 : index
    %530 = vector.load %arg13[%c8_383, %c0_384] : memref<32x2xf32, #tpu.memory_space<vmem>>, vector<8x2xf32>
    %cst_385 = arith.constant dense<0.000000e+00> : vector<1x2xf32>
    %531 = tpu.matmul %529, %530, %cst_385 {dimension_numbers = #tpu.dot_dimension_numbers<[1], [0], [0], [1], [0, 0, 1, 1], [], []>} : vector<1x8xf32>, vector<8x2xf32>, vector<1x2xf32> -> vector<1x2xf32>
    %532 = arith.addf %528, %531 : vector<1x2xf32>
    %533 = vector.extract_strided_slice %523 {offsets = [2, 0], sizes = [1, 8], strides = [1, 1]} : vector<4x8xf32> to vector<1x8xf32>
    %c16_386 = arith.constant 16 : index
    %c0_387 = arith.constant 0 : index
    %534 = vector.load %arg13[%c16_386, %c0_387] : memref<32x2xf32, #tpu.memory_space<vmem>>, vector<8x2xf32>
    %cst_388 = arith.constant dense<0.000000e+00> : vector<1x2xf32>
    %535 = tpu.matmul %533, %534, %cst_388 {dimension_numbers = #tpu.dot_dimension_numbers<[1], [0], [0], [1], [0, 0, 1, 1], [], []>} : vector<1x8xf32>, vector<8x2xf32>, vector<1x2xf32> -> vector<1x2xf32>
    %536 = arith.addf %532, %535 : vector<1x2xf32>
    %537 = vector.extract_strided_slice %523 {offsets = [3, 0], sizes = [1, 8], strides = [1, 1]} : vector<4x8xf32> to vector<1x8xf32>
    %c24 = arith.constant 24 : index
    %c0_389 = arith.constant 0 : index
    %538 = vector.load %arg13[%c24, %c0_389] : memref<32x2xf32, #tpu.memory_space<vmem>>, vector<8x2xf32>
    %cst_390 = arith.constant dense<0.000000e+00> : vector<1x2xf32>
    %539 = tpu.matmul %537, %538, %cst_390 {dimension_numbers = #tpu.dot_dimension_numbers<[1], [0], [0], [1], [0, 0, 1, 1], [], []>} : vector<1x8xf32>, vector<8x2xf32>, vector<1x2xf32> -> vector<1x2xf32>
    %540 = arith.addf %536, %539 : vector<1x2xf32>
    %c0_391 = arith.constant 0 : index
    %c0_392 = arith.constant 0 : index
    %c0_393 = arith.constant 0 : index
    %541 = vector.load %arg15[%c0_391, %c0_392, %c0_393] : memref<1x1x2xf32, #tpu.memory_space<vmem>>, vector<1x1x2xf32>
    %542 = vector.shape_cast %541 : vector<1x1x2xf32> to vector<1x2xf32>
    %543 = vector.shape_cast %540 : vector<1x2xf32> to vector<1x1x2xf32>
    tpu.vector_store %arg15[%c0_391, %c0_392, %c0_393], %543 {strides = array<i32>} : memref<1x1x2xf32, #tpu.memory_space<vmem>>, vector<1x1x2xf32>,
    return
  }
  func.func @transform_0(%arg0: i32) -> (i32, i32, i32) {
    %c0_i32 = arith.constant 0 : i32
    %c0_i32_0 = arith.constant 0 : i32
    %c0_i32_1 = arith.constant 0 : i32
    return %arg0, %c0_i32, %c0_i32_0 : i32, i32, i32
  }
  func.func @transform_1(%arg0: i32) -> (i32, i32) {
    %c0_i32 = arith.constant 0 : i32
    %c0_i32_0 = arith.constant 0 : i32
    %c0_i32_1 = arith.constant 0 : i32
    return %c0_i32, %c0_i32_0 : i32, i32
  }
  func.func @transform_2(%arg0: i32) -> (i32, i32) {
    %c0_i32 = arith.constant 0 : i32
    %c0_i32_0 = arith.constant 0 : i32
    %c0_i32_1 = arith.constant 0 : i32
    return %c0_i32, %c0_i32_0 : i32, i32
  }
  func.func @transform_3(%arg0: i32) -> (i32, i32) {
    %c0_i32 = arith.constant 0 : i32
    %c0_i32_0 = arith.constant 0 : i32
    %c0_i32_1 = arith.constant 0 : i32
    return %c0_i32, %c0_i32_0 : i32, i32
  }
  func.func @transform_4(%arg0: i32) -> (i32, i32) {
    %c0_i32 = arith.constant 0 : i32
    %c0_i32_0 = arith.constant 0 : i32
    %c0_i32_1 = arith.constant 0 : i32
    return %c0_i32, %c0_i32_0 : i32, i32
  }
  func.func @transform_5(%arg0: i32) -> (i32, i32, i32) {
    %c0_i32 = arith.constant 0 : i32
    %c0_i32_0 = arith.constant 0 : i32
    %c0_i32_1 = arith.constant 0 : i32
    %c0_i32_2 = arith.constant 0 : i32
    return %c0_i32, %c0_i32_0, %c0_i32_1 : i32, i32, i32
  }
  func.func @transform_6(%arg0: i32) -> (i32, i32) {
    %c0_i32 = arith.constant 0 : i32
    %c0_i32_0 = arith.constant 0 : i32
    %c0_i32_1 = arith.constant 0 : i32
    return %c0_i32, %c0_i32_0 : i32, i32
  }
  func.func @transform_7(%arg0: i32) -> (i32, i32) {
    %c0_i32 = arith.constant 0 : i32
    %c0_i32_0 = arith.constant 0 : i32
    %c0_i32_1 = arith.constant 0 : i32
    return %c0_i32, %c0_i32_0 : i32, i32
  }
  func.func @transform_8(%arg0: i32) -> (i32, i32) {
    %c0_i32 = arith.constant 0 : i32
    %c0_i32_0 = arith.constant 0 : i32
    %c0_i32_1 = arith.constant 0 : i32
    return %c0_i32, %c0_i32_0 : i32, i32
  }
  func.func @transform_9(%arg0: i32) -> (i32, i32) {
    %c0_i32 = arith.constant 0 : i32
    %c0_i32_0 = arith.constant 0 : i32
    %c0_i32_1 = arith.constant 0 : i32
    return %c0_i32, %c0_i32_0 : i32, i32
  }
  func.func @transform_10(%arg0: i32) -> (i32, i32) {
    %c0_i32 = arith.constant 0 : i32
    %c0_i32_0 = arith.constant 0 : i32
    %c0_i32_1 = arith.constant 0 : i32
    return %c0_i32, %c0_i32_0 : i32, i32
  }
  func.func @transform_11(%arg0: i32) -> (i32, i32) {
    %c0_i32 = arith.constant 0 : i32
    %c0_i32_0 = arith.constant 0 : i32
    %c0_i32_1 = arith.constant 0 : i32
    return %c0_i32, %c0_i32_0 : i32, i32
  }
  func.func @transform_12(%arg0: i32) -> (i32, i32) {
    %c0_i32 = arith.constant 0 : i32
    %c0_i32_0 = arith.constant 0 : i32
    %c0_i32_1 = arith.constant 0 : i32
    return %c0_i32, %c0_i32_0 : i32, i32
  }
  func.func @transform_13(%arg0: i32) -> (i32, i32) {
    %c0_i32 = arith.constant 0 : i32
    %c0_i32_0 = arith.constant 0 : i32
    %c0_i32_1 = arith.constant 0 : i32
    return %c0_i32, %c0_i32_0 : i32, i32
  }
  func.func @transform_14(%arg0: i32) -> (i32, i32, i32) {
    %c0_i32 = arith.constant 0 : i32
    %c0_i32_0 = arith.constant 0 : i32
    %c0_i32_1 = arith.constant 0 : i32
    return %arg0, %c0_i32, %c0_i32_0 : i32, i32, i32
  }
}

</mosaic_0001>

<bundles_post_ra>
// kernel: lggnet_forward.1
= control target key start
LH: loop header
LB: loop body
LE: loop exit
PB: predicated region body
PF: predicated region fallthrough
CT: control target
= control target key end

     0   :  { %s14284_s0 = inlined_call_operand.vmem [shape: f32[2,8,64], index: 0, kind: input, shape index: {}]   ;;  %s14285_s1 = inlined_call_operand.vmem [shape: f32[64,2224], index: 1, kind: input, shape index: {}]   ;;  %s14286_s2 = inlined_call_operand.vmem [shape: f32[1,2224], index: 2, kind: input, shape index: {}]   ;;  %s14287_s3 = inlined_call_operand.vmem [shape: f32[4,8], index: 3, kind: input, shape index: {}]   ;;  %s14288_s4 = inlined_call_operand.vmem [shape: f32[8,4], index: 4, kind: input, shape index: {}]   ;;  %s14289_s5 = inlined_call_operand.vmem [shape: f32[7,16,44], index: 5, kind: input, shape index: {}]   ;;  %s14290_s6 = inlined_call_operand.vmem [shape: f32[8,240], index: 6, kind: input, shape index: {}]   ;;  %s14291_s7 = inlined_call_operand.vmem [shape: f32[8,1], index: 7, kind: input, shape index: {}]   ;;  %s14292_s8 = inlined_call_operand.vmem [shape: f32[4,8], index: 8, kind: input, shape index: {}]   ;;  %s14293_s9 = inlined_call_operand.vmem [shape: f32[4,4], index: 9, kind: input, shape index: {}]   ;;  %s14294_s10 = inlined_call_operand.vmem [shape: f32[240,8], index: 10, kind: input, shape index: {}]   ;;  %s14295_s11 = inlined_call_operand.vmem [shape: f32[1,8], index: 11, kind: input, shape index: {}]   ;;  %s14296_s12 = inlined_call_operand.vmem [shape: f32[32,2], index: 12, kind: input, shape index: {}]   ;;  %s14297_s13 = inlined_call_operand.vmem [shape: f32[1,2], index: 13, kind: input, shape index: {}]   ;;  %s14298_s14 = inlined_call_operand.hbm [shape: f32[2,1,2], index: 14, kind: output, shape index: {}]  }
   0x1   :  { %14364 = sst [smem:[#allocation15_spill]] %s14284_s0 }
   0x2   :  { %14365 = sst [smem:[#allocation16_spill]] %s14285_s1 }
   0x3   :  { %19 = vsyncpa [#allocation7], 0 }
   0x4   :  { %21 = vsyncpa [#allocation7 + $0x1], 0  ;;  %s12291_s29 = smov 0   ;;  %s12293_s30 = smov 0  }
   0x5   :  { %s12295_s15 = smov 0   ;;  %s12297_s16 = smov 0  }
   0x6 LB: > { %14366 = sst [smem:[#allocation9_spill]] %s12098_s29  ;;  %s12312_s17 = sadd.s32 4294967295, %s12110_s16   ;;  %s12110_s16 = sphi %s12297_s16, %s14436_s16   ;;  %s12106_s15 = sphi %s12295_s15, %s14438_s15   ;;  %s12102_s30 = sphi %s12293_s30, %s14440_s30   ;;  %s12098_s29 = sphi %s12291_s29, %s14439_s29  }
   0x7   : > { %14367 = sst [smem:[#allocation10_spill]] %s12106_s15  ;;  %s9067_s18 = sadd.s32 4294967294, %s12110_s16  }
   0x8   : > { %14368 = sst [smem:[#allocation11_spill]] %s12110_s16  ;;  %s12316_s19 = sadd.s32 1, %s12110_s16  }
   0x9   : > { %14369 = sst [smem:[#allocation12_spill]] %s12316_s19  ;;  %s333_s20 = sadd.s32 1, %s12106_s15 }
   0xa   : > { %s330_s21 = ssub.s32 %s12110_s16, %s12316_s19  ;;  %p343_p0 = scmp.ne.s32.totalorder %s12106_s15, %s12102_s30 }
   0xb   : > { %p331_p1 = scmp.eq.s32.totalorder %s330_s21, 0  ;;  %p344_p2 = scmp.eq.s32.totalorder %s12312_s17, 1 }
   0xc   : > { %p349_p3 = scmp.ne.s32.totalorder %s12102_s30, %s12098_s29  ;;  %p350_p4 = scmp.eq.s32.totalorder %s9067_s18, 1 }
   0xd   : > { %s12327_s22 = scalar_select %p331_p1, %s12106_s15, %s333_s20  }
   0xe   : > { %p12329_p5 = por %p344_p2, %p343_p0  ;;  %p12333_p6 = por %p350_p4, %p349_p3 }
   0xf   : > { %14370 = sst [smem:[#allocation13_spill]] %s12327_s22  ;;  %p9070_p7 = scmp.ge.s32.totalorder %s12110_s16, 1 }
  0x10   : > { %s14372_s24 = scalar_select %p12333_p6, 1, 0 }
  0x11   : > { %p414_p8 = scmp.lt.s32.totalorder %s12110_s16, 3 }
  0x12   : > { %14373 = sst [smem:[#allocation14_spill]] %s14372_s24 }
  0x13   : > { %p415_p9 = pnand %p9070_p7, %p414_p8 }
  0x14   : > { %s14374_s1 = sld [smem:[#allocation16_spill]] (!%p415_p9)  ;;  %v12112_v7 = vmov (!%p415_p9), 0.0   ;;  %p458_p10 = scmp.lt.s32.totalorder (!%p415_p9), %s12312_s17, 1  ;;  %vm703_vm0 = vcmask (!%p415_p9), 523264  }
  0x15   : > { %418 = sbr.rel (%p415_p9) target bundleno = 4243 (0x1093), region = 76  ;;  %771 = vmatprep.mubr.f32.mxu1 (!%p415_p9), %v12112_v7  ;;  %913 = vmatprep.mubr.f32.mxu0 (!%p415_p9), %v12112_v7  ;;  %s14375_s0 = sld [smem:[#allocation15_spill]] (!%p415_p9) }
  0x16   : > { %s12115_s28 = smov (!%p415_p9), 29   ;;  %s14335_s16 = smov (!%p415_p9), 62  }
  0x17   : > { %s12118_s20 = smov (!%p415_p9), 91   ;;  %s14336_s21 = smov (!%p415_p9), 124  }
  0x18   : > { %s12120_s25 = smov (!%p415_p9), 25   ;;  %s14331_s26 = smov (!%p415_p9), 58  }
  0x19   : > { %s12124_s19 = smov (!%p415_p9), 87   ;;  %s12125_s29 = smov (!%p415_p9), 21  }
  0x1a   : > { %v464_v0 = vld [vmem:[%s14374_s1 + $0x8] sm:$0xff] (!%p415_p9)  ;;  %v482_v1 = vld [vmem:[%s14374_s1 + $0x98] sm:$0xff] (!%p415_p9)  ;;  %v463_v2 = vld [vmem:[%s14374_s1] sm:$0xff] (!%p415_p9)  ;;  %s12128_s22 = smov (!%p415_p9), 17   ;;  %s14305_s24 = smov (!%p415_p9), 50  }
  0x1b   : > { %v10909_v3 = vpack.c.bf16 (!%p415_p9), %v482_v1, %v464_v0  ;;  %v481_v4 = vld [vmem:[%s14374_s1 + $0x90] sm:$0xff] (!%p415_p9)  ;;  %v500_v5 = vld [vmem:[%s14374_s1 + $0x128] sm:$0xff] (!%p415_p9)  ;;  %v518_v6 = vld [vmem:[%s14374_s1 + $0x1b8] sm:$0xff] (!%p415_p9) }
  0x1c   : > { %v10911_v8 = vpack.c.bf16 %v481_v4, %v463_v2  ;;  %v10913_v9 = vpack.c.bf16 %v518_v6, %v500_v5  ;;  %v499_v10 = vld [vmem:[%s14374_s1 + $0x120] sm:$0xff]  ;;  %v517_v11 = vld [vmem:[%s14374_s1 + $0x1b0] sm:$0xff]  ;;  %v536_v12 = vld [vmem:[%s14374_s1 + $0x248] sm:$0xff]  ;;  %s459_s15 = scalar_select %p458_p10, %s12312_s17, 1 }
  0x1d   : > { %10910 = vmatprep.subr.bf16.mxu1 %v10909_v3  ;;  %v554_v13 = vld [vmem:[%s14374_s1 + $0x2d8] sm:$0xff]  ;;  %v10915_v14 = vpack.c.bf16 %v517_v11, %v499_v10  ;;  %v535_v16 = vld [vmem:[%s14374_s1 + $0x240] sm:$0xff]  ;;  %v553_v17 = vld [vmem:[%s14374_s1 + $0x2d0] sm:$0xff] }
  0x1e   : > { %10912 = vmatpush1.bf16.msra.mxu1 %v10911_v8  ;;  %v10917_v15 = vpack.c.bf16 %v554_v13, %v536_v12  ;;  %v572_v18 = vld [vmem:[%s14374_s1 + $0x368] sm:$0xff]  ;;  %v590_v19 = vld [vmem:[%s14374_s1 + $0x3f8] sm:$0xff]  ;;  %v10919_v20 = vpack.c.bf16 %v553_v17, %v535_v16  ;;  %v571_v22 = vld [vmem:[%s14374_s1 + $0x360] sm:$0xff]  ;;  %s9071_s27 = sshll.u32 %s459_s15, 3  ;;  %s14314_s15 = smov 120  }
  0x1f   : > { %10914 = vmatprep.subr.bf16.mxu1 %v10913_v9  ;;  %v10921_v21 = vpack.c.bf16 %v590_v19, %v572_v18  ;;  %v589_v23 = vld [vmem:[%s14374_s1 + $0x3f0] sm:$0xff]  ;;  %v466_v24 = vld [vmem:[%s14374_s1 + $0x18] sm:$0xff]  ;;  %v484_v25 = vld [vmem:[%s14374_s1 + $0xa8] sm:$0xff]  ;;  %s461_s18 = scalar_lea.vmem %s14375_s0, %s9071_s27  ;;  %s14312_s27 = smov 54  }
  0x20   : > { %v465_v26 = vld [vmem:[%s14374_s1 + $0x10] sm:$0xff]  ;;  %v483_v27 = vld [vmem:[%s14374_s1 + $0xa0] sm:$0xff]  ;;  %v468_v28 = vld [vmem:[%s14374_s1 + $0x28] sm:$0xff]  ;;  %v10923_v31 = vpack.c.bf16 %v589_v23, %v571_v22  ;;  %v10925_v36 = vpack.c.bf16 %v484_v25, %v466_v24  ;;  %s14393_s0 = smov 81  }
  0x21   : > { %v486_v29 = vld [vmem:[%s14374_s1 + $0xb8] sm:$0xff]  ;;  %v467_v30 = vld [vmem:[%s14374_s1 + $0x20] sm:$0xff]  ;;  %v485_v33 = vld [vmem:[%s14374_s1 + $0xb0] sm:$0xff]  ;;  %v10927_v47 = vpack.c.bf16 %v483_v27, %v465_v26 }
  0x22   : > { %10916 = vmatpush1.bf16.msra.mxu1 %v10915_v14  ;;  %v10941_v32 = vpack.c.bf16 %v486_v29, %v468_v28  ;;  %v504_v34 = vld [vmem:[%s14374_s1 + $0x148] sm:$0xff]  ;;  %v522_v35 = vld [vmem:[%s14374_s1 + $0x1d8] sm:$0xff]  ;;  %v10943_v38 = vpack.c.bf16 %v485_v33, %v467_v30  ;;  %v503_v40 = vld [vmem:[%s14374_s1 + $0x140] sm:$0xff] }
  0x23   : > { %10918 = vmatprep.subr.bf16.mxu1 %v10917_v15  ;;  %v502_v37 = vld [vmem:[%s14374_s1 + $0x138] sm:$0xff]  ;;  %v10945_v39 = vpack.c.bf16 %v522_v35, %v504_v34  ;;  %v521_v41 = vld [vmem:[%s14374_s1 + $0x1d0] sm:$0xff]  ;;  %v520_v42 = vld [vmem:[%s14374_s1 + $0x1c8] sm:$0xff] }
  0x24   : > { %10942 = vmatprep.subr.bf16.mxu0 %v10941_v32  ;;  %v540_v43 = vld [vmem:[%s14374_s1 + $0x268] sm:$0xff]  ;;  %v558_v44 = vld [vmem:[%s14374_s1 + $0x2f8] sm:$0xff]  ;;  %v12444_v45 = vld [vmem:[%s461_s18] sm:$0xff]  ;;  %v10947_v46 = vpack.c.bf16 %v521_v41, %v503_v40  ;;  %v10929_v51 = vpack.c.bf16 %v520_v42, %v502_v37  ;;  %s12116_s18 = smov 95  }
  0x25   : > { %10944 = vmatpush1.bf16.msra.mxu0 %v10943_v38  ;;  %v501_v48 = vld [vmem:[%s14374_s1 + $0x130] sm:$0xff]  ;;  %v539_v49 = vld [vmem:[%s14374_s1 + $0x260] sm:$0xff]  ;;  %v10949_v53 = vpack.c.bf16 %v558_v44, %v540_v43  ;;  %v576_v54 = vld [vmem:[%s14374_s1 + $0x388] sm:$0xff] }
  0x26   : > { %10920 = vmatpush1.bf16.msra.mxu1 %v10919_v20  ;;  %10946 = vmatprep.subr.bf16.mxu0 %v10945_v39  ;;  %v557_v50 = vld [vmem:[%s14374_s1 + $0x2f0] sm:$0xff]  ;;  %v519_v52 = vld [vmem:[%s14374_s1 + $0x1c0] sm:$0xff]  ;;  %v594_v55 = vld [vmem:[%s14374_s1 + $0x418] sm:$0xff] }
  0x27   : > { %10922 = vmatprep.subr.bf16.mxu1 %v10921_v21  ;;  %v538_v56 = vld [vmem:[%s14374_s1 + $0x258] sm:$0xff]  ;;  %v556_v57 = vld [vmem:[%s14374_s1 + $0x2e8] sm:$0xff]  ;;  %v10951_v58 = vpack.c.bf16 %v557_v50, %v539_v49  ;;  %v10931_v59 = vpack.c.bf16 %v519_v52, %v501_v48  ;;  %v10953_v60 = vpack.c.bf16 %v594_v55, %v576_v54  ;;  %v575_v61 = vld [vmem:[%s14374_s1 + $0x380] sm:$0xff] }
  0x28   : > { %v593_v62 = vld [vmem:[%s14374_s1 + $0x410] sm:$0xff]  ;;  %v10933_v63 = vpack.c.bf16 %v556_v57, %v538_v56  ;;  %v555_v1 = vld [vmem:[%s14374_s1 + $0x2e0] sm:$0xff]  ;;  %v472_v2 = vld [vmem:[%s14374_s1 + $0x48] sm:$0xff] }
  0x29   : > { %10948 = vmatpush1.bf16.msra.mxu0 %v10947_v46  ;;  %v537_v0 = vld [vmem:[%s14374_s1 + $0x250] sm:$0xff]  ;;  %v574_v3 = vld [vmem:[%s14374_s1 + $0x378] sm:$0xff]  ;;  %v592_v4 = vld [vmem:[%s14374_s1 + $0x408] sm:$0xff]  ;;  %v10955_v6 = vpack.c.bf16 %v593_v62, %v575_v61 }
  0x2a   : > { %10924 = vmatpush1.bf16.msra.mxu1 %v10923_v31  ;;  %10950 = vmatprep.subr.bf16.mxu0 %v10949_v53  ;;  %v490_v5 = vld [vmem:[%s14374_s1 + $0xd8] sm:$0xff]  ;;  %v10935_v8 = vpack.c.bf16 %v555_v1, %v537_v0  ;;  %v573_v9 = vld [vmem:[%s14374_s1 + $0x370] sm:$0xff]  ;;  %v471_v11 = vld [vmem:[%s14374_s1 + $0x40] sm:$0xff]  ;;  %v10937_v13 = vpack.c.bf16 %v592_v4, %v574_v3 }
  0x2b   : > { %10926 = vmatprep.subr.bf16.mxu1 %v10925_v36  ;;  %v10973_v10 = vpack.c.bf16 %v490_v5, %v472_v2  ;;  %v489_v12 = vld [vmem:[%s14374_s1 + $0xd0] sm:$0xff]  ;;  %v591_v14 = vld [vmem:[%s14374_s1 + $0x400] sm:$0xff]  ;;  %v508_v15 = vld [vmem:[%s14374_s1 + $0x168] sm:$0xff] }
  0x2c   : > { %v526_v16 = vld [vmem:[%s14374_s1 + $0x1f8] sm:$0xff]  ;;  %v488_v18 = vld [vmem:[%s14374_s1 + $0xc8] sm:$0xff]  ;;  %v10975_v19 = vpack.c.bf16 %v489_v12, %v471_v11  ;;  %v10939_v20 = vpack.c.bf16 %v591_v14, %v573_v9  ;;  %v507_v22 = vld [vmem:[%s14374_s1 + $0x160] sm:$0xff] }
  0x2d   : > { %9072 = vmatmul.mubr.msk.f32.vlgmr.msra.gmra.mrb[0].mxu1 %vm703_vm0, %v12444_v45  ;;  %10952 = vmatpush1.bf16.msra.mxu0 %v10951_v58  ;;  %v470_v17 = vld [vmem:[%s14374_s1 + $0x38] sm:$0xff]  ;;  %v10977_v21 = vpack.c.bf16 %v526_v16, %v508_v15  ;;  %v525_v23 = vld [vmem:[%s14374_s1 + $0x1f0] sm:$0xff]  ;;  %v487_v26 = vld [vmem:[%s14374_s1 + $0xc0] sm:$0xff] }
  0x2e   : > { %10928 = vmatpush1.bf16.msra.mxu1 %v10927_v47  ;;  %842 = vmatprep.mubr.f32.mxu1 %v12112_v7  ;;  %v10957_v24 = vpack.c.bf16 %v488_v18, %v470_v17  ;;  %v469_v25 = vld [vmem:[%s14374_s1 + $0x30] sm:$0xff]  ;;  %v506_v27 = vld [vmem:[%s14374_s1 + $0x158] sm:$0xff]  ;;  %v524_v28 = vld [vmem:[%s14374_s1 + $0x1e8] sm:$0xff]  ;;  %v10979_v31 = vpack.c.bf16 %v525_v23, %v507_v22 }
  0x2f   : > { %10930 = vmatprep.subr.bf16.mxu1 %v10929_v51  ;;  %10954 = vmatprep.subr.bf16.mxu0 %v10953_v60  ;;  %v544_v29 = vld [vmem:[%s14374_s1 + $0x288] sm:$0xff]  ;;  %v562_v30 = vld [vmem:[%s14374_s1 + $0x318] sm:$0xff]  ;;  %v10959_v32 = vpack.c.bf16 %v487_v26, %v469_v25  ;;  %v505_v33 = vld [vmem:[%s14374_s1 + $0x150] sm:$0xff]  ;;  %v10961_v36 = vpack.c.bf16 %v524_v28, %v506_v27 }
  0x30   : > { %v543_v34 = vld [vmem:[%s14374_s1 + $0x280] sm:$0xff]  ;;  %v561_v35 = vld [vmem:[%s14374_s1 + $0x310] sm:$0xff]  ;;  %v10981_v38 = vpack.c.bf16 %v562_v30, %v544_v29  ;;  %v580_v39 = vld [vmem:[%s14374_s1 + $0x3a8] sm:$0xff] }
  0x31   : > { %10956 = vmatpush1.bf16.msra.mxu0 %v10955_v6  ;;  %v523_v37 = vld [vmem:[%s14374_s1 + $0x1e0] sm:$0xff]  ;;  %v598_v40 = vld [vmem:[%s14374_s1 + $0x438] sm:$0xff]  ;;  %v560_v42 = vld [vmem:[%s14374_s1 + $0x308] sm:$0xff]  ;;  %v10983_v43 = vpack.c.bf16 %v561_v35, %v543_v34 }
  0x32   : > { %10932 = vmatpush1.bf16.msra.mxu1 %v10931_v59  ;;  %10974 = vmatprep.subr.bf16.mxu0 %v10973_v10  ;;  %v542_v41 = vld [vmem:[%s14374_s1 + $0x278] sm:$0xff]  ;;  %v10963_v44 = vpack.c.bf16 %v523_v37, %v505_v33  ;;  %v541_v46 = vld [vmem:[%s14374_s1 + $0x270] sm:$0xff]  ;;  %v10985_v47 = vpack.c.bf16 %v598_v40, %v580_v39  ;;  %v579_v48 = vld [vmem:[%s14374_s1 + $0x3a0] sm:$0xff] }
  0x33   : > { %10934 = vmatprep.subr.bf16.mxu1 %v10933_v63  ;;  %v597_v49 = vld [vmem:[%s14374_s1 + $0x430] sm:$0xff]  ;;  %v10965_v50 = vpack.c.bf16 %v560_v42, %v542_v41  ;;  %v559_v51 = vld [vmem:[%s14374_s1 + $0x300] sm:$0xff]  ;;  %v476_v52 = vld [vmem:[%s14374_s1 + $0x68] sm:$0xff] }
  0x34   : > { %9074 = vmatmul.mubr.msk.f32.vlgmr.msra.gmra.mrb[0].mxu0 %vm703_vm0, %v12444_v45  ;;  %v494_v53 = vld [vmem:[%s14374_s1 + $0xf8] sm:$0xff]  ;;  %v596_v55 = vld [vmem:[%s14374_s1 + $0x428] sm:$0xff]  ;;  %v10987_v56 = vpack.c.bf16 %v597_v49, %v579_v48  ;;  %v10967_v57 = vpack.c.bf16 %v559_v51, %v541_v46  ;;  %v577_v58 = vld [vmem:[%s14374_s1 + $0x390] sm:$0xff] }
  0x35   : > { %10976 = vmatpush1.bf16.msra.mxu0 %v10975_v19  ;;  %1055 = vmatprep.mubr.f32.mxu0 %v12112_v7  ;;  %v578_v54 = vld [vmem:[%s14374_s1 + $0x398] sm:$0xff]  ;;  %v11005_v59 = vpack.c.bf16 %v494_v53, %v476_v52  ;;  %v475_v60 = vld [vmem:[%s14374_s1 + $0x60] sm:$0xff]  ;;  %v493_v61 = vld [vmem:[%s14374_s1 + $0xf0] sm:$0xff] }
  0x36   : > { %10936 = vmatpush1.bf16.msra.mxu1 %v10935_v8  ;;  %10978 = vmatprep.subr.bf16.mxu0 %v10977_v21  ;;  %v10969_v62 = vpack.c.bf16 %v596_v55, %v578_v54  ;;  %v595_v63 = vld [vmem:[%s14374_s1 + $0x420] sm:$0xff]  ;;  %v512_v0 = vld [vmem:[%s14374_s1 + $0x188] sm:$0xff]  ;;  %v530_v1 = vld [vmem:[%s14374_s1 + $0x218] sm:$0xff]  ;;  %v11007_v4 = vpack.c.bf16 %v493_v61, %v475_v60 }
  0x37   : > { %10938 = vmatprep.subr.bf16.mxu1 %v10937_v13  ;;  %v474_v2 = vld [vmem:[%s14374_s1 + $0x58] sm:$0xff]  ;;  %v492_v3 = vld [vmem:[%s14374_s1 + $0xe8] sm:$0xff]  ;;  %v10971_v5 = vpack.c.bf16 %v595_v63, %v577_v58  ;;  %v11009_v6 = vpack.c.bf16 %v530_v1, %v512_v0  ;;  %v511_v8 = vld [vmem:[%s14374_s1 + $0x180] sm:$0xff] }
  0x38   : > { %v529_v9 = vld [vmem:[%s14374_s1 + $0x210] sm:$0xff]  ;;  %v10989_v10 = vpack.c.bf16 %v492_v3, %v474_v2  ;;  %v491_v12 = vld [vmem:[%s14374_s1 + $0xe0] sm:$0xff]  ;;  %v510_v13 = vld [vmem:[%s14374_s1 + $0x178] sm:$0xff] }
  0x39   : > { %10980 = vmatpush1.bf16.msra.mxu0 %v10979_v31  ;;  %v473_v11 = vld [vmem:[%s14374_s1 + $0x50] sm:$0xff]  ;;  %v528_v14 = vld [vmem:[%s14374_s1 + $0x208] sm:$0xff]  ;;  %v566_v16 = vld [vmem:[%s14374_s1 + $0x338] sm:$0xff]  ;;  %v11011_v17 = vpack.c.bf16 %v529_v9, %v511_v8 }
  0x3a   : > { %10940 = vmatpush1.bf16.msra.mxu1 %v10939_v20  ;;  %10982 = vmatprep.subr.bf16.mxu0 %v10981_v38  ;;  %v548_v15 = vld [vmem:[%s14374_s1 + $0x2a8] sm:$0xff]  ;;  %v10991_v18 = vpack.c.bf16 %v491_v12, %v473_v11  ;;  %v509_v19 = vld [vmem:[%s14374_s1 + $0x170] sm:$0xff]  ;;  %v547_v20 = vld [vmem:[%s14374_s1 + $0x2a0] sm:$0xff]  ;;  %v10993_v22 = vpack.c.bf16 %v528_v14, %v510_v13 }
  0x3b   : > { %10958 = vmatprep.subr.bf16.mxu1 %v10957_v24  ;;  %v565_v21 = vld [vmem:[%s14374_s1 + $0x330] sm:$0xff]  ;;  %v527_v23 = vld [vmem:[%s14374_s1 + $0x200] sm:$0xff]  ;;  %v11013_v24 = vpack.c.bf16 %v566_v16, %v548_v15  ;;  %v584_v25 = vld [vmem:[%s14374_s1 + $0x3c8] sm:$0xff] }
  0x3c   : > { %v602_v26 = vld [vmem:[%s14374_s1 + $0x458] sm:$0xff]  ;;  %v564_v28 = vld [vmem:[%s14374_s1 + $0x328] sm:$0xff]  ;;  %v11015_v29 = vpack.c.bf16 %v565_v21, %v547_v20  ;;  %v10995_v30 = vpack.c.bf16 %v527_v23, %v509_v19  ;;  %v601_v33 = vld [vmem:[%s14374_s1 + $0x450] sm:$0xff]  ;;  %v12113_v20 = vmov 0.0|0.0  }
  0x3d   : > { %9073 = vmatmul.mubr.msk.f32.vlgmr.msra.gmra.mrb[2].mxu1 %vm703_vm0, %v12444_v45  ;;  %10984 = vmatpush1.bf16.msra.mxu0 %v10983_v43  ;;  %v546_v27 = vld [vmem:[%s14374_s1 + $0x298] sm:$0xff]  ;;  %v11017_v31 = vpack.c.bf16 %v602_v26, %v584_v25  ;;  %v545_v35 = vld [vmem:[%s14374_s1 + $0x290] sm:$0xff]  ;;  %v600_v38 = vld [vmem:[%s14374_s1 + $0x448] sm:$0xff] }
  0x3e   : > { %10960 = vmatpush1.bf16.msra.mxu1 %v10959_v32  ;;  %984 = vmatprep.mubr.f32.mxu1 %v12112_v7  ;;  %v583_v32 = vld [vmem:[%s14374_s1 + $0x3c0] sm:$0xff]  ;;  %v10997_v34 = vpack.c.bf16 %v564_v28, %v546_v27  ;;  %v582_v37 = vld [vmem:[%s14374_s1 + $0x3b8] sm:$0xff]  ;;  %v581_v42 = vld [vmem:[%s14374_s1 + $0x3b0] sm:$0xff] }
  0x3f   : > { %10962 = vmatprep.subr.bf16.mxu1 %v10961_v36  ;;  %10986 = vmatprep.subr.bf16.mxu0 %v10985_v47  ;;  %v563_v36 = vld [vmem:[%s14374_s1 + $0x320] sm:$0xff]  ;;  %v11019_v39 = vpack.c.bf16 %v601_v33, %v583_v32  ;;  %v11001_v41 = vpack.c.bf16 %v600_v38, %v582_v37  ;;  %v496_v46 = vld [vmem:[%s14374_s1 + $0x108] sm:$0xff]  ;;  %v477_v49 = vld [vmem:[%s14374_s1 + $0x70] sm:$0xff] }
  0x40   : > { %v10999_v40 = vpack.c.bf16 %v563_v36, %v545_v35  ;;  %v599_v43 = vld [vmem:[%s14374_s1 + $0x440] sm:$0xff]  ;;  %v514_v51 = vld [vmem:[%s14374_s1 + $0x198] sm:$0xff]  ;;  %v532_v52 = vld [vmem:[%s14374_s1 + $0x228] sm:$0xff] }
  0x41   : > { %10988 = vmatpush1.bf16.msra.mxu0 %v10987_v56  ;;  %v11003_v47 = vpack.c.bf16 %v599_v43, %v581_v42  ;;  %v11025_v54 = vpack.c.bf16 %v532_v52, %v514_v51  ;;  %v513_v55 = vld [vmem:[%s14374_s1 + $0x190] sm:$0xff]  ;;  %v531_v56 = vld [vmem:[%s14374_s1 + $0x220] sm:$0xff]  ;;  %v568_v58 = vld [vmem:[%s14374_s1 + $0x348] sm:$0xff] }
  0x42   : > { %10964 = vmatpush1.bf16.msra.mxu1 %v10963_v44  ;;  %11006 = vmatprep.subr.bf16.mxu0 %v11005_v59  ;;  %v478_v44 = vld [vmem:[%s14374_s1 + $0x78] sm:$0xff]  ;;  %v11027_v59 = vpack.c.bf16 %v531_v56, %v513_v55  ;;  %v549_v61 = vld [vmem:[%s14374_s1 + $0x2b0] sm:$0xff]  ;;  %v604_v0 = vld [vmem:[%s14374_s1 + $0x468] sm:$0xff] }
  0x43   : > { %10966 = vmatprep.subr.bf16.mxu1 %v10965_v50  ;;  %v11021_v48 = vpack.c.bf16 %v496_v46, %v478_v44  ;;  %v495_v50 = vld [vmem:[%s14374_s1 + $0x100] sm:$0xff]  ;;  %v586_v63 = vld [vmem:[%s14374_s1 + $0x3d8] sm:$0xff]  ;;  %v585_v3 = vld [vmem:[%s14374_s1 + $0x3d0] sm:$0xff] }
  0x44   : > { %9076 = vmatmul.mubr.msk.f32.vlgmr.msra.gmra.mrb[2].mxu0 %vm703_vm0, %v12444_v45  ;;  %v11023_v53 = vpack.c.bf16 %v495_v50, %v477_v49  ;;  %v11033_v2 = vpack.c.bf16 %v604_v0, %v586_v63  ;;  %v497_v33 = vld [vmem:[%s14374_s1 + $0x110] sm:$0xff]  ;;  %v516_v35 = vld [vmem:[%s14374_s1 + $0x1a8] sm:$0xff]  ;;  %v534_v36 = vld [vmem:[%s14374_s1 + $0x238] sm:$0xff] }
  0x45   : > { %11008 = vmatpush1.bf16.msra.mxu0 %v11007_v4  ;;  %1197 = vmatprep.mubr.f32.mxu0 %v12112_v7  ;;  %v603_v4 = vld [vmem:[%s14374_s1 + $0x460] sm:$0xff]  ;;  %v11041_v38 = vpack.c.bf16 %v534_v36, %v516_v35  ;;  %v570_v42 = vld [vmem:[%s14374_s1 + $0x358] sm:$0xff]  ;;  %v569_v46 = vld [vmem:[%s14374_s1 + $0x350] sm:$0xff] }
  0x46   : > { %10968 = vmatpush1.bf16.msra.mxu1 %v10967_v57  ;;  %11010 = vmatprep.subr.bf16.mxu0 %v11009_v6  ;;  %v550_v57 = vld [vmem:[%s14374_s1 + $0x2b8] sm:$0xff]  ;;  %v613_v6 = vlaneseq  ;;  %v515_v37 = vld [vmem:[%s14374_s1 + $0x1a0] sm:$0xff]  ;;  %v605_v52 = vld [vmem:[%s14374_s1 + $0x470] sm:$0xff] }
  0x47   : > { %10970 = vmatprep.subr.bf16.mxu1 %v10969_v62  ;;  %v11029_v60 = vpack.c.bf16 %v568_v58, %v550_v57  ;;  %v567_v62 = vld [vmem:[%s14374_s1 + $0x340] sm:$0xff]  ;;  %v606_v49 = vld [vmem:[%s14374_s1 + $0x478] sm:$0xff] }
  0x48   : > { %v11031_v1 = vpack.c.bf16 %v567_v62, %v549_v61  ;;  %v12757_v8 = vshrl.u32 %v613_v6, 7  ;;  %v12759_v9 = vand.u32 127, %v613_v6  ;;  %v551_v43 = vld [vmem:[%s14374_s1 + $0x2c0] sm:$0xff] }
  0x49   : > { %11012 = vmatpush1.bf16.msra.mxu0 %v11011_v17  ;;  %v587_v50 = vld [vmem:[%s14374_s1 + $0x3e0] sm:$0xff] }
  0x4a   : > { %10972 = vmatpush1.bf16.msra.mxu1 %v10971_v5  ;;  %11014 = vmatprep.subr.bf16.mxu0 %v11013_v24  ;;  %v11035_v5 = vpack.c.bf16 %v603_v4, %v585_v3  ;;  %v12765_v11 = vadd.s32 8, %v12757_v8  ;;  %v12779_v13 = vadd.s32 16, %v12757_v8  ;;  %v12782_v14 = vadd.s32 24, %v12757_v8 }
  0x4b   : > { %10990 = vmatprep.subr.bf16.mxu1 %v10989_v10  ;;  %v12762_v10 = vmul.u32 4, %v12759_v9  ;;  %v1388_v25 = vadd.s32 32, %v12757_v8  ;;  %v12885_v55 = vsub.s32 1, %v12757_v8  ;;  %v12892_v0 = vsub.s32 4, %v12757_v8 }
  0x4c   : > { %v12906_v3 = vsub.s32 2, %v12757_v8  ;;  %v12944_v36 = vsub.s32 7, %v12757_v8 }
  0x4d   : > { %9075 = vmatmul.mubr.msk.f32.vlgmr.msra.gmra.mrb[4].mxu1 %vm703_vm0, %v12444_v45  ;;  %11016 = vmatpush1.bf16.msra.mxu0 %v11015_v29  ;;  %v12768_v12 = vadd.s32 8, %v12762_v10  ;;  %vm1392_vm1 = vcmp.ge.s32.totalorder %v12757_v8, %v12762_v10  ;;  %vm1393_vm2 = vcmp.ge.s32.totalorder %v12765_v11, %v12762_v10  ;;  %vm1394_vm7 = vcmp.ge.s32.totalorder %v12779_v13, %v12762_v10  ;;  %v480_v29 = vld [vmem:[%s14374_s1 + $0x88] sm:$0xff] }
  0x4e   : > { %10992 = vmatpush1.bf16.msra.mxu1 %v10991_v18  ;;  %1126 = vmatprep.mubr.f32.mxu1 %v12112_v7  ;;  %vm1395_vm8 = vcmp.ge.s32.totalorder %v12782_v14, %v12762_v10  ;;  %vm1396_vm13 = vcmp.ge.s32.totalorder %v1388_v25, %v12762_v10 }
  0x4f   : > { %10994 = vmatprep.subr.bf16.mxu1 %v10993_v22  ;;  %11018 = vmatprep.subr.bf16.mxu0 %v11017_v31  ;;  %vm1398_vm3 = vcmp.lt.s32.totalorder %v12757_v8, %v12768_v12  ;;  %vm1399_vm4 = vcmp.lt.s32.totalorder %v12765_v11, %v12768_v12  ;;  %vm1400_vm9 = vcmp.lt.s32.totalorder %v12779_v13, %v12768_v12  ;;  %v479_v31 = vld [vmem:[%s14374_s1 + $0x80] sm:$0xff] }
  0x50   : > { %vm1403_vm5 = vmand %vm1392_vm1, %vm1398_vm3  ;;  %vm1401_vm10 = vcmp.lt.s32.totalorder %v12782_v14, %v12768_v12  ;;  %vm1402_vm14 = vcmp.lt.s32.totalorder %v1388_v25, %v12768_v12  ;;  %vm1428_vm1 = vcmask 1040384   ;;  %vm1676_vm3 = vcmask 236544  }
  0x51   : > { %11020 = vmatpush1.bf16.msra.mxu0 %v11019_v39  ;;  %vm1404_vm6 = vmand %vm1393_vm2, %vm1399_vm4  ;;  %v9081_v15 = vsel %vm1403_vm5, 1.0, %v12112_v7  ;;  %vm12114_vm2 = vmmov 0   ;;  %v533_v39 = vld [vmem:[%s14374_s1 + $0x230] sm:$0xff]  ;;  %vm2012_vm4 = vcmask 203776   ;;  %vm1381_vm5 = vcmask 392192  }
  0x52   : > { %10996 = vmatpush1.bf16.msra.mxu1 %v10995_v30  ;;  %v9082_v16 = vsel %vm1404_vm6, 1.0, %v12112_v7  ;;  %v1418_v17 = vmul.f32 0.125, %v9081_v15  ;;  %vm1405_vm11 = vmand %vm1394_vm7, %vm1400_vm9  ;;  %v498_v30 = vld [vmem:[%s14374_s1 + $0x118] sm:$0xff]  ;;  %vm2346_vm6 = vcmask 171008  }
  0x53   : > { %10998 = vmatprep.subr.bf16.mxu1 %v10997_v34  ;;  %v1419_v18 = vmul.f32 0.125, %v9082_v16  ;;  %vm1406_vm12 = vmand %vm1395_vm8, %vm1401_vm10  ;;  %v9083_v19 = vsel %vm1405_vm11, 1.0, %v12112_v7  ;;  %v11037_v32 = vpack.c.bf16 %v498_v30, %v480_v29  ;;  %v11039_v34 = vpack.c.bf16 %v497_v33, %v479_v31 }
  0x54   : > { %9078 = vmatmul.mubr.msk.f32.vlgmr.msra.gmra.mrb[4].mxu0 %vm703_vm0, %v12444_v45  ;;  %v9084_v21 = vsel %vm1406_vm12, 1.0, %v12112_v7  ;;  %v1420_v22 = vmul.f32 0.125, %v9083_v19  ;;  %vm1407_vm15 = vmand %vm1396_vm13, %vm1402_vm14  ;;  %vm2680_vm12 = vcmask 138240   ;;  %vm2778_vm14 = vcmask 400384  }
  0x55   : > { %1339 = vmatprep.mubr.f32.mxu0 %v12112_v7  ;;  %v12797_v23 = vpack.c.bf16 %v1419_v18, %v1418_v17  ;;  %v1421_v24 = vmul.f32 0.125, %v9084_v21  ;;  %v9085_v27 = vsel %vm1407_vm15, 1.0, %v12112_v7  ;;  %11038 = vmatprep.subr.bf16.mxu0 %v11037_v32  ;;  %v12933_v32 = vld [vmem:[%s14286_s2 + $0x8] sm:$0xff]  ;;  %vm2950_vm15 = vcmask 113664  }
  0x56   : > { %11000 = vmatpush1.bf16.msra.mxu1 %v10999_v40  ;;  %v12808_v28 = vmul.f32 0.125, %v9085_v27  ;;  %11040 = vmatpush1.bf16.msra.mxu0 %v11039_v34  ;;  %v11043_v40 = vpack.c.bf16 %v533_v39, %v515_v37  ;;  %v12939_v34 = vsub.s32 6, %v12757_v8  ;;  %v652_v35 = vrot.slane %v12933_v32, %v12885_v55 }
  0x57   : > { %11002 = vmatprep.subr.bf16.mxu1 %v11001_v41  ;;  %v12801_v26 = vpack.c.bf16 %v1421_v24, %v1420_v22  ;;  %11042 = vmatprep.subr.bf16.mxu0 %v11041_v38  ;;  %v552_v41 = vld [vmem:[%s14374_s1 + $0x2c8] sm:$0xff] }
  0x58   : > { %v11045_v44 = vpack.c.bf16 %v570_v42, %v552_v41 }
  0x5a   : > { %11004 = vmatpush1.bf16.msra.mxu1 %v11003_v47  ;;  %11044 = vmatpush1.bf16.msra.mxu0 %v11043_v40  ;;  %v11047_v47 = vpack.c.bf16 %v569_v46, %v551_v43 }
  0x5b   : > { %11022 = vmatprep.subr.bf16.mxu1 %v11021_v48  ;;  %11046 = vmatprep.subr.bf16.mxu0 %v11045_v44  ;;  %v588_v48 = vld [vmem:[%s14374_s1 + $0x3e8] sm:$0xff]  ;;  %s14394_s1 = smov 100  }
  0x5c   : > { %v11049_v51 = vpack.c.bf16 %v606_v49, %v588_v48 }
  0x5d   : > { %9077 = vmatmul.mubr.msk.f32.vlgmr.msra.gmra.mrb[6].mxu1 %vm703_vm0, %v12444_v45 }
  0x5e   : > { %11024 = vmatpush1.bf16.msra.mxu1 %v11023_v53  ;;  %1268 = vmatprep.mubr.f32.mxu1 %v12112_v7  ;;  %v11051_v53 = vpack.c.bf16 %v605_v52, %v587_v50  ;;  %v656_v52 = vrot.slane %v12933_v32, %v12906_v3 }
  0x5f   : > { %11026 = vmatprep.subr.bf16.mxu1 %v11025_v54  ;;  %11048 = vmatpush1.bf16.msra.mxu0 %v11047_v47  ;;  %v12877_v54 = vsub.s32 0, %v12757_v8 }
  0x60   : > { %11050 = vmatprep.subr.bf16.mxu0 %v11049_v51 }
  0x61   : > { %v648_v33 = vrot.slane %v12933_v32, %v12877_v54 }
  0x62   : > { %11028 = vmatpush1.bf16.msra.mxu1 %v11027_v59 }
  0x63   : > { %11030 = vmatprep.subr.bf16.mxu1 %v11029_v60  ;;  %11052 = vmatpush1.bf16.msra.mxu0 %v11051_v53  ;;  %v664_v53 = vrot.slane %v12933_v32, %v12892_v0 }
  0x64   : > { %11065 = vmatprep.subr.bf16.mxu0 %v12113_v20 }
  0x66   : > { %11032 = vmatpush1.bf16.msra.mxu1 %v11031_v1  ;;  %9080 = vmatmul.mubr.msk.f32.vlgmr.msra.gmra.mrb[6].mxu0 %vm703_vm0, %v12444_v45  ;;  %v12896_v1 = vsub.s32 5, %v12757_v8 }
  0x67   : > { %11034 = vmatprep.subr.bf16.mxu1 %v11033_v2  ;;  %11067 = vmatpush3.bf16.msra.mxu0 %v12797_v23 }
  0x68   : > { %9835 = vmatprep.mubr.msk.f32.mxu0 %vm12114_vm2, %v12112_v7  ;;  %11068 = vmatprep.subr.bf16.mxu0 %v12113_v20 }
  0x6a   : > { %11036 = vmatpush1.bf16.msra.mxu1 %v11035_v5  ;;  %v12912_v5 = vsub.s32 3, %v12757_v8 }
  0x6b   : > { %11053 = vmatprep.subr.bf16.mxu1 %v12113_v20  ;;  %11070 = vmatpush3.bf16.msra.mxu0 %v12801_v26 }
  0x6c   : > { %9833 = vmatprep.subr.mxu0 %v12112_v7 }
  0x6d   : > { %9079 = vmatmul.mubr.msk.f32.vlgmr.msra.gmra.mrb[8].mxu1 %vm703_vm0, %v12444_v45  ;;  %v12882_v45 = vld [vmem:[%s14286_s2] sm:$0xff]  ;;  %vm1424_vm0 = vcmask 269312  }
  0x6e   : > { %11055 = vmatpush3.bf16.msra.mxu1 %v12797_v23  ;;  %9809 = vmatprep.mubr.msk.f32.mxu1 %vm12114_vm2, %v12112_v7  ;;  %v616_v56 = vrot.slane %v12882_v45, %v12877_v54  ;;  %v620_v57 = vrot.slane %v12882_v45, %v12885_v55  ;;  %v632_v2 = vrot.slane %v12882_v45, %v12892_v0 }
  0x6f   : > { %11056 = vmatprep.subr.bf16.mxu1 %v12113_v20  ;;  %9834 = vmatpush3.msk.msra.mxu0 %vm1428_vm1, %v12808_v28  ;;  %v636_v4 = vrot.slane %v12882_v45, %v12896_v1  ;;  %v624_v17 = vrot.slane %v12882_v45, %v12906_v3  ;;  %v628_v19 = vrot.slane %v12882_v45, %v12912_v5 }
  0x70   : > { %11077 = vmatprep.subr.bf16.mxu0 %v12113_v20  ;;  %v640_v40 = vrot.slane %v12882_v45, %v12939_v34  ;;  %v644_v42 = vrot.slane %v12882_v45, %v12944_v36 }
  0x72   : > { %11058 = vmatpush3.bf16.msra.mxu1 %v12801_v26 }
  0x73   : > { %9807 = vmatprep.subr.mxu1 %v12112_v7 }
  0x76   : > { %9808 = vmatpush3.msk.msra.mxu1 %vm1428_vm1, %v12808_v28 }
  0x77   : > { %11059 = vmatprep.subr.bf16.mxu1 %v12113_v20 }
 0x100   : > { %v773_v58 = vpop.f32.mrb[0].mxu1 }
 0x101   : > { %v774_v59 = vadd.f32 %v773_v58, %v616_v56  ;;  %v775_v60 = vpop.f32.mrb[1].mxu1  ;;  %v660_v56 = vrot.slane %v12933_v32, %v12912_v5 }
 0x102   : > { %v776_v61 = vadd.f32 %v775_v60, %v620_v57 }
 0x103   : > { %v1346_v62 = vmul.f32 %v774_v59, %v774_v59 }
 0x104   : > { %v1347_v63 = vmul.f32 %v776_v61, %v776_v61 }
 0x105   : > { %1672 = vrot.lane.b32.xlu1 %v1346_v62, %s12115_s28  ;;  %1506 = vrot.lane.b32.xlu0 %v1346_v62, %s12116_s18 }
 0x106   : > { %9810 = vmatmul.mubr.msk.f32.vlgmr.msra.gmra.mrb[10].mxu1 %vm1424_vm0, %v1346_v62 }
 0x107   : > { %11061 = vmatpush3.bf16.msra.mxu1 %v12797_v23  ;;  %9822 = vmatprep.mubr.msk.f32.mxu1 %vm12114_vm2, %v12112_v7  ;;  %v915_v6 = vpop.f32.mrb[0].mxu0 }
 0x108   : > { %11062 = vmatprep.subr.bf16.mxu1 %v12113_v20  ;;  %v916_v15 = vadd.f32 %v915_v6, %v632_v2  ;;  %v917_v16 = vpop.f32.mrb[1].mxu0 }
 0x109   : > { %1674 = vrot.lane.b32.xlu1 %v1347_v63, %s12115_s28  ;;  %1588 = vrot.lane.b32.xlu0 %v1346_v62, %s14335_s16  ;;  %v918_v18 = vadd.f32 %v917_v16, %v636_v4  ;;  %s12126_s28 = smov 83   ;;  %v668_v4 = vrot.slane %v12933_v32, %v12896_v1 }
 0x10a   : > { %v1350_v21 = vmul.f32 %v916_v15, %v916_v15 }
 0x10b   : > { %11064 = vmatpush3.bf16.msra.mxu1 %v12801_v26  ;;  %v12921_v22 = vmul.f32 %v918_v18, %v918_v18 }
 0x10c   : > { %9820 = vmatprep.subr.mxu1 %v12112_v7 }
 0x10d   : > { %1842 = vrot.lane.b32.xlu1 %v1347_v63, %s12118_s20  ;;  %1758 = vrot.lane.b32.xlu0 %v1347_v63, %s14336_s21  ;;  %s14309_s20 = smov 116  }
 0x10f   : > { %9821 = vmatpush3.msk.msra.mxu1 %vm1428_vm1, %v12808_v28 }
 0x110   : > { %v844_v24 = vpop.f32.mrb[2].mxu1  ;;  %11071 = vmatprep.subr.bf16.mxu1 %v12113_v20 }
 0x111   : > { %v845_v25 = vadd.f32 %v844_v24, %v624_v17  ;;  %v846_v27 = vpop.f32.mrb[3].mxu1  ;;  %2008 = vrot.lane.b32.xlu1 %v1347_v63, %s12120_s25  ;;  %1924 = vrot.lane.b32.xlu0 %v1347_v63, %s14331_s26  ;;  %v672_v17 = vrot.slane %v12933_v32, %v12939_v34 }
 0x112   : > { %v847_v29 = vadd.f32 %v846_v27, %v628_v19 }
 0x113   : > { %v1348_v30 = vmul.f32 %v845_v25, %v845_v25 }
 0x114   : > { %v1349_v31 = vmul.f32 %v847_v29, %v847_v29 }
 0x115   : > { %2094 = vrot.lane.b32.xlu1 %v1348_v30, %s14314_s15  ;;  %2010 = vrot.lane.b32.xlu0 %v1348_v30, %s12120_s25  ;;  %s14319_s15 = smov 6  }
 0x117   : > { %v1057_v37 = vpop.f32.mrb[2].mxu0 }
 0x118   : > { %v1058_v38 = vadd.f32 %v1057_v37, %v648_v33  ;;  %v1059_v39 = vpop.f32.mrb[3].mxu0 }
 0x119   : > { %2258 = vrot.lane.b32.xlu1 %v1348_v30, %s14312_s27  ;;  %2176 = vrot.lane.b32.xlu0 %v1348_v30, %s12124_s19  ;;  %v1060_v41 = vadd.f32 %v1059_v39, %v652_v35  ;;  %s14307_s19 = smov 112   ;;  %s14317_s27 = smov 104  }
 0x11a   : > { %v1354_v43 = vmul.f32 %v1058_v38, %v1058_v38 }
 0x11b   : > { %v12950_v44 = vmul.f32 %v1060_v41, %v1060_v41 }
 0x11d   : > { %2344 = vrot.lane.b32.xlu1 %v1349_v31, %s12125_s29  ;;  %2342 = vrot.lane.b32.xlu0 %v1348_v30, %s12125_s29  ;;  %s14311_s29 = smov 14  }
 0x120   : > { %v986_v46 = vpop.f32.mrb[4].mxu1 }
 0x121   : > { %2510 = vrot.lane.b32.xlu1 %v1349_v31, %s12126_s28  ;;  %2428 = vrot.lane.b32.xlu0 %v1349_v31, %s14309_s20  ;;  %v987_v47 = vadd.f32 %v986_v46, %v640_v40  ;;  %v988_v48 = vpop.f32.mrb[5].mxu1  ;;  %s12132_s28 = smov 63   ;;  %s14347_s20 = smov 123  }
 0x122   : > { %v989_v49 = vadd.f32 %v988_v48, %v644_v42 }
 0x123   : > { %v1352_v50 = vmul.f32 %v987_v47, %v987_v47 }
 0x124   : > { %v1353_v51 = vmul.f32 %v989_v49, %v989_v49 }
 0x125   : > { %2676 = vrot.lane.b32.xlu1 %v1349_v31, %s12128_s22  ;;  %2592 = vrot.lane.b32.xlu0 %v1349_v31, %s14305_s24  ;;  %s14332_s24 = smov 93   ;;  %v13006_v31 = vld [vmem:[%s14286_s2 + $0x10] sm:$0x3] }
 0x126   : > { %v684_v49 = vrot.slane %v13006_v31, %v12885_v55 }
 0x127   : > { %v1199_v45 = vpop.f32.mrb[4].mxu0 }
 0x128   : > { %v1200_v57 = vadd.f32 %v1199_v45, %v664_v53  ;;  %v1201_v6 = vpop.f32.mrb[5].mxu0 }
 0x129   : > { %2678 = vrot.lane.b32.xlu0 %v1350_v21, %s12128_s22  ;;  %2776 = vrot.lane.b32.xlu1 %v1350_v21, %s14307_s19  ;;  %s14316_s19 = smov 74   ;;  %v1202_v15 = vadd.f32 %v1201_v6, %v668_v4 }
 0x12a   : > { %v1358_v61 = vmul.f32 %v1200_v57, %v1200_v57 }
 0x12b   : > { %v1359_v16 = vmul.f32 %v1202_v15, %v1202_v15 }
 0x12d   : > { %2946 = vrot.lane.b32.xlu1 %v1350_v21, %s14311_s29  ;;  %2862 = vrot.lane.b32.xlu0 %v1350_v21, %s12132_s28  ;;  %s12134_s28 = smov 44  }
 0x130   : > { %v1128_v58 = vpop.f32.mrb[6].mxu1 }
 0x131   : > { %3032 = vrot.lane.b32.xlu1 %v12921_v22, %s14332_s24  ;;  %2948 = vrot.lane.b32.xlu0 %v12921_v22, %s14311_s29  ;;  %v1129_v59 = vadd.f32 %v1128_v58, %v656_v52  ;;  %v1130_v60 = vpop.f32.mrb[7].mxu1  ;;  %s12137_s29 = smov 55  }
 0x132   : > { %v1131_v62 = vadd.f32 %v1130_v60, %v660_v56  ;;  %v2760_v60 = vadd.s32 40, %v12757_v8 }
 0x133   : > { %v1356_v63 = vmul.f32 %v1129_v59, %v1129_v59 }
 0x134   : > { %v1357_v2 = vmul.f32 %v1131_v62, %v1131_v62  ;;  %vm2762_vm7 = vcmp.ge.s32.totalorder %v2760_v60, %v12762_v10  ;;  %vm2764_vm8 = vcmp.lt.s32.totalorder %v2760_v60, %v12768_v12 }
 0x135   : > { %3118 = vrot.lane.b32.xlu1 %v1352_v50, %s12134_s28  ;;  %3116 = vrot.lane.b32.xlu0 %v12921_v22, %s12134_s28  ;;  %s14321_s28 = smov 85   ;;  %v676_v22 = vrot.slane %v12933_v32, %v12944_v36  ;;  %v680_v32 = vrot.slane %v13006_v31, %v12877_v54  ;;  %vm2766_vm9 = vmand %vm2762_vm7, %vm2764_vm8 }
 0x136   : > { %v9118_v4 = vsel %vm2766_vm9, 1.0, %v12112_v7  ;;  %vm12156_vm9 = vmmov 1  }
 0x137   : > { %v2772_v6 = vmul.f32 0.125, %v9118_v4 }
 0x139   : > { %3284 = vrot.lane.b32.xlu1 %v1352_v50, %s14316_s19  ;;  %3202 = vrot.lane.b32.xlu0 %v1352_v50, %s14347_s20  ;;  %s12141_s19 = smov 36   ;;  %v1341_v35 = vpop.f32.mrb[6].mxu0 }
 0x13a   : > { %v1342_v37 = vadd.f32 %v1341_v35, %v680_v32 }
 0x13c   : > { %v13018_v39 = vmul.f32 %v1342_v37, %v1342_v37 }
 0x13d   : > { %3370 = vrot.lane.b32.xlu1 %v1353_v51, %s12120_s25  ;;  %3368 = vrot.lane.b32.xlu0 %v1352_v50, %s12120_s25  ;;  %s12142_s25 = smov 115   ;;  %v1343_v50 = vpop.f32.mrb[7].mxu0 }
 0x140   : > { %v1270_v18 = vpop.f32.mrb[8].mxu1 }
 0x141   : > { %3537 = vrot.lane.b32.xlu1 %v1353_v51, %s12137_s29  ;;  %3453 = vrot.lane.b32.xlu0 %v1353_v51, %s14317_s27  ;;  %v1271_v19 = vadd.f32 %v1270_v18, %v672_v17  ;;  %s14327_s29 = smov 66   ;;  %s14320_s27 = smov 96   ;;  %v1272_v24 = vpop.f32.mrb[9].mxu1  ;;  %v13162_v17 = vpack.c.bf16 %v2772_v6, %v12808_v28 }
 0x142   : > { %v1273_v25 = vadd.f32 %v1272_v24, %v676_v22 }
 0x143   : > { %v1360_v21 = vmul.f32 %v1271_v19, %v1271_v19 }
 0x144   : > { %v1361_v27 = vmul.f32 %v1273_v25, %v1273_v25 }
 0x145   : > { %3623 = vrot.lane.b32.xlu1 %v1354_v43, %s14319_s15  ;;  %3621 = vrot.lane.b32.xlu0 %v1353_v51, %s14319_s15  ;;  %s12147_s15 = smov 53   ;;  %v1344_v51 = vadd.f32 %v1343_v50, %v684_v49 }
 0x147   : > { %v1363_v52 = vmul.f32 %v1344_v51, %v1344_v51 }
 0x149   : > { %3707 = vrot.lane.b32.xlu0 %v1354_v43, %s14321_s28  ;;  %3791 = vrot.lane.b32.xlu1 %v1354_v43, %s12141_s19  ;;  %s14338_s28 = smov 81   ;;  %1382 = vst.msk [vmem:[#allocation2 + $0x88] sm:$0xff] %vm1381_vm5, %v1363_v52  ;;  %vm3795_vm5 = vcmask 293888  }
 0x14d   : > { %3793 = vrot.lane.b32.xlu0 %v12950_v44, %s12141_s19  ;;  %3878 = vrot.lane.b32.xlu1 %v12950_v44, %s12142_s25  ;;  %s14323_s19 = smov 39   ;;  %s12146_s25 = smov 110  }
 0x150   : > { %v5404_v56 = vld [vmem:[#allocation2 + $0x88] sm:$0xff] }
 0x151   : > { %3960 = vrot.lane.b32.xlu0 %v12950_v44, %s14327_s29  ;;  %4044 = vrot.lane.b32.xlu1 %v12950_v44, %s12128_s22 }
 0x155   : > { %4046 = vrot.lane.b32.xlu0 %v1356_v63, %s12128_s22  ;;  %4136 = vrot.lane.b32.xlu1 %v1356_v63, %s14320_s27  ;;  %s12148_s22 = smov 10   ;;  %s14324_s27 = smov 67  }
 0x159   : > { %4224 = vrot.lane.b32.xlu0 %v1356_v63, %s14323_s19  ;;  %4226 = vrot.lane.b32.xlu1 %v1357_v2, %s14323_s19  ;;  %s12151_s19 = smov 24  }
 0x15d   : > { %4310 = vrot.lane.b32.xlu0 %v1357_v2, %s12146_s25  ;;  %4394 = vrot.lane.b32.xlu1 %v1357_v2, %s12147_s15  ;;  %s12155_s25 = smov 9   ;;  %v2761_v2 = vadd.s32 48, %v12757_v8 }
 0x15f   : > { %vm2763_vm10 = vcmp.ge.s32.totalorder %v2761_v2, %v12762_v10  ;;  %vm2765_vm11 = vcmp.lt.s32.totalorder %v2761_v2, %v12768_v12 }
 0x160   : > { %vm2767_vm13 = vmand %vm2763_vm10, %vm2765_vm11  ;;  %vm4138_vm11 = vcmask 465920  }
 0x161   : > { %4396 = vrot.lane.b32.xlu0 %v1358_v61, %s12147_s15  ;;  %4480 = vrot.lane.b32.xlu1 %v1358_v61, %s14336_s21  ;;  %s14325_s15 = smov 52   ;;  %v9119_v19 = vsel %vm2767_vm13, 1.0, %v12112_v7  ;;  %vm13386_vm10 = vmpackc.low %vm1428_vm1, %vm12156_vm9  ;;  %vm3533_vm13 = vcmask 80896  }
 0x165   : > { %4646 = vrot.lane.b32.xlu1 %v1358_v61, %s12148_s22  ;;  %4562 = vrot.lane.b32.xlu0 %v1358_v61, %s14324_s27  ;;  %s14330_s27 = smov 27  }
 0x169   : > { %4731 = vrot.lane.b32.xlu1 %v1359_v16, %s14338_s28  ;;  %4648 = vrot.lane.b32.xlu0 %v1359_v16, %s12148_s22 }
 0x16d   : > { %4817 = vrot.lane.b32.xlu1 %v1360_v21, %s12151_s19  ;;  %4815 = vrot.lane.b32.xlu0 %v1359_v16, %s12151_s19  ;;  %s14326_s19 = smov 109  }
 0x171   : > { %4901 = vrot.lane.b32.xlu0 %v1360_v21, %s12116_s18  ;;  %s14342_s18 = smov 38  }
 0x172   : > { %4985 = vrot.lane.b32.xlu1 %v1360_v21, %s14342_s18  ;;  %v13177_v21 = vmul.f32 0.125, %v9119_v19 }
 0x175   : > { %4987 = vrot.lane.b32.xlu0 %v1361_v27, %s14342_s18 }
 0x176   : > { %5071 = vrot.lane.b32.xlu1 %v1361_v27, %s14326_s19  ;;  %s14378_s19 = smov 120  }
 0x177   : > { %v1507_v29 = vpop.permute.xlu0 %1506  ;;  %v1673_v30 = vpop.permute.xlu1 %1672 }
 0x178   : > { %9823 = vmatmul.mubr.msk.f32.vlgmr.msra.gmra.mrb[12].mxu1 %vm1424_vm0, %v1507_v29 }
 0x179   : > { %11073 = vmatpush3.bf16.msra.mxu1 %v12797_v23  ;;  %9848 = vmatprep.mubr.msk.f32.mxu1 %vm12114_vm2, %v12112_v7 }
 0x17a   : > { %11074 = vmatprep.subr.bf16.mxu1 %v12113_v20  ;;  %5157 = vrot.lane.b32.xlu1 %v13018_v39, %s14325_s15 }
 0x17b   : > { %v1589_v33 = vpop.permute.xlu0 %1588  ;;  %v1675_v38 = vpop.permute.xlu1 %1674  ;;  %5155 = vrot.lane.b32.xlu0 %v1361_v27, %s14325_s15  ;;  %s14328_s15 = smov 89  }
 0x17c   : > { %9836 = vmatmul.mubr.msk.f32.vlgmr.msra.gmra.mrb[8].mxu0 %vm1424_vm0, %v1589_v33  ;;  %v1677_v40 = vsel %vm1676_vm3, %v1673_v30, %v1675_v38  ;;  %vm3120_vm3 = vcmask 359424  }
 0x17d   : > { %11076 = vmatpush3.bf16.msra.mxu1 %v12801_v26  ;;  %11079 = vmatpush3.bf16.msra.mxu0 %v12797_v23 }
 0x17e   : > { %11080 = vmatprep.subr.bf16.mxu0 %v12113_v20  ;;  %9846 = vmatprep.subr.mxu1 %v12112_v7 }
 0x17f   : > { %9861 = vmatprep.mubr.msk.f32.mxu0 %vm12114_vm2, %v12112_v7  ;;  %v1759_v41 = vpop.permute.xlu0 %1758  ;;  %v1843_v42 = vpop.permute.xlu1 %1842  ;;  %5323 = vrot.lane.b32.xlu1 %v13018_v39, %s14327_s29  ;;  %s14329_s29 = smov 23  }
 0x180   : > { %5241 = vrot.lane.b32.xlu0 %v13018_v39, %s14347_s20 }
 0x181   : > { %9847 = vmatpush3.msk.msra.mxu1 %vm1428_vm1, %v12808_v28  ;;  %11082 = vmatpush3.bf16.msra.mxu0 %v12801_v26 }
 0x182   : > { %9849 = vmatmul.mubr.msk.f32.vlgmr.msra.gmra.mrb[14].mxu1 %vm1424_vm0, %v1677_v40  ;;  %11083 = vmatprep.subr.bf16.mxu1 %v12113_v20 }
 0x183   : > { %11085 = vmatpush3.bf16.msra.mxu1 %v12797_v23  ;;  %9859 = vmatprep.subr.mxu0 %v12112_v7  ;;  %v1925_v43 = vpop.permute.xlu0 %1924  ;;  %v2009_v46 = vpop.permute.xlu1 %2008 }
 0x184   : > { %11086 = vmatprep.subr.bf16.mxu1 %v12113_v20  ;;  %9874 = vmatprep.mubr.msk.f32.mxu1 %vm12114_vm2, %v12112_v7 }
 0x185   : > { %9860 = vmatpush3.msk.msra.mxu0 %vm1428_vm1, %v12808_v28  ;;  %5409 = vrot.lane.b32.xlu1 %v5404_v56, %s12155_s25 }
 0x186   : > { %9862 = vmatmul.mubr.msk.f32.vlgmr.msra.gmra.mrb[10].mxu0 %vm1424_vm0, %v1759_v41  ;;  %11089 = vmatprep.subr.bf16.mxu0 %v12113_v20 }
 0x187   : > { %11088 = vmatpush3.bf16.msra.mxu1 %v12801_v26  ;;  %11091 = vmatpush3.bf16.msra.mxu0 %v12797_v23  ;;  %v2011_v44 = vpop.permute.xlu0 %2010  ;;  %v2095_v48 = vpop.permute.xlu1 %2094 }
 0x188   : > { %9872 = vmatprep.subr.mxu1 %v12112_v7  ;;  %11092 = vmatprep.subr.bf16.mxu0 %v12113_v20  ;;  %v2013_v47 = vsel %vm2012_vm4, %v2009_v46, %v2011_v44 }
 0x189   : > { %9887 = vmatprep.mubr.msk.f32.mxu0 %vm12114_vm2, %v12112_v7  ;;  %5407 = vrot.lane.b32.xlu0 %v13018_v39, %s12155_s25  ;;  %s14334_s25 = smov 31  }
 0x18b   : > { %9873 = vmatpush3.msk.msra.mxu1 %vm1428_vm1, %v12808_v28  ;;  %11094 = vmatpush3.bf16.msra.mxu0 %v12801_v26  ;;  %v2177_v53 = vpop.permute.xlu0 %2176  ;;  %v2259_v45 = vpop.permute.xlu1 %2258 }
 0x18c   : > { %9875 = vmatmul.mubr.msk.f32.vlgmr.msra.gmra.mrb[16].mxu1 %vm1424_vm0, %v1843_v42  ;;  %11095 = vmatprep.subr.bf16.mxu1 %v12113_v20 }
 0x18d   : > { %11097 = vmatpush3.bf16.msra.mxu1 %v12797_v23  ;;  %9885 = vmatprep.subr.mxu0 %v12112_v7 }
 0x18e   : > { %11098 = vmatprep.subr.bf16.mxu1 %v12113_v20  ;;  %9900 = vmatprep.mubr.msk.f32.mxu1 %vm12114_vm2, %v12112_v7 }
 0x18f   : > { %9886 = vmatpush3.msk.msra.mxu0 %vm1428_vm1, %v12808_v28  ;;  %v2343_v57 = vpop.permute.xlu0 %2342  ;;  %v2345_v58 = vpop.permute.xlu1 %2344 }
 0x190   : > { %9888 = vmatmul.mubr.msk.f32.vlgmr.msra.gmra.mrb[12].mxu0 %vm1424_vm0, %v1925_v43  ;;  %11101 = vmatprep.subr.bf16.mxu0 %v12113_v20  ;;  %v2347_v59 = vsel %vm2346_vm6, %v2343_v57, %v2345_v58 }
 0x191   : > { %11100 = vmatpush3.bf16.msra.mxu1 %v12801_v26  ;;  %11103 = vmatpush3.bf16.msra.mxu0 %v12797_v23 }
 0x192   : > { %11104 = vmatprep.subr.bf16.mxu0 %v12113_v20  ;;  %9898 = vmatprep.subr.mxu1 %v12112_v7 }
 0x193   : > { %9913 = vmatprep.mubr.msk.f32.mxu0 %vm12114_vm2, %v12112_v7  ;;  %v2429_v61 = vpop.permute.xlu0 %2428  ;;  %v2511_v62 = vpop.permute.xlu1 %2510 }
 0x195   : > { %9899 = vmatpush3.msk.msra.mxu1 %vm1428_vm1, %v12808_v28  ;;  %11106 = vmatpush3.bf16.msra.mxu0 %v12801_v26 }
 0x196   : > { %9901 = vmatmul.mubr.msk.f32.vlgmr.msra.gmra.mrb[18].mxu1 %vm1424_vm0, %v2013_v47  ;;  %11107 = vmatprep.subr.bf16.mxu1 %v12113_v20 }
 0x197   : > { %11109 = vmatpush3.bf16.msra.mxu1 %v12797_v23  ;;  %9911 = vmatprep.subr.mxu0 %v12112_v7  ;;  %v2593_v63 = vpop.permute.xlu0 %2592  ;;  %v2677_v16 = vpop.permute.xlu1 %2676 }
 0x198   : > { %11110 = vmatprep.subr.bf16.mxu1 %v12113_v20  ;;  %9926 = vmatprep.mubr.msk.f32.mxu1 %vm12114_vm2, %v12112_v7 }
 0x199   : > { %9912 = vmatpush3.msk.msra.mxu0 %vm1428_vm1, %v12808_v28 }
 0x19a   : > { %9914 = vmatmul.mubr.msk.f32.vlgmr.msra.gmra.mrb[14].mxu0 %vm1424_vm0, %v2095_v48  ;;  %11113 = vmatprep.subr.bf16.mxu0 %v12113_v20 }
 0x19b   : > { %11112 = vmatpush3.bf16.msra.mxu1 %v12801_v26  ;;  %11115 = vmatpush3.bf16.msra.mxu0 %v12797_v23  ;;  %v2679_v15 = vpop.permute.xlu0 %2678 }
 0x19c   : > { %9924 = vmatprep.subr.mxu1 %v12112_v7  ;;  %11116 = vmatprep.subr.bf16.mxu0 %v12113_v20  ;;  %v2681_v18 = vsel %vm2680_vm12, %v2677_v16, %v2679_v15 }
 0x19d   : > { %9939 = vmatprep.mubr.msk.f32.mxu0 %vm12114_vm2, %v12112_v7 }
 0x19f   : > { %9925 = vmatpush3.msk.msra.mxu1 %vm1428_vm1, %v12808_v28  ;;  %11118 = vmatpush3.bf16.msra.mxu0 %v12801_v26  ;;  %v2863_v22 = vpop.permute.xlu0 %2862 }
 0x1a0   : > { %9927 = vmatmul.mubr.msk.f32.vlgmr.msra.gmra.mrb[20].mxu1 %vm1424_vm0, %v2177_v53  ;;  %11119 = vmatprep.subr.bf16.mxu1 %v12113_v20  ;;  %v4127_v53 = vadd.s32 56, %v12757_v8 }
 0x1a1   : > { %11121 = vmatpush3.bf16.msra.mxu1 %v12797_v23  ;;  %9937 = vmatprep.subr.mxu0 %v12112_v7 }
 0x1a2   : > { %11122 = vmatprep.subr.bf16.mxu1 %v12113_v20  ;;  %9952 = vmatprep.mubr.msk.f32.mxu1 %vm12114_vm2, %v12112_v7  ;;  %vm4128_vm6 = vcmp.ge.s32.totalorder %v4127_v53, %v12762_v10  ;;  %vm4129_vm7 = vcmp.lt.s32.totalorder %v4127_v53, %v12768_v12 }
 0x1a3   : > { %9938 = vmatpush3.msk.msra.mxu0 %vm1428_vm1, %v12808_v28  ;;  %v2949_v25 = vpop.permute.xlu0 %2948  ;;  %vm4130_vm8 = vmand %vm4128_vm6, %vm4129_vm7  ;;  %vm5411_vm6 = vcmask 72704   ;;  %vm1584_vm7 = vcmask 310520  }
 0x1a4   : > { %9940 = vmatmul.mubr.msk.f32.vlgmr.msra.gmra.mrb[16].mxu0 %vm1424_vm0, %v2259_v45  ;;  %11125 = vmatprep.subr.bf16.mxu0 %v12113_v20  ;;  %v9152_v12 = vsel %vm4130_vm8, 1.0, %v12112_v7  ;;  %vm1666_vm8 = vcmask 564720  }
 0x1a5   : > { %11124 = vmatpush3.bf16.msra.mxu1 %v12801_v26  ;;  %11127 = vmatpush3.bf16.msra.mxu0 %v12797_v23  ;;  %v4133_v58 = vmul.f32 0.125, %v9152_v12 }
 0x1a6   : > { %9950 = vmatprep.subr.mxu1 %v12112_v7  ;;  %11128 = vmatprep.subr.bf16.mxu0 %v12113_v20 }
 0x1a7   : > { %9965 = vmatprep.mubr.msk.f32.mxu0 %vm12114_vm2, %v12112_v7  ;;  %v3117_v33 = vpop.permute.xlu0 %3116 }
 0x1a9   : > { %9951 = vmatpush3.msk.msra.mxu1 %vm1428_vm1, %v12808_v28  ;;  %11130 = vmatpush3.bf16.msra.mxu0 %v12801_v26 }
 0x1aa   : > { %9953 = vmatmul.mubr.msk.f32.vlgmr.msra.gmra.mrb[22].mxu1 %vm1424_vm0, %v2347_v59  ;;  %11131 = vmatprep.subr.bf16.mxu1 %v12113_v20  ;;  %v13381_v59 = vpack.c.bf16 %v4133_v58, %v13177_v21 }
 0x1ab   : > { %11133 = vmatpush3.bf16.msra.mxu1 %v12797_v23  ;;  %9963 = vmatprep.subr.mxu0 %v12112_v7  ;;  %v3203_v37 = vpop.permute.xlu0 %3202 }
 0x1ac   : > { %11134 = vmatprep.subr.bf16.mxu1 %v12113_v20  ;;  %9978 = vmatprep.mubr.msk.f32.mxu1 %vm12114_vm2, %v12112_v7 }
 0x1ad   : > { %9964 = vmatpush3.msk.msra.mxu0 %vm1428_vm1, %v12808_v28 }
 0x1ae   : > { %9966 = vmatmul.mubr.msk.f32.vlgmr.msra.gmra.mrb[18].mxu0 %vm1424_vm0, %v2429_v61  ;;  %11137 = vmatprep.subr.bf16.mxu0 %v12113_v20 }
 0x1af   : > { %11136 = vmatpush3.bf16.msra.mxu1 %v12801_v26  ;;  %11139 = vmatpush3.bf16.msra.mxu0 %v12797_v23  ;;  %v3369_v40 = vpop.permute.xlu0 %3368 }
 0x1b0   : > { %9976 = vmatprep.subr.mxu1 %v12112_v7  ;;  %11140 = vmatprep.subr.bf16.mxu0 %v12113_v20 }
 0x1b1   : > { %9991 = vmatprep.mubr.msk.f32.mxu0 %vm12114_vm2, %v12112_v7 }
 0x1b3   : > { %9977 = vmatpush3.msk.msra.mxu1 %vm1428_vm1, %v12808_v28  ;;  %11142 = vmatpush3.bf16.msra.mxu0 %v12801_v26  ;;  %v3454_v42 = vpop.permute.xlu0 %3453 }
 0x1b4   : > { %9979 = vmatmul.mubr.msk.f32.vlgmr.msra.gmra.mrb[24].mxu1 %vm1424_vm0, %v2511_v62  ;;  %11143 = vmatprep.subr.bf16.mxu1 %v12113_v20 }
 0x1b5   : > { %11145 = vmatpush3.bf16.msra.mxu1 %v12797_v23  ;;  %9989 = vmatprep.subr.mxu0 %v12112_v7 }
 0x1b6   : > { %11146 = vmatprep.subr.bf16.mxu1 %v12113_v20  ;;  %10004 = vmatprep.mubr.msk.f32.mxu1 %vm12114_vm2, %v12112_v7 }
 0x1b7   : > { %9990 = vmatpush3.msk.msra.mxu0 %vm1428_vm1, %v12808_v28  ;;  %v3622_v46 = vpop.permute.xlu0 %3621 }
 0x1b8   : > { %9992 = vmatmul.mubr.msk.f32.vlgmr.msra.gmra.mrb[20].mxu0 %vm1424_vm0, %v2593_v63  ;;  %11149 = vmatprep.subr.bf16.mxu0 %v12113_v20 }
 0x1b9   : > { %11151 = vmatpush3.bf16.msra.mxu0 %v12797_v23  ;;  %11148 = vmatpush3.bf16.msra.mxu1 %v12801_v26 }
 0x1ba   : > { %10002 = vmatprep.subr.mxu1 %v12112_v7  ;;  %11152 = vmatprep.subr.bf16.mxu0 %v12113_v20 }
 0x1bb   : > { %10021 = vmatprep.mubr.msk.f32.mxu0 %vm12114_vm2, %v12112_v7  ;;  %v3708_v48 = vpop.permute.xlu0 %3707 }
 0x1bd   : > { %11154 = vmatpush3.bf16.msra.mxu0 %v12801_v26  ;;  %10003 = vmatpush3.msk.msra.mxu1 %vm1428_vm1, %v12808_v28  ;;  %v2777_v28 = vpop.permute.xlu1 %2776 }
 0x1be   : > { %10005 = vmatmul.mubr.msk.f32.vlgmr.msra.gmra.mrb[26].mxu1 %vm1424_vm0, %v2681_v18  ;;  %11158 = vmatprep.subr.bf16.mxu1 %v12113_v20  ;;  %vm14362_vm0 = vcmask 56320  }
 0x1bf   : > { %11160 = vmatpush3.bf16.msra.mxu1 %v12797_v23  ;;  %11155 = vmatprep.subr.bf16.mxu0 %v12113_v20  ;;  %v3794_v50 = vpop.permute.xlu0 %3793 }
 0x1c0   : > { %11161 = vmatprep.subr.bf16.mxu1 %v12113_v20  ;;  %10038 = vmatprep.mubr.msk.f32.mxu1 %vm12114_vm2, %v12112_v7 }
 0x1c1   : > { %11157 = vmatpush3.bf16.msra.mxu0 %v13162_v17  ;;  %v2947_v24 = vpop.permute.xlu1 %2946 }
 0x1c2   : > { %10019 = vmatprep.subr.mxu0 %v12112_v7  ;;  %v2951_v27 = vsel %vm2950_vm15, %v2947_v24, %v2949_v25  ;;  %vm4989_vm15 = vcmask 310272  }
 0x1c3   : > { %11163 = vmatpush3.bf16.msra.mxu1 %v12801_v26  ;;  %v3961_v45 = vpop.permute.xlu0 %3960 }
 0x1c4   : > { %11164 = vmatprep.subr.bf16.mxu1 %v12113_v20 }
 0x1c5   : > { %10020 = vmatpush3.msk.msra.mxu0 %vm1428_vm1, %v13177_v21  ;;  %v3033_v29 = vpop.permute.xlu1 %3032 }
 0x1c6   : > { %10022 = vmatmul.mubr.msk.f32.vlgmr.msra.gmra.mrb[22].mxu0 %vm2778_vm14, %v2777_v28  ;;  %11167 = vmatprep.subr.bf16.mxu0 %v12113_v20 }
 0x1c7   : > { %11166 = vmatpush3.bf16.msra.mxu1 %v13162_v17  ;;  %11169 = vmatpush3.bf16.msra.mxu0 %v12797_v23  ;;  %v4047_v10 = vpop.permute.xlu0 %4046 }
 0x1c8   : > { %10036 = vmatprep.subr.mxu1 %v12112_v7  ;;  %11170 = vmatprep.subr.bf16.mxu0 %v12113_v20 }
 0x1c9   : > { %10055 = vmatprep.mubr.msk.f32.mxu0 %vm12114_vm2, %v12112_v7  ;;  %v3119_v32 = vpop.permute.xlu1 %3118 }
 0x1ca   : > { %v3121_v35 = vsel %vm3120_vm3, %v3117_v33, %v3119_v32 }
 0x1cb   : > { %10037 = vmatpush3.msk.msra.mxu1 %vm1428_vm1, %v13177_v21  ;;  %11172 = vmatpush3.bf16.msra.mxu0 %v12801_v26  ;;  %v4225_v62 = vpop.permute.xlu0 %4224 }
 0x1cc   : > { %10039 = vmatmul.mubr.msk.f32.vlgmr.msra.gmra.mrb[28].mxu1 %vm2778_vm14, %v2863_v22  ;;  %11176 = vmatprep.subr.bf16.mxu1 %v12113_v20 }
 0x1cd   : > { %11178 = vmatpush3.bf16.msra.mxu1 %v12797_v23  ;;  %11173 = vmatprep.subr.bf16.mxu0 %v12113_v20  ;;  %v3285_v38 = vpop.permute.xlu1 %3284 }
 0x1ce   : > { %11179 = vmatprep.subr.bf16.mxu1 %v12113_v20  ;;  %10072 = vmatprep.mubr.msk.f32.mxu1 %vm12114_vm2, %v12112_v7 }
 0x1cf   : > { %11175 = vmatpush3.bf16.msra.mxu0 %v13162_v17  ;;  %v4311_v4 = vpop.permute.xlu0 %4310 }
 0x1d0   : > { %10053 = vmatprep.subr.mxu0 %v12112_v7 }
 0x1d1   : > { %11181 = vmatpush3.bf16.msra.mxu1 %v12801_v26  ;;  %v3371_v39 = vpop.permute.xlu1 %3370 }
 0x1d2   : > { %11182 = vmatprep.subr.bf16.mxu1 %v12113_v20  ;;  %v3372_v41 = vsel %vm2012_vm4, %v3369_v40, %v3371_v39  ;;  %vm3625_vm4 = vcmask 48128  }
 0x1d3   : > { %10054 = vmatpush3.msk.msra.mxu0 %vm1428_vm1, %v13177_v21  ;;  %v4397_v15 = vpop.permute.xlu0 %4396 }
 0x1d4   : > { %10056 = vmatmul.mubr.msk.f32.vlgmr.msra.gmra.mrb[24].mxu0 %vm2778_vm14, %v2951_v27  ;;  %11185 = vmatprep.subr.bf16.mxu0 %v12113_v20 }
 0x1d5   : > { %11184 = vmatpush3.bf16.msra.mxu1 %v13162_v17  ;;  %11187 = vmatpush3.bf16.msra.mxu0 %v12797_v23  ;;  %v3538_v43 = vpop.permute.xlu1 %3537 }
 0x1d6   : > { %10070 = vmatprep.subr.mxu1 %v12112_v7  ;;  %11188 = vmatprep.subr.bf16.mxu0 %v12113_v20 }
 0x1d7   : > { %10089 = vmatprep.mubr.msk.f32.mxu0 %vm12114_vm2, %v12112_v7 }
 0x1d9   : > { %v1498_v30 = vpop.f32.mrb[10].mxu1  ;;  %10071 = vmatpush3.msk.msra.mxu1 %vm1428_vm1, %v13177_v21  ;;  %11190 = vmatpush3.bf16.msra.mxu0 %v12801_v26  ;;  %v3624_v44 = vpop.permute.xlu1 %3623 }
 0x1da   : > { %1503 = vst.msk [vmem:[#allocation3] sm:$0xff] %vm14362_vm0, %v1498_v30  ;;  %v9811_v31 = vpop.f32.mrb[11].mxu1  ;;  %10073 = vmatmul.mubr.msk.f32.vlgmr.msra.gmra.mrb[30].mxu1 %vm2778_vm14, %v3033_v29  ;;  %11194 = vmatprep.subr.bf16.mxu1 %v12113_v20  ;;  %v3626_v47 = vsel %vm3625_vm4, %v3622_v46, %v3624_v44  ;;  %v4563_v30 = vpop.permute.xlu0 %4562 }
 0x1db   : > { %11196 = vmatpush3.bf16.msra.mxu1 %v12797_v23  ;;  %11191 = vmatprep.subr.bf16.mxu0 %v12113_v20 }
 0x1dc   : > { %11197 = vmatprep.subr.bf16.mxu1 %v12113_v20  ;;  %10106 = vmatprep.mubr.msk.f32.mxu1 %vm12114_vm2, %v12112_v7 }
 0x1dd   : > { %11193 = vmatpush3.bf16.msra.mxu0 %v13162_v17  ;;  %v3792_v49 = vpop.permute.xlu1 %3791 }
 0x1de   : > { %10087 = vmatprep.subr.mxu0 %v12112_v7  ;;  %v3796_v51 = vsel %vm3795_vm5, %v3792_v49, %v3794_v50  ;;  %vm5159_vm5 = vcmask 424960  }
 0x1df   : > { %11199 = vmatpush3.bf16.msra.mxu1 %v12801_v26 }
 0x1e0   : > { %11200 = vmatprep.subr.bf16.mxu1 %v12113_v20 }
 0x1e1   : > { %10088 = vmatpush3.msk.msra.mxu0 %vm1428_vm1, %v13177_v21  ;;  %v3879_v52 = vpop.permute.xlu1 %3878 }
 0x1e2   : > { %10090 = vmatmul.mubr.msk.f32.vlgmr.msra.gmra.mrb[26].mxu0 %vm2778_vm14, %v3121_v35  ;;  %11203 = vmatprep.subr.bf16.mxu0 %v12113_v20 }
 0x1e3   : > { %11205 = vmatpush3.bf16.msra.mxu0 %v12797_v23  ;;  %11202 = vmatpush3.bf16.msra.mxu1 %v13162_v17 }
 0x1e4   : > { %10104 = vmatprep.subr.mxu1 %v12112_v7  ;;  %11206 = vmatprep.subr.bf16.mxu0 %v12113_v20 }
 0x1e5   : > { %10123 = vmatprep.mubr.msk.f32.mxu0 %vm12114_vm2, %v12112_v7  ;;  %v4045_v56 = vpop.permute.xlu1 %4044 }
 0x1e6   : > { %v4048_v57 = vsel %vm2680_vm12, %v4045_v56, %v4047_v10  ;;  %vm4398_vm12 = vcmask 433152  }
 0x1e7   : > { %10105 = vmatpush3.msk.msra.mxu1 %vm1428_vm1, %v13177_v21  ;;  %11208 = vmatpush3.bf16.msra.mxu0 %v12801_v26 }
 0x1e8   : > { %10107 = vmatmul.mubr.msk.f32.vlgmr.msra.gmra.mrb[32].mxu1 %vm2778_vm14, %v3203_v37  ;;  %11212 = vmatprep.subr.bf16.mxu1 %v12113_v20 }
 0x1e9   : > { %11214 = vmatpush3.bf16.msra.mxu1 %v12797_v23  ;;  %11209 = vmatprep.subr.bf16.mxu0 %v12113_v20  ;;  %v4137_v61 = vpop.permute.xlu1 %4136 }
 0x1ea   : > { %11215 = vmatprep.subr.bf16.mxu1 %v12113_v20  ;;  %10140 = vmatprep.mubr.msk.f32.mxu1 %vm12114_vm2, %v12112_v7 }
 0x1eb   : > { %11211 = vmatpush3.bf16.msra.mxu0 %v13162_v17 }
 0x1ec   : > { %10121 = vmatprep.subr.mxu0 %v12112_v7 }
 0x1ed   : > { %11217 = vmatpush3.bf16.msra.mxu1 %v12801_v26  ;;  %v4227_v63 = vpop.permute.xlu1 %4226 }
 0x1ee   : > { %11218 = vmatprep.subr.bf16.mxu1 %v12113_v20 }
 0x1ef   : > { %10122 = vmatpush3.msk.msra.mxu0 %vm1428_vm1, %v13177_v21 }
 0x1f0   : > { %10124 = vmatmul.mubr.msk.f32.vlgmr.msra.gmra.mrb[28].mxu0 %vm2778_vm14, %v3285_v38  ;;  %11221 = vmatprep.subr.bf16.mxu0 %v12113_v20  ;;  %v4649_v38 = vpop.permute.xlu0 %4648 }
 0x1f1   : > { %11220 = vmatpush3.bf16.msra.mxu1 %v13162_v17  ;;  %11223 = vmatpush3.bf16.msra.mxu0 %v12797_v23  ;;  %v4395_v6 = vpop.permute.xlu1 %4394 }
 0x1f2   : > { %10138 = vmatprep.subr.mxu1 %v12112_v7  ;;  %11224 = vmatprep.subr.bf16.mxu0 %v12113_v20  ;;  %v4399_v19 = vsel %vm4398_vm12, %v4395_v6, %v4397_v15  ;;  %vm1920_vm12 = vcmask 277720  }
 0x1f3   : > { %10157 = vmatprep.mubr.msk.f32.mxu0 %vm12114_vm2, %v12112_v7 }
 0x1f5   : > { %10139 = vmatpush3.msk.msra.mxu1 %vm1428_vm1, %v13177_v21  ;;  %11226 = vmatpush3.bf16.msra.mxu0 %v12801_v26  ;;  %v4481_v25 = vpop.permute.xlu1 %4480 }
 0x1f6   : > { %10141 = vmatmul.mubr.msk.f32.vlgmr.msra.gmra.mrb[34].mxu1 %vm2778_vm14, %v3372_v41  ;;  %11230 = vmatprep.subr.bf16.mxu1 %v12113_v20 }
 0x1f7   : > { %11232 = vmatpush3.bf16.msra.mxu1 %v12797_v23  ;;  %11227 = vmatprep.subr.bf16.mxu0 %v12113_v20 }
 0x1f8   : > { %11233 = vmatprep.subr.bf16.mxu1 %v12113_v20  ;;  %10174 = vmatprep.mubr.msk.f32.mxu1 %vm12114_vm2, %v12112_v7 }
 0x1f9   : > { %11229 = vmatpush3.bf16.msra.mxu0 %v13162_v17  ;;  %v4647_v37 = vpop.permute.xlu1 %4646 }
 0x1fa   : > { %10155 = vmatprep.subr.mxu0 %v12112_v7  ;;  %v4650_v39 = vsel %vm3533_vm13, %v4647_v37, %v4649_v38 }
 0x1fb   : > { %11235 = vmatpush3.bf16.msra.mxu1 %v12801_v26 }
 0x1fc   : > { %11236 = vmatprep.subr.bf16.mxu1 %v12113_v20 }
 0x1fd   : > { %10156 = vmatpush3.msk.msra.mxu0 %vm1428_vm1, %v13177_v21 }
 0x1fe   : > { %10158 = vmatmul.mubr.msk.f32.vlgmr.msra.gmra.mrb[30].mxu0 %vm2778_vm14, %v3454_v42  ;;  %11239 = vmatprep.subr.bf16.mxu0 %v12113_v20  ;;  %v4732_v42 = vpop.permute.xlu1 %4731 }
 0x1ff   : > { %11238 = vmatpush3.bf16.msra.mxu1 %v13162_v17  ;;  %11241 = vmatpush3.bf16.msra.mxu0 %v12797_v23 }
 0x200   : > { %10172 = vmatprep.subr.mxu1 %v12112_v7  ;;  %11242 = vmatprep.subr.bf16.mxu0 %v12113_v20 }
 0x201   : > { %10191 = vmatprep.mubr.msk.f32.mxu0 %vm12114_vm2, %v12112_v7 }
 0x202   : > { %v4818_v46 = vpop.permute.xlu1 %4817 }
 0x203   : > { %10173 = vmatpush3.msk.msra.mxu1 %vm1428_vm1, %v13177_v21  ;;  %11244 = vmatpush3.bf16.msra.mxu0 %v12801_v26 }
 0x204   : > { %10175 = vmatmul.mubr.msk.f32.vlgmr.msra.gmra.mrb[36].mxu1 %vm2778_vm14, %v3538_v43  ;;  %11248 = vmatprep.subr.bf16.mxu1 %v12113_v20 }
 0x205   : > { %11250 = vmatpush3.bf16.msra.mxu1 %v12797_v23  ;;  %11245 = vmatprep.subr.bf16.mxu0 %v12113_v20 }
 0x206   : > { %11251 = vmatprep.subr.bf16.mxu1 %v12113_v20  ;;  %10208 = vmatprep.mubr.msk.f32.mxu1 %vm12114_vm2, %v12112_v7 }
 0x207   : > { %11247 = vmatpush3.bf16.msra.mxu0 %v13162_v17 }
 0x208   : > { %10189 = vmatprep.subr.mxu0 %v12112_v7 }
 0x209   : > { %11253 = vmatpush3.bf16.msra.mxu1 %v12801_v26 }
 0x20a   : > { %11254 = vmatprep.subr.bf16.mxu1 %v12113_v20 }
 0x20b   : > { %10190 = vmatpush3.msk.msra.mxu0 %vm1428_vm1, %v13177_v21 }
 0x20c   : > { %10192 = vmatmul.mubr.msk.f32.vlgmr.msra.gmra.mrb[32].mxu0 %vm2778_vm14, %v3626_v47  ;;  %11257 = vmatprep.subr.bf16.mxu0 %v12113_v20 }
 0x20d   : > { %11259 = vmatpush3.bf16.msra.mxu0 %v12797_v23  ;;  %11256 = vmatpush3.bf16.msra.mxu1 %v13162_v17 }
 0x20e   : > { %10206 = vmatprep.subr.mxu1 %v12112_v7  ;;  %11260 = vmatprep.subr.bf16.mxu0 %v12113_v20 }
 0x20f   : > { %10225 = vmatprep.mubr.msk.f32.mxu0 %vm12114_vm2, %v12112_v7 }
 0x211   : > { %10207 = vmatpush3.msk.msra.mxu1 %vm1428_vm1, %v13177_v21  ;;  %11262 = vmatpush3.bf16.msra.mxu0 %v12801_v26 }
 0x212   : > { %10209 = vmatmul.mubr.msk.f32.vlgmr.msra.gmra.mrb[38].mxu1 %vm2778_vm14, %v3708_v48  ;;  %11266 = vmatprep.subr.bf16.mxu1 %v12113_v20  ;;  %v4816_v48 = vpop.permute.xlu0 %4815 }
 0x213   : > { %11268 = vmatpush3.bf16.msra.mxu1 %v12797_v23  ;;  %11263 = vmatprep.subr.bf16.mxu0 %v12113_v20 }
 0x214   : > { %11269 = vmatprep.subr.bf16.mxu1 %v12113_v20  ;;  %10242 = vmatprep.mubr.msk.f32.mxu1 %vm12114_vm2, %v12112_v7 }
 0x215   : > { %11265 = vmatpush3.bf16.msra.mxu0 %v13162_v17 }
 0x216   : > { %10223 = vmatprep.subr.mxu0 %v12112_v7  ;;  %v4902_v53 = vpop.permute.xlu0 %4901 }
 0x217   : > { %11271 = vmatpush3.bf16.msra.mxu1 %v12801_v26 }
 0x218   : > { %11272 = vmatprep.subr.bf16.mxu1 %v12113_v20 }
 0x219   : > { %10224 = vmatpush3.msk.msra.mxu0 %vm1428_vm1, %v13177_v21 }
 0x21a   : > { %10226 = vmatmul.mubr.msk.f32.vlgmr.msra.gmra.mrb[34].mxu0 %vm2778_vm14, %v3796_v51  ;;  %11275 = vmatprep.subr.bf16.mxu0 %v12113_v20  ;;  %v4988_v58 = vpop.permute.xlu0 %4987 }
 0x21b   : > { %11274 = vmatpush3.bf16.msra.mxu1 %v13162_v17  ;;  %11277 = vmatpush3.bf16.msra.mxu0 %v12797_v23 }
 0x21c   : > { %10240 = vmatprep.subr.mxu1 %v12112_v7  ;;  %11278 = vmatprep.subr.bf16.mxu0 %v12113_v20 }
 0x21d   : > { %10259 = vmatprep.mubr.msk.f32.mxu0 %vm12114_vm2, %v12112_v7 }
 0x21f   : > { %10241 = vmatpush3.msk.msra.mxu1 %vm1428_vm1, %v13177_v21  ;;  %11280 = vmatpush3.bf16.msra.mxu0 %v12801_v26 }
 0x220   : > { %10243 = vmatmul.mubr.msk.f32.vlgmr.msra.gmra.mrb[40].mxu1 %vm2778_vm14, %v3879_v52  ;;  %11284 = vmatprep.subr.bf16.mxu1 %v12113_v20 }
 0x221   : > { %11286 = vmatpush3.bf16.msra.mxu1 %v12797_v23  ;;  %11281 = vmatprep.subr.bf16.mxu0 %v12113_v20 }
 0x222   : > { %11287 = vmatprep.subr.bf16.mxu1 %v12113_v20  ;;  %10276 = vmatprep.mubr.msk.f32.mxu1 %vm12114_vm2, %v12112_v7 }
 0x223   : > { %11283 = vmatpush3.bf16.msra.mxu0 %v13162_v17 }
 0x224   : > { %10257 = vmatprep.subr.mxu0 %v12112_v7 }
 0x225   : > { %11289 = vmatpush3.bf16.msra.mxu1 %v12801_v26 }
 0x226   : > { %11290 = vmatprep.subr.bf16.mxu1 %v12113_v20 }
 0x227   : > { %10258 = vmatpush3.msk.msra.mxu0 %vm1428_vm1, %v13177_v21 }
 0x228   : > { %10260 = vmatmul.mubr.msk.f32.vlgmr.msra.gmra.mrb[36].mxu0 %vm2778_vm14, %v3961_v45  ;;  %11293 = vmatprep.subr.bf16.mxu0 %v12113_v20 }
 0x229   : > { %11295 = vmatpush3.bf16.msra.mxu0 %v12797_v23  ;;  %11292 = vmatpush3.bf16.msra.mxu1 %v13162_v17 }
 0x22a   : > { %10274 = vmatprep.subr.mxu1 %v12112_v7  ;;  %11296 = vmatprep.subr.bf16.mxu0 %v12113_v20 }
 0x22b   : > { %10295 = vmatprep.mubr.msk.f32.mxu0 %vm12114_vm2, %v12112_v7 }
 0x22d   : > { %11298 = vmatpush3.bf16.msra.mxu0 %v12801_v26  ;;  %10275 = vmatpush3.msk.msra.mxu1 %vm1428_vm1, %v13177_v21  ;;  %vm4228_vm1 = vcmask 318464  }
 0x22e   : > { %10277 = vmatmul.mubr.msk.f32.vlgmr.msra.gmra.mrb[42].mxu1 %vm2778_vm14, %v4048_v57  ;;  %11306 = vmatprep.subr.bf16.mxu1 %v12113_v20  ;;  %v4229_v2 = vsel %vm4228_vm1, %v4225_v62, %v4227_v63  ;;  %vm4819_vm14 = vcmask 195584   ;;  %v4986_v57 = vpop.permute.xlu1 %4985  ;;  %vm1838_vm1 = vcmask 23552  }
 0x22f   : > { %11308 = vmatpush3.bf16.msra.mxu1 %v12797_v23  ;;  %11299 = vmatprep.subr.bf16.mxu0 %v12113_v20  ;;  %v4820_v50 = vsel %vm4819_vm14, %v4816_v48, %v4818_v46  ;;  %vm2002_vm14 = vcmask 531920  }
 0x230   : > { %11309 = vmatprep.subr.bf16.mxu1 %v12113_v20  ;;  %10314 = vmatprep.mubr.msk.f32.mxu1 %vm12114_vm2, %v12112_v7 }
 0x231   : > { %11301 = vmatpush3.bf16.msra.mxu0 %v13162_v17 }
 0x232   : > { %11302 = vmatprep.subr.bf16.mxu0 %v12113_v20  ;;  %v5072_v6 = vpop.permute.xlu1 %5071 }
 0x233   : > { %11311 = vmatpush3.bf16.msra.mxu1 %v12801_v26 }
 0x234   : > { %11312 = vmatprep.subr.bf16.mxu1 %v12113_v20 }
 0x235   : > { %11305 = vmatpush3.bf16.msk.msra.mxu0 %vm13386_vm10, %v13381_v59 }
 0x236   : > { %11319 = vmatprep.subr.bf16.mxu0 %v12113_v20 }
 0x237   : > { %11314 = vmatpush3.bf16.msra.mxu1 %v13162_v17 }
 0x238   : > { %10296 = vmatmul.mubr.msk.f32.vlgmr.msra.gmra.mrb[38].mxu0 %vm4138_vm11, %v4137_v61  ;;  %11315 = vmatprep.subr.bf16.mxu1 %v12113_v20  ;;  %v4990_v61 = vsel %vm4989_vm15, %v4986_v57, %v4988_v58  ;;  %vm2090_vm15 = vcmask 786120  }
 0x239   : > { %11321 = vmatpush3.bf16.msra.mxu0 %v12797_v23  ;;  %10333 = vmatprep.mubr.msk.f32.mxu0 %vm12114_vm2, %v12112_v7 }
 0x23a   : > { %11322 = vmatprep.subr.bf16.mxu0 %v12113_v20 }
 0x23b   : > { %11318 = vmatpush3.bf16.msk.msra.mxu1 %vm13386_vm10, %v13381_v59 }
 0x23c   : > { %11332 = vmatprep.subr.bf16.mxu1 %v12113_v20 }
 0x23d   : > { %11324 = vmatpush3.bf16.msra.mxu0 %v12801_v26 }
 0x23e   : > { %10315 = vmatmul.mubr.msk.f32.vlgmr.msra.gmra.mrb[44].mxu1 %vm4138_vm11, %v4229_v2  ;;  %11325 = vmatprep.subr.bf16.mxu0 %v12113_v20 }
 0x23f   : > { %11334 = vmatpush3.bf16.msra.mxu1 %v12797_v23  ;;  %10352 = vmatprep.mubr.msk.f32.mxu1 %vm12114_vm2, %v12112_v7 }
 0x240   : > { %11335 = vmatprep.subr.bf16.mxu1 %v12113_v20 }
 0x241   : > { %11327 = vmatpush3.bf16.msra.mxu0 %v13162_v17 }
 0x242   : > { %11328 = vmatprep.subr.bf16.mxu0 %v12113_v20 }
 0x243   : > { %11337 = vmatpush3.bf16.msra.mxu1 %v12801_v26 }
 0x244   : > { %11338 = vmatprep.subr.bf16.mxu1 %v12113_v20 }
 0x245   : > { %11331 = vmatpush3.bf16.msk.msra.mxu0 %vm13386_vm10, %v13381_v59 }
 0x246   : > { %11345 = vmatprep.subr.bf16.mxu0 %v12113_v20 }
 0x247   : > { %11340 = vmatpush3.bf16.msra.mxu1 %v13162_v17 }
 0x248   : > { %10334 = vmatmul.mubr.msk.f32.vlgmr.msra.gmra.mrb[40].mxu0 %vm4138_vm11, %v4311_v4  ;;  %11341 = vmatprep.subr.bf16.mxu1 %v12113_v20 }
 0x249   : > { %11347 = vmatpush3.bf16.msra.mxu0 %v12797_v23  ;;  %10371 = vmatprep.mubr.msk.f32.mxu0 %vm12114_vm2, %v12112_v7 }
 0x24a   : > { %11348 = vmatprep.subr.bf16.mxu0 %v12113_v20 }
 0x24b   : > { %11344 = vmatpush3.bf16.msk.msra.mxu1 %vm13386_vm10, %v13381_v59  ;;  %v1576_v16 = vpop.f32.mrb[12].mxu1 }
 0x24c   : > { %1581 = vrot.lane.b32.xlu1 %v1576_v16, %s14334_s25  ;;  %v9824_v18 = vpop.f32.mrb[13].mxu1  ;;  %11358 = vmatprep.subr.bf16.mxu1 %v12113_v20  ;;  %s14340_s25 = smov 69  }
 0x24d   : > { %11350 = vmatpush3.bf16.msra.mxu0 %v12801_v26  ;;  %v5158_v18 = vpop.permute.xlu1 %5157 }
 0x24e   : > { %10353 = vmatmul.mubr.msk.f32.vlgmr.msra.gmra.mrb[46].mxu1 %vm4138_vm11, %v4399_v19  ;;  %11351 = vmatprep.subr.bf16.mxu0 %v12113_v20  ;;  %v5156_v19 = vpop.permute.xlu0 %5155 }
 0x24f   : > { %11360 = vmatpush3.bf16.msra.mxu1 %v12797_v23  ;;  %v1658_v21 = vpop.f32.mrb[8].mxu0  ;;  %10390 = vmatprep.mubr.msk.f32.mxu1 %vm12114_vm2, %v12112_v7 }
 0x250   : > { %v9837_v28 = vpop.f32.mrb[9].mxu0  ;;  %1663 = vrot.lane.b32.xlu1 %v1658_v21, %s14335_s16  ;;  %11361 = vmatprep.subr.bf16.mxu1 %v12113_v20  ;;  %v5160_v21 = vsel %vm5159_vm5, %v5156_v19, %v5158_v18  ;;  %s14351_s16 = smov 100   ;;  %vm2172_vm5 = vcmask 1040320  }
 0x251   : > { %11353 = vmatpush3.bf16.msra.mxu0 %v13162_v17 }
 0x252   : > { %11354 = vmatprep.subr.bf16.mxu0 %v12113_v20 }
 0x253   : > { %11363 = vmatpush3.bf16.msra.mxu1 %v12801_v26 }
 0x254   : > { %11364 = vmatprep.subr.bf16.mxu1 %v12113_v20 }
 0x255   : > { %v1746_v22 = vpop.f32.mrb[14].mxu1  ;;  %11357 = vmatpush3.bf16.msk.msra.mxu0 %vm13386_vm10, %v13381_v59 }
 0x256   : > { %1751 = vrot.lane.b32.xlu1 %v1746_v22, %s14332_s24  ;;  %v9850_v24 = vpop.f32.mrb[15].mxu1  ;;  %11371 = vmatprep.subr.bf16.mxu0 %v12113_v20  ;;  %s14382_s24 = smov 50  }
 0x257   : > { %11366 = vmatpush3.bf16.msra.mxu1 %v13162_v17  ;;  %v5242_v24 = vpop.permute.xlu0 %5241 }
 0x258   : > { %10372 = vmatmul.mubr.msk.f32.vlgmr.msra.gmra.mrb[42].mxu0 %vm4138_vm11, %v4481_v25  ;;  %11367 = vmatprep.subr.bf16.mxu1 %v12113_v20 }
 0x259   : > { %v1828_v27 = vpop.f32.mrb[10].mxu0  ;;  %11373 = vmatpush3.bf16.msra.mxu0 %v12797_v23  ;;  %10409 = vmatprep.mubr.msk.f32.mxu0 %vm12114_vm2, %v12112_v7 }
 0x25a   : > { %1833 = vrot.lane.b32.xlu0 %v1828_v27, %s14336_s21  ;;  %v9863_v29 = vpop.f32.mrb[11].mxu0  ;;  %11374 = vmatprep.subr.bf16.mxu0 %v12113_v20  ;;  %s14353_s21 = smov 3  }
 0x25b   : > { %11370 = vmatpush3.bf16.msk.msra.mxu1 %vm13386_vm10, %v13381_v59  ;;  %v5324_v29 = vpop.permute.xlu1 %5323 }
 0x25c   : > { %11384 = vmatprep.subr.bf16.mxu1 %v12113_v20 }
 0x25d   : > { %11376 = vmatpush3.bf16.msra.mxu0 %v12801_v26 }
 0x25e   : > { %10391 = vmatmul.mubr.msk.f32.vlgmr.msra.gmra.mrb[48].mxu1 %vm4138_vm11, %v4563_v30  ;;  %11377 = vmatprep.subr.bf16.mxu0 %v12113_v20 }
 0x25f   : > { %v1912_v31 = vpop.f32.mrb[16].mxu1  ;;  %11386 = vmatpush3.bf16.msra.mxu1 %v12797_v23  ;;  %10428 = vmatprep.mubr.msk.f32.mxu1 %vm12114_vm2, %v12112_v7 }
 0x260   : > { %1917 = vrot.lane.b32.xlu1 %v1912_v31, %s14330_s27  ;;  %v9876_v32 = vpop.f32.mrb[17].mxu1  ;;  %11387 = vmatprep.subr.bf16.mxu1 %v12113_v20  ;;  %s14381_s27 = smov 116   ;;  %v5408_v31 = vpop.permute.xlu0 %5407 }
 0x261   : > { %11379 = vmatpush3.bf16.msra.mxu0 %v13162_v17 }
 0x262   : > { %11380 = vmatprep.subr.bf16.mxu0 %v12113_v20 }
 0x263   : > { %v1994_v33 = vpop.f32.mrb[12].mxu0  ;;  %11389 = vmatpush3.bf16.msra.mxu1 %v12801_v26 }
 0x264   : > { %1999 = vrot.lane.b32.xlu0 %v1994_v33, %s14331_s26  ;;  %v9889_v35 = vpop.f32.mrb[13].mxu0  ;;  %11390 = vmatprep.subr.bf16.mxu1 %v12113_v20  ;;  %s14333_s26 = smov 19  }
 0x265   : > { %11383 = vmatpush3.bf16.msk.msra.mxu0 %vm13386_vm10, %v13381_v59 }
 0x266   : > { %11397 = vmatprep.subr.bf16.mxu0 %v12113_v20 }
 0x267   : > { %11392 = vmatpush3.bf16.msra.mxu1 %v13162_v17 }
 0x268   : > { %10410 = vmatmul.mubr.msk.f32.vlgmr.msra.gmra.mrb[44].mxu0 %vm4138_vm11, %v4650_v39  ;;  %11393 = vmatprep.subr.bf16.mxu1 %v12113_v20 }
 0x269   : > { %v2082_v40 = vpop.f32.mrb[18].mxu1  ;;  %11399 = vmatpush3.bf16.msra.mxu0 %v12797_v23  ;;  %10447 = vmatprep.mubr.msk.f32.mxu0 %vm12114_vm2, %v12112_v7 }
 0x26a   : > { %2087 = vrot.lane.b32.xlu0 %v2082_v40, %s14328_s15  ;;  %v9902_v41 = vpop.f32.mrb[19].mxu1  ;;  %11400 = vmatprep.subr.bf16.mxu0 %v12113_v20  ;;  %s14379_s15 = smov 54  }
 0x26b   : > { %11396 = vmatpush3.bf16.msk.msra.mxu1 %vm13386_vm10, %v13381_v59 }
 0x26c   : > { %11410 = vmatprep.subr.bf16.mxu1 %v12113_v20 }
 0x26d   : > { %v2164_v43 = vpop.f32.mrb[14].mxu0  ;;  %11402 = vmatpush3.bf16.msra.mxu0 %v12801_v26 }
 0x26e   : > { %v9915_v44 = vpop.f32.mrb[15].mxu0  ;;  %10429 = vmatmul.mubr.msk.f32.vlgmr.msra.gmra.mrb[50].mxu1 %vm4138_vm11, %v4732_v42  ;;  %2169 = vrot.lane.b32.xlu0 %v2164_v43, %s14378_s19 }
 0x26f   : > { %11412 = vmatpush3.bf16.msra.mxu1 %v12797_v23  ;;  %11403 = vmatprep.subr.bf16.mxu0 %v12113_v20 }
 0x270   : > { %11413 = vmatprep.subr.bf16.mxu1 %v12113_v20  ;;  %10466 = vmatprep.mubr.msk.f32.mxu1 %vm12114_vm2, %v12112_v7 }
 0x271   : > { %11405 = vmatpush3.bf16.msra.mxu0 %v13162_v17 }
 0x272   : > { %11406 = vmatprep.subr.bf16.mxu0 %v12113_v20 }
 0x273   : > { %v2246_v47 = vpop.f32.mrb[20].mxu1  ;;  %11415 = vmatpush3.bf16.msra.mxu1 %v12801_v26 }
 0x274   : > { %2251 = vrot.lane.b32.xlu0 %v2246_v47, %s14329_s29  ;;  %v9928_v49 = vpop.f32.mrb[21].mxu1  ;;  %11416 = vmatprep.subr.bf16.mxu1 %v12113_v20  ;;  %s14380_s29 = smov 85  }
 0x275   : > { %11409 = vmatpush3.bf16.msk.msra.mxu0 %vm13386_vm10, %v13381_v59 }
 0x276   : > { %11423 = vmatprep.subr.bf16.mxu0 %v12113_v20 }
 0x277   : > { %v2328_v51 = vpop.f32.mrb[16].mxu0  ;;  %11418 = vmatpush3.bf16.msra.mxu1 %v13162_v17 }
 0x278   : > { %v9941_v52 = vpop.f32.mrb[17].mxu0  ;;  %10448 = vmatmul.mubr.msk.f32.vlgmr.msra.gmra.mrb[46].mxu0 %vm4138_vm11, %v4820_v50  ;;  %2333 = vrot.lane.b32.xlu1 %v2328_v51, %s14379_s15 }
 0x279   : > { %11425 = vmatpush3.bf16.msra.mxu0 %v12797_v23  ;;  %11419 = vmatprep.subr.bf16.mxu1 %v12113_v20 }
 0x27a   : > { %11426 = vmatprep.subr.bf16.mxu0 %v12113_v20  ;;  %10485 = vmatprep.mubr.msk.f32.mxu0 %vm12114_vm2, %v12112_v7 }
 0x27b   : > { %11422 = vmatpush3.bf16.msk.msra.mxu1 %vm13386_vm10, %v13381_v59 }
 0x27c   : > { %11436 = vmatprep.subr.bf16.mxu1 %v12113_v20 }
 0x27d   : > { %v2416_v45 = vpop.f32.mrb[22].mxu1  ;;  %11428 = vmatpush3.bf16.msra.mxu0 %v12801_v26 }
 0x27e   : > { %10467 = vmatmul.mubr.msk.f32.vlgmr.msra.gmra.mrb[52].mxu1 %vm4138_vm11, %v4902_v53  ;;  %2421 = vrot.lane.b32.xlu1 %v2416_v45, %s14380_s29  ;;  %v9954_v56 = vpop.f32.mrb[23].mxu1 }
 0x27f   : > { %11438 = vmatpush3.bf16.msra.mxu1 %v12797_v23  ;;  %11429 = vmatprep.subr.bf16.mxu0 %v12113_v20 }
 0x280   : > { %11439 = vmatprep.subr.bf16.mxu1 %v12113_v20  ;;  %10504 = vmatprep.mubr.msk.f32.mxu1 %vm12114_vm2, %v12112_v7 }
 0x281   : > { %v2498_v10 = vpop.f32.mrb[18].mxu0  ;;  %11431 = vmatpush3.bf16.msra.mxu0 %v13162_v17 }
 0x282   : > { %v9967_v12 = vpop.f32.mrb[19].mxu0  ;;  %2503 = vrot.lane.b32.xlu1 %v2498_v10, %s14381_s27  ;;  %11432 = vmatprep.subr.bf16.mxu0 %v12113_v20 }
 0x283   : > { %11441 = vmatpush3.bf16.msra.mxu1 %v12801_v26 }
 0x284   : > { %11442 = vmatprep.subr.bf16.mxu1 %v12113_v20 }
 0x285   : > { %11435 = vmatpush3.bf16.msk.msra.mxu0 %vm13386_vm10, %v13381_v59 }
 0x286   : > { %11449 = vmatprep.subr.bf16.mxu0 %v12113_v20 }
 0x287   : > { %v2580_v62 = vpop.f32.mrb[24].mxu1  ;;  %11444 = vmatpush3.bf16.msra.mxu1 %v13162_v17 }
 0x288   : > { %10486 = vmatmul.mubr.msk.f32.vlgmr.msra.gmra.mrb[48].mxu0 %vm4138_vm11, %v4990_v61  ;;  %2585 = vrot.lane.b32.xlu0 %v2580_v62, %s14333_s26  ;;  %v9980_v63 = vpop.f32.mrb[25].mxu1  ;;  %s14354_s26 = smov 7  }
 0x289   : > { %11451 = vmatpush3.bf16.msra.mxu0 %v12797_v23  ;;  %11445 = vmatprep.subr.bf16.mxu1 %v12113_v20 }
 0x28a   : > { %11452 = vmatprep.subr.bf16.mxu0 %v12113_v20  ;;  %10523 = vmatprep.mubr.msk.f32.mxu0 %vm12114_vm2, %v12112_v7 }
 0x28b   : > { %v2662_v2 = vpop.f32.mrb[20].mxu0  ;;  %11448 = vmatpush3.bf16.msk.msra.mxu1 %vm13386_vm10, %v13381_v59 }
 0x28c   : > { %v9993_v4 = vpop.f32.mrb[21].mxu0  ;;  %2667 = vrot.lane.b32.xlu0 %v2662_v2, %s14382_s24  ;;  %11462 = vmatprep.subr.bf16.mxu1 %v12113_v20 }
 0x28d   : > { %11454 = vmatpush3.bf16.msra.mxu0 %v12801_v26 }
 0x28e   : > { %10505 = vmatmul.mubr.msk.f32.vlgmr.msra.gmra.mrb[54].mxu1 %vm4138_vm11, %v5072_v6  ;;  %11455 = vmatprep.subr.bf16.mxu0 %v12113_v20 }
 0x28f   : > { %11464 = vmatpush3.bf16.msra.mxu1 %v12797_v23  ;;  %10542 = vmatprep.mubr.msk.f32.mxu1 %vm12114_vm2, %v12112_v7 }
 0x290   : > { %11465 = vmatprep.subr.bf16.mxu1 %v12113_v20 }
 0x291   : > { %v2750_v15 = vpop.f32.mrb[26].mxu1  ;;  %11457 = vmatpush3.bf16.msra.mxu0 %v13162_v17 }
 0x292   : > { %2755 = vrot.lane.b32.xlu0 %v2750_v15, %s14338_s28  ;;  %v10006_v16 = vpop.f32.mrb[27].mxu1  ;;  %11458 = vmatprep.subr.bf16.mxu0 %v12113_v20  ;;  %s12166_s28 = smov 34  }
 0x293   : > { %11467 = vmatpush3.bf16.msra.mxu1 %v12801_v26 }
 0x294   : > { %11468 = vmatprep.subr.bf16.mxu1 %v12113_v20 }
 0x295   : > { %11461 = vmatpush3.bf16.msk.msra.mxu0 %vm13386_vm10, %v13381_v59 }
 0x296   : > { %11475 = vmatprep.subr.bf16.mxu0 %v12113_v20 }
 0x297   : > { %11470 = vmatpush3.bf16.msra.mxu1 %v13162_v17 }
 0x298   : > { %10524 = vmatmul.mubr.msk.f32.vlgmr.msra.gmra.mrb[50].mxu0 %vm4138_vm11, %v5160_v21  ;;  %11471 = vmatprep.subr.bf16.mxu1 %v12113_v20 }
 0x299   : > { %v2850_v28 = vpop.f32.mrb[22].mxu0  ;;  %11477 = vmatpush3.bf16.msra.mxu0 %v12797_v23  ;;  %10561 = vmatprep.mubr.msk.f32.mxu0 %vm12114_vm2, %v12112_v7 }
 0x29a   : > { %v10023_v22 = vpop.f32.mrb[23].mxu0  ;;  %2855 = vrot.lane.b32.xlu0 %v2850_v28, %s14354_s26  ;;  %11478 = vmatprep.subr.bf16.mxu0 %v12113_v20 }
 0x29b   : > { %11474 = vmatpush3.bf16.msk.msra.mxu1 %vm13386_vm10, %v13381_v59 }
 0x29c   : > { %11488 = vmatprep.subr.bf16.mxu1 %v12113_v20 }
 0x29d   : > { %11480 = vmatpush3.bf16.msra.mxu0 %v12801_v26 }
 0x29e   : > { %10543 = vmatmul.mubr.msk.f32.vlgmr.msra.gmra.mrb[56].mxu1 %vm4138_vm11, %v5242_v24  ;;  %11481 = vmatprep.subr.bf16.mxu0 %v12113_v20 }
 0x29f   : > { %v2932_v25 = vpop.f32.mrb[28].mxu1  ;;  %11490 = vmatpush3.bf16.msra.mxu1 %v12797_v23  ;;  %10580 = vmatprep.mubr.msk.f32.mxu1 %vm12114_vm2, %v12112_v7 }
 0x2a0   : > { %2937 = vrot.lane.b32.xlu0 %v2932_v25, %s14342_s18  ;;  %v10040_v27 = vpop.f32.mrb[29].mxu1  ;;  %11491 = vmatprep.subr.bf16.mxu1 %v12113_v20  ;;  %s14383_s18 = smov 96  }
 0x2a1   : > { %11483 = vmatpush3.bf16.msra.mxu0 %v13162_v17 }
 0x2a2   : > { %11484 = vmatprep.subr.bf16.mxu0 %v12113_v20 }
 0x2a3   : > { %11493 = vmatpush3.bf16.msra.mxu1 %v12801_v26  ;;  %v5410_v26 = vpop.permute.xlu1 %5409 }
 0x2a4   : > { %11494 = vmatprep.subr.bf16.mxu1 %v12113_v20 }
 0x2a5   : > { %11487 = vmatpush3.bf16.msk.msra.mxu0 %vm13386_vm10, %v13381_v59 }
 0x2a6   : > { %10588 = vmatprep.subr.mxu0 %v12112_v7 }
 0x2a7   : > { %v3020_v23 = vpop.f32.mrb[24].mxu0  ;;  %11496 = vmatpush3.bf16.msra.mxu1 %v13162_v17  ;;  %v5412_v17 = vsel %vm5411_vm6, %v5408_v31, %v5410_v26  ;;  %vm2254_vm6 = vcmask 244920  }
 0x2a8   : > { %v10057_v30 = vpop.f32.mrb[25].mxu0  ;;  %10562 = vmatmul.mubr.msk.f32.vlgmr.msra.gmra.mrb[52].mxu0 %vm4138_vm11, %v5324_v29  ;;  %3025 = vrot.lane.b32.xlu0 %v3020_v23, %s14340_s25  ;;  %s12167_s25 = smov 65  }
 0x2a9   : > { %11497 = vmatprep.subr.bf16.mxu1 %v12113_v20  ;;  %10590 = vmatprep.mubr.msk.f32.mxu0 %vm12114_vm2, %v12112_v7 }
 0x2ab   : > { %11500 = vmatpush3.bf16.msk.msra.mxu1 %vm13386_vm10, %v13381_v59  ;;  %vm1754_vm10 = vcmask 818920  }
 0x2ac   : > { %10583 = vmatprep.subr.mxu1 %v12112_v7 }
 0x2ad   : > { %v3102_v32 = vpop.f32.mrb[30].mxu1 }
 0x2ae   : > { %10581 = vmatmul.mubr.msk.f32.vlgmr.msra.gmra.mrb[58].mxu1 %vm4138_vm11, %v5412_v17  ;;  %3107 = vrot.lane.b32.xlu0 %v3102_v32, %s14351_s16  ;;  %v10074_v33 = vpop.f32.mrb[31].mxu1  ;;  %vm1836_vm11 = vcmask 1048544  }
 0x2af   : > { %10585 = vmatprep.mubr.msk.f32.mxu1 %vm12114_vm2, %v12112_v7 }
 0x2b5   : > { %v3190_v35 = vpop.f32.mrb[26].mxu0 }
 0x2b6   : > { %v10091_v37 = vpop.f32.mrb[27].mxu0  ;;  %3195 = vrot.lane.b32.xlu1 %v3190_v35, %s14353_s21 }
 0x2bb   : > { %v3272_v60 = vpop.f32.mrb[32].mxu1 }
 0x2bc   : > { %3277 = vrot.lane.b32.xlu1 %v3272_v60, %s12166_s28  ;;  %v10108_v59 = vpop.f32.mrb[33].mxu1  ;;  %s14344_s28 = smov 127  }
 0x2be   : > { %v1582_v38 = vpop.permute.xlu1 %1581 }
 0x2bf   : > { %1585 = vst.msk [vmem:[#allocation3] sm:$0xff] %vm1584_vm7, %v1582_v38  ;;  %vm2336_vm7 = vcmask 499120  }
 0x2c2   : > { %v1664_v39 = vpop.permute.xlu1 %1663 }
 0x2c3   : > { %v3354_v40 = vpop.f32.mrb[28].mxu0  ;;  %1667 = vst.msk [vmem:[#allocation3] sm:$0xff] %vm1666_vm8, %v1664_v39  ;;  %vm2424_vm8 = vcmask 753320  }
 0x2c4   : > { %v10125_v41 = vpop.f32.mrb[29].mxu0  ;;  %3359 = vrot.lane.b32.xlu1 %v3354_v40, %s12167_s25  ;;  %s14346_s25 = smov 30  }
 0x2c8   : > { %v1752_v42 = vpop.permute.xlu1 %1751 }
 0x2c9   : > { %1755 = vst.msk [vmem:[#allocation3] sm:$0xff] %vm1754_vm10, %v1752_v42  ;;  %v3441_v43 = vpop.f32.mrb[34].mxu1  ;;  %vm2506_vm10 = vcmask 1007520  }
 0x2ca   : > { %3446 = vrot.lane.b32.xlu1 %v3441_v43, %s14383_s18  ;;  %v10142_v44 = vpop.f32.mrb[35].mxu1  ;;  %s12170_s18 = smov 61  }
 0x2cc   : > { %v1834_v46 = vpop.permute.xlu0 %1833 }
 0x2cd   : > { %1837 = vst.msk [vmem:[#allocation3] sm:$0xff] %vm1836_vm11, %v1834_v46  ;;  %vm2588_vm11 = vcmask 212120  }
 0x2ce   : > { %1839 = vst.msk [vmem:[#allocation3 + $0x8] sm:$0xff] %vm1838_vm1, %v1834_v46  ;;  %vm2670_vm1 = vcmask 466320  }
 0x2d1   : > { %v3523_v47 = vpop.f32.mrb[30].mxu0 }
 0x2d2   : > { %v10159_v48 = vpop.f32.mrb[31].mxu0  ;;  %v1918_v49 = vpop.permute.xlu1 %1917  ;;  %3528 = vrot.lane.b32.xlu0 %v3523_v47, %s14344_s28  ;;  %s12171_s28 = smov 92  }
 0x2d3   : > { %1921 = vst.msk [vmem:[#allocation3 + $0x8] sm:$0xff] %vm1920_vm12, %v1918_v49  ;;  %vm2758_vm12 = vcmask 720520  }
 0x2d6   : > { %v2000_v50 = vpop.permute.xlu0 %1999 }
 0x2d7   : > { %2003 = vst.msk [vmem:[#allocation3 + $0x8] sm:$0xff] %vm2002_vm14, %v2000_v50  ;;  %v3607_v51 = vpop.f32.mrb[36].mxu1  ;;  %vm2858_vm14 = vcmask 146488  }
 0x2d8   : > { %3612 = vrot.lane.b32.xlu0 %v3607_v51, %s14346_s25  ;;  %v10176_v52 = vpop.f32.mrb[37].mxu1  ;;  %s12174_s25 = smov 88  }
 0x2dc   : > { %v2088_v53 = vpop.permute.xlu0 %2087 }
 0x2dd   : > { %2091 = vst.msk [vmem:[#allocation3 + $0x8] sm:$0xff] %vm2090_vm15, %v2088_v53  ;;  %vm2940_vm15 = vcmask 400688  }
 0x2df   : > { %v3695_v45 = vpop.f32.mrb[32].mxu0 }
 0x2e0   : > { %v10193_v56 = vpop.f32.mrb[33].mxu0  ;;  %v2170_v10 = vpop.permute.xlu0 %2169  ;;  %3700 = vrot.lane.b32.xlu0 %v3695_v45, %s12170_s18  ;;  %s12172_s18 = smov 26  }
 0x2e1   : > { %2173 = vst.msk [vmem:[#allocation3 + $0x8] sm:$0xff] %vm2172_vm5, %v2170_v10  ;;  %vm3028_vm5 = vcmask 654888  }
 0x2e5   : > { %v3777_v12 = vpop.f32.mrb[38].mxu1 }
 0x2e6   : > { %v2252_v57 = vpop.permute.xlu0 %2251  ;;  %3782 = vrot.lane.b32.xlu0 %v3777_v12, %s12171_s28  ;;  %v10210_v58 = vpop.f32.mrb[39].mxu1  ;;  %s12173_s28 = smov 57  }
 0x2e7   : > { %2255 = vst.msk [vmem:[#allocation3 + $0x10] sm:$0xff] %vm2254_vm6, %v2252_v57  ;;  %vm3110_vm6 = vcmask 909088  }
 0x2ea   : > { %v2334_v61 = vpop.permute.xlu1 %2333 }
 0x2eb   : > { %2337 = vst.msk [vmem:[#allocation3 + $0x10] sm:$0xff] %vm2336_vm7, %v2334_v61  ;;  %vm3198_vm7 = vcmask 113688  }
 0x2ed   : > { %v3865_v62 = vpop.f32.mrb[34].mxu0 }
 0x2ee   : > { %v10227_v63 = vpop.f32.mrb[35].mxu0  ;;  %3870 = vrot.lane.b32.xlu1 %v3865_v62, %s14347_s20  ;;  %s14350_s20 = smov 45  }
 0x2f0   : > { %v2422_v2 = vpop.permute.xlu1 %2421 }
 0x2f1   : > { %2425 = vst.msk [vmem:[#allocation3 + $0x10] sm:$0xff] %vm2424_vm8, %v2422_v2  ;;  %vm3280_vm8 = vcmask 367888  }
 0x2f3   : > { %v3948_v4 = vpop.f32.mrb[40].mxu1 }
 0x2f4   : > { %v2504_v6 = vpop.permute.xlu1 %2503  ;;  %3953 = vrot.lane.b32.xlu1 %v3948_v4, %s12172_s18  ;;  %v10244_v15 = vpop.f32.mrb[41].mxu1  ;;  %s12175_s18 = smov 18  }
 0x2f5   : > { %2507 = vst.msk [vmem:[#allocation3 + $0x10] sm:$0xff] %vm2506_vm10, %v2504_v6  ;;  %vm3362_vm10 = vcmask 622088  }
 0x2fa   : > { %v2586_v16 = vpop.permute.xlu0 %2585 }
 0x2fb   : > { %2589 = vst.msk [vmem:[#allocation3 + $0x18] sm:$0xff] %vm2588_vm11, %v2586_v16  ;;  %v4030_v18 = vpop.f32.mrb[36].mxu0  ;;  %vm3449_vm11 = vcmask 876288  }
 0x2fc   : > { %v10261_v19 = vpop.f32.mrb[37].mxu0  ;;  %4035 = vrot.lane.b32.xlu1 %v4030_v18, %s12173_s28  ;;  %s12176_s28 = smov 49  }
 0x2fe   : > { %v2668_v21 = vpop.permute.xlu0 %2667 }
 0x2ff   : > { %2671 = vst.msk [vmem:[#allocation3 + $0x18] sm:$0xff] %vm2670_vm1, %v2668_v21  ;;  %vm3531_vm1 = vcmask 1048568  }
 0x301   : > { %v4117_v28 = vpop.f32.mrb[42].mxu1 }
 0x302   : > { %4122 = vrot.lane.b32.xlu1 %v4117_v28, %s12174_s25  ;;  %v10278_v22 = vpop.f32.mrb[43].mxu1  ;;  %s12177_s25 = smov 80  }
 0x304   : > { %v2756_v24 = vpop.permute.xlu0 %2755 }
 0x305   : > { %2759 = vst.msk [vmem:[#allocation3 + $0x18] sm:$0xff] %vm2758_vm12, %v2756_v24  ;;  %vm3615_vm12 = vcmask 335088  }
 0x30b   : > { %v4210_v25 = vpop.f32.mrb[38].mxu0 }
 0x30c   : > { %v10297_v27 = vpop.f32.mrb[39].mxu0  ;;  %v2856_v29 = vpop.permute.xlu0 %2855  ;;  %4215 = vrot.lane.b32.xlu0 %v4210_v25, %s12175_s18  ;;  %s12178_s18 = smov 111  }
 0x30d   : > { %2859 = vst.msk [vmem:[#allocation3] sm:$0xff] %vm2858_vm14, %v2856_v29  ;;  %vm3703_vm14 = vcmask 589288  }
 0x311   : > { %v4298_v23 = vpop.f32.mrb[44].mxu1 }
 0x312   : > { %v2938_v30 = vpop.permute.xlu0 %2937  ;;  %4303 = vrot.lane.b32.xlu0 %v4298_v23, %s12176_s28  ;;  %v10316_v26 = vpop.f32.mrb[45].mxu1  ;;  %s14384_s28 = smov 14  }
 0x313   : > { %2941 = vst.msk [vmem:[#allocation3] sm:$0xff] %vm2940_vm15, %v2938_v30  ;;  %vm3785_vm15 = vcmask 843488  }
 0x31a   : > { %v3026_v31 = vpop.permute.xlu0 %3025 }
 0x31b   : > { %3029 = vst.msk [vmem:[#allocation3] sm:$0xff] %vm3028_vm5, %v3026_v31  ;;  %v4380_v17 = vpop.f32.mrb[40].mxu0  ;;  %vm3956_vm5 = vcmask 302288  }
 0x31c   : > { %v10335_v32 = vpop.f32.mrb[41].mxu0  ;;  %4385 = vrot.lane.b32.xlu0 %v4380_v17, %s12177_s25  ;;  %s12180_s25 = smov 76  }
 0x320   : > { %v3108_v33 = vpop.permute.xlu0 %3107 }
 0x321   : > { %3111 = vst.msk [vmem:[#allocation3] sm:$0xff] %vm3110_vm6, %v3108_v33  ;;  %v4468_v35 = vpop.f32.mrb[46].mxu1  ;;  %vm4038_vm6 = vcmask 556488  }
 0x322   : > { %4473 = vrot.lane.b32.xlu0 %v4468_v35, %s12178_s18  ;;  %v10354_v37 = vpop.f32.mrb[47].mxu1  ;;  %s12181_s18 = smov 41  }
 0x328   : > { %v3196_v60 = vpop.permute.xlu1 %3195 }
 0x329   : > { %3199 = vst.msk [vmem:[#allocation3 + $0x8] sm:$0xff] %vm3198_vm7, %v3196_v60  ;;  %vm4218_vm7 = vcmask 253072  }
 0x32b   : > { %v4550_v59 = vpop.f32.mrb[42].mxu0 }
 0x32c   : > { %v10373_v38 = vpop.f32.mrb[43].mxu0  ;;  %4555 = vrot.lane.b32.xlu1 %v4550_v59, %s14384_s28  ;;  %s12182_s28 = smov 72  }
 0x32e   : > { %v3278_v39 = vpop.permute.xlu1 %3277 }
 0x32f   : > { %3281 = vst.msk [vmem:[#allocation3 + $0x8] sm:$0xff] %vm3280_vm8, %v3278_v39  ;;  %vm4306_vm8 = vcmask 507272  }
 0x331   : > { %v4632_v40 = vpop.f32.mrb[48].mxu1 }
 0x332   : > { %4637 = vrot.lane.b32.xlu1 %v4632_v40, %s14350_s20  ;;  %v10392_v41 = vpop.f32.mrb[49].mxu1  ;;  %s14356_s20 = smov 11  }
 0x336   : > { %v3360_v42 = vpop.permute.xlu1 %3359 }
 0x337   : > { %3363 = vst.msk [vmem:[#allocation3 + $0x8] sm:$0xff] %vm3362_vm10, %v3360_v42  ;;  %vm4388_vm10 = vcmask 761472  }
 0x33b   : > { %v4719_v43 = vpop.f32.mrb[44].mxu0 }
 0x33c   : > { %v10411_v44 = vpop.f32.mrb[45].mxu0  ;;  %v3447_v46 = vpop.permute.xlu1 %3446  ;;  %4724 = vrot.lane.b32.xlu1 %v4719_v43, %s12180_s25  ;;  %s14385_s25 = smov 6  }
 0x33d   : > { %3450 = vst.msk [vmem:[#allocation3 + $0x8] sm:$0xff] %vm3449_vm11, %v3447_v46  ;;  %vm4476_vm11 = vcmask 1015672  }
 0x341   : > { %v13617_v47 = vpop.f32.mrb[50].mxu1 }
 0x342   : > { %v10430_v48 = vpop.f32.mrb[51].mxu1 }
 0x344   : > { %v3529_v49 = vpop.permute.xlu0 %3528 }
 0x345   : > { %3532 = vst.msk [vmem:[#allocation3 + $0x8] sm:$0xff] %vm3531_vm1, %v3529_v49  ;;  %vm4558_vm1 = vcmask 220272  }
 0x346   : > { %3534 = vst.msk [vmem:[#allocation3 + $0x10] sm:$0xff] %vm3533_vm13, %v3529_v49  ;;  %vm3873_vm13 = vcmask 1048536  }
 0x34a   : > { %v3613_v50 = vpop.permute.xlu0 %3612 }
 0x34b   : > { %3616 = vst.msk [vmem:[#allocation3 + $0x10] sm:$0xff] %vm3615_vm12, %v3613_v50  ;;  %v4889_v51 = vpop.f32.mrb[46].mxu0  ;;  %vm4640_vm12 = vcmask 474472  }
 0x34c   : > { %v10449_v52 = vpop.f32.mrb[47].mxu0  ;;  %4894 = vrot.lane.b32.xlu0 %v4889_v51, %s12148_s22  ;;  %s12183_s22 = smov 103  }
 0x351   : > { %v4971_v53 = vpop.f32.mrb[52].mxu1 }
 0x352   : > { %v3701_v45 = vpop.permute.xlu0 %3700  ;;  %4976 = vrot.lane.b32.xlu0 %v4971_v53, %s12181_s18  ;;  %v10468_v56 = vpop.f32.mrb[53].mxu1  ;;  %s14349_s18 = smov 37  }
 0x353   : > { %3704 = vst.msk [vmem:[#allocation3 + $0x10] sm:$0xff] %vm3703_vm14, %v3701_v45  ;;  %vm4727_vm14 = vcmask 728672  }
 0x358   : > { %v3783_v10 = vpop.permute.xlu0 %3782 }
 0x359   : > { %3786 = vst.msk [vmem:[#allocation3 + $0x10] sm:$0xff] %vm3785_vm15, %v3783_v10  ;;  %vm4897_vm15 = vcmask 187472  }
 0x35b   : > { %v5059_v12 = vpop.f32.mrb[48].mxu0 }
 0x35c   : > { %v10487_v57 = vpop.f32.mrb[49].mxu0  ;;  %5064 = vrot.lane.b32.xlu0 %v5059_v12, %s12182_s28  ;;  %s12185_s28 = smov 68  }
 0x360   : > { %v3871_v58 = vpop.permute.xlu1 %3870 }
 0x361   : > { %3874 = vst.msk [vmem:[#allocation3 + $0x10] sm:$0xff] %vm3873_vm13, %v3871_v58  ;;  %v5141_v61 = vpop.f32.mrb[54].mxu1  ;;  %vm4979_vm13 = vcmask 441672  }
 0x362   : > { %3875 = vst.msk [vmem:[#allocation3 + $0x18] sm:$0xff] %vm3625_vm4, %v3871_v58  ;;  %5146 = vrot.lane.b32.xlu0 %v5141_v61, %s12183_s22  ;;  %v10506_v62 = vpop.f32.mrb[55].mxu1  ;;  %vm4125_vm4 = vcmask 810688   ;;  %s12186_s22 = smov 99  }
 0x366   : > { %v3954_v63 = vpop.permute.xlu1 %3953 }
 0x367   : > { %3957 = vst.msk [vmem:[#allocation3 + $0x18] sm:$0xff] %vm3956_vm5, %v3954_v63  ;;  %vm5067_vm5 = vcmask 695872  }
 0x36b   : > { %v5229_v2 = vpop.f32.mrb[50].mxu0 }
 0x36c   : > { %v10525_v4 = vpop.f32.mrb[51].mxu0  ;;  %5234 = vrot.lane.b32.xlu1 %v5229_v2, %s14385_s25  ;;  %s12187_s25 = smov 107  }
 0x36d   : > { %v5521_v4 = vld [vmem:[%s14287_s3] sm:$0xf] }
 0x36e   : > { %v4036_v6 = vpop.permute.xlu1 %4035 }
 0x36f   : > { %4039 = vst.msk [vmem:[#allocation3 + $0x18] sm:$0xff] %vm4038_vm6, %v4036_v6  ;;  %vm5149_vm6 = vcmask 950072  }
 0x371   : > { %v5311_v15 = vpop.f32.mrb[56].mxu1 }
 0x372   : > { %5316 = vrot.lane.b32.xlu1 %v5311_v15, %s14349_s18  ;;  %v10544_v16 = vpop.f32.mrb[57].mxu1  ;;  %s14388_s18 = smov 104  }
 0x374   : > { %v4123_v18 = vpop.permute.xlu1 %4122 }
 0x375   : > { %4126 = vst.msk [vmem:[#allocation3 + $0x18] sm:$0xff] %vm4125_vm4, %v4123_v18  ;;  %vm5237_vm4 = vcmask 154672  }
 0x37b   : > { %v5393_v19 = vpop.f32.mrb[52].mxu0 }
 0x37c   : > { %v10563_v21 = vpop.f32.mrb[53].mxu0  ;;  %5398 = vrot.lane.b32.xlu1 %v5393_v19, %s12185_s28  ;;  %s14352_s28 = smov 73  }
 0x37e   : > { %v4216_v28 = vpop.permute.xlu0 %4215 }
 0x37f   : > { %4219 = vst.msk [vmem:[#allocation3] sm:$0xff] %vm4218_vm7, %v4216_v28  ;;  %vm5319_vm7 = vcmask 408872   ;;  %v5597_v28 = vld [vmem:[%s14288_s4] sm:$0xff] }
 0x381   : > { %v5481_v22 = vpop.f32.mrb[58].mxu1 }
 0x382   : > { %5486 = vrot.lane.b32.xlu1 %v5481_v22, %s12186_s22  ;;  %v10582_v24 = vpop.f32.mrb[59].mxu1  ;;  %s14386_s22 = smov 38  }
 0x384   : > { %v4304_v25 = vpop.permute.xlu0 %4303 }
 0x385   : > { %4307 = vst.msk [vmem:[#allocation3] sm:$0xff] %vm4306_vm8, %v4304_v25  ;;  %vm5401_vm8 = vcmask 663072  }
 0x386   : > { %4806 = vrot.lane.b32.xlu1 %v13617_v47, %s12187_s25  ;;  %s14387_s25 = smov 69  }
 0x38e   : > { %v4386_v27 = vpop.permute.xlu0 %4385 }
 0x38f   : > { %4389 = vst.msk [vmem:[#allocation3] sm:$0xff] %vm4388_vm10, %v4386_v27  ;;  %vm5489_vm10 = vcmask 917272   ;;  %v12188_v27 = vmov 0  }
 0x390   : > { %11919 = vset.pattern.permute.xlu0 %v12188_v27 }
 0x394   : > { %v4474_v29 = vpop.permute.xlu0 %4473 }
 0x395   : > { %4477 = vst.msk [vmem:[#allocation3] sm:$0xff] %vm4476_vm11, %v4474_v29  ;;  %vm4809_vm11 = vcmask 982872  }
 0x39c   : > { %v5491_v39 = vld [vmem:[#allocation3] sm:$0xff] }
 0x39d   : > { %12010 = vlog2.f32 %v5491_v39 }
 0x39e   : > { %v4556_v23 = vpop.permute.xlu1 %4555 }
 0x39f   : > { %4559 = vst.msk [vmem:[#allocation3 + $0x8] sm:$0xff] %vm4558_vm1, %v4556_v23  ;;  %vm14361_vm1 = vcmask 916480  }
 0x3a4   : > { %v4638_v30 = vpop.permute.xlu1 %4637 }
 0x3a5   : > { %4641 = vst.msk [vmem:[#allocation3 + $0x8] sm:$0xff] %vm4640_vm12, %v4638_v30  ;;  %vm14363_vm12 = vcmask 64512  }
 0x3a7   : > { %v12011_v43 = vpop.eup %12010 }
 0x3a8   : > { %v5496_v48 = vmul.f32 0.6931472, %v12011_v43 }
 0x3aa   : > { %v5503_v45 = vmul.f32 0.999995, %v5496_v48 }
 0x3ae   : > { %v4725_v26 = vpop.permute.xlu1 %4724 }
 0x3af   : > { %4728 = vst.msk [vmem:[#allocation3 + $0x8] sm:$0xff] %vm4727_vm14, %v4725_v26  ;;  %vm14360_vm14 = vcmask 1043456  }
 0x3be   : > { %v4895_v31 = vpop.permute.xlu0 %4894 }
 0x3bf   : > { %4898 = vst.msk [vmem:[#allocation3 + $0x10] sm:$0xff] %vm4897_vm15, %v4895_v31  ;;  %vm5669_vm15 = vcmask 31744  }
 0x3c4   : > { %v4977_v17 = vpop.permute.xlu0 %4976 }
 0x3c5   : > { %4980 = vst.msk [vmem:[#allocation3 + $0x10] sm:$0xff] %vm4979_vm13, %v4977_v17 }
 0x3ce   : > { %v5065_v32 = vpop.permute.xlu0 %5064 }
 0x3cf   : > { %5068 = vst.msk [vmem:[#allocation3 + $0x10] sm:$0xff] %vm5067_vm5, %v5065_v32  ;;  %vm5900_vm5 = vcmask 302080  }
 0x3d0   : > { %5904 = vst.msk [vmem:[#allocation4 + $0x18] sm:$0xff] %vm5900_vm5, %v12112_v7  ;;  %5901 = vst.msk [vmem:[#allocation4] sm:$0xff] %vm5900_vm5, %v12112_v7 }
 0x3d1   : > { %5902 = vst.msk [vmem:[#allocation4 + $0x8] sm:$0xff] %vm5900_vm5, %v12112_v7  ;;  %5903 = vst.msk [vmem:[#allocation4 + $0x10] sm:$0xff] %vm5900_vm5, %v12112_v7 }
 0x3d2   : > { %5905 = vst.msk [vmem:[#allocation4 + $0x20] sm:$0xff] %vm5900_vm5, %v12112_v7 }
 0x3d4   : > { %v5147_v33 = vpop.permute.xlu0 %5146 }
 0x3d5   : > { %5150 = vst.msk [vmem:[#allocation3 + $0x10] sm:$0xff] %vm5149_vm6, %v5147_v33  ;;  %vm5906_vm6 = vcmask 297984  }
 0x3d6   : > { %5907 = vst.msk [vmem:[#allocation4 + $0x28] sm:$0xf] %vm5906_vm6, %v12112_v7 }
 0x3dc   : > { %v5493_v40 = vld [vmem:[#allocation3 + $0x10] sm:$0xff] }
 0x3dd   : > { %12012 = vlog2.f32 %v5493_v40 }
 0x3de   : > { %v5235_v35 = vpop.permute.xlu1 %5234 }
 0x3df   : > { %5238 = vst.msk [vmem:[#allocation3 + $0x18] sm:$0xff] %vm5237_vm4, %v5235_v35  ;;  %vm5912_vm4 = vcmask 270360  }
 0x3e4   : > { %v5317_v37 = vpop.permute.xlu1 %5316 }
 0x3e5   : > { %5320 = vst.msk [vmem:[#allocation3 + $0x18] sm:$0xff] %vm5319_vm7, %v5317_v37  ;;  %vm5988_vm7 = vcmask 89088  }
 0x3e7   : > { %v12013_v44 = vpop.eup %12012 }
 0x3e8   : > { %v5500_v49 = vmul.f32 0.6931472, %v12013_v44 }
 0x3ea   : > { %v5505_v10 = vmul.f32 0.999995, %v5500_v49 }
 0x3ee   : > { %v5399_v60 = vpop.permute.xlu1 %5398 }
 0x3ef   : > { %5402 = vst.msk [vmem:[#allocation3 + $0x18] sm:$0xff] %vm5401_vm8, %v5399_v60  ;;  %vm6029_vm8 = vcmask 121856  }
 0x3f4   : > { %v5487_v59 = vpop.permute.xlu1 %5486 }
 0x3f5   : > { %5490 = vst.msk [vmem:[#allocation3 + $0x18] sm:$0xff] %vm5489_vm10, %v5487_v59  ;;  %vm13761_vm10 = vmpackc.low %vm14360_vm14, %vm12156_vm9 }
 0x3f8   : > { %v4807_v38 = vpop.permute.xlu1 %4806 }
 0x3f9   : > { %4810 = vst.msk [vmem:[#allocation3 + $0x8] sm:$0xff] %vm4809_vm11, %v4807_v38 }
 0x3fc   : > { %v5494_v41 = vld [vmem:[#allocation3 + $0x18] sm:$0xff] }
 0x3fd   : > { %12014 = vlog2.f32 %v5494_v41 }
 0x400   : > { %v5492_v42 = vld [vmem:[#allocation3 + $0x8] sm:$0xff] }
 0x401   : > { %12016 = vlog2.f32 %v5492_v42 }
 0x407   : > { %v12015_v46 = vpop.eup %12014 }
 0x408   : > { %v5502_v47 = vmul.f32 0.6931472, %v12015_v46 }
 0x40a   : > { %v13625_v50 = vmul.f32 0.999995, %v5502_v47 }
 0x40b   : > { %v12017_v51 = vpop.eup %12016 }
 0x40c   : > { %v5498_v52 = vmul.f32 0.6931472, %v12017_v51  ;;  %v5515_v53 = vsel %vm14361_vm1, %v13625_v50, -inf  ;;  %v5510_v63 = vsel %vm14361_vm1, %v13625_v50, 0.0 }
 0x40d   : > { %v5517_v57 = vmax.f32 %v5505_v10, %v5515_v53 }
 0x40e   : > { %v5504_v56 = vmul.f32 0.999995, %v5498_v52 }
 0x410   : > { %v5516_v12 = vmax.f32 %v5503_v45, %v5504_v56  ;;  %v5507_v58 = vadd.f32 %v5504_v56, %v5503_v45 }
 0x412   : > { %v5518_v61 = vmax.f32 %v5516_v12, %v5517_v57  ;;  %v5508_v62 = vadd.f32 %v5507_v58, %v5505_v10 }
 0x414   : > { %5519 = vmax.xlane.f32.xlu1 %v5518_v61  ;;  %v5511_v2 = vadd.f32 %v5510_v63, %v5508_v62 }
 0x416   : > { %5512 = vadd.xlane.f32.xlu0 %v5511_v2 }
 0x4a1   : > { %v5520_v6 = vpop.xlane.xlu1 %5519 }
 0x4a2   : > { %10589 = vmatpush3.msra.mxu0 %v5520_v6 }
 0x4a3   : > { %10591 = vmatmul.mubr.msk.f32.vlgmr.msra.gmra.mrb[54].mxu0 %vm14363_vm12, %v5521_v4  ;;  %v5513_v15 = vpop.xlane.xlu0 %5512 }
 0x4a4   : > { %v5514_v16 = vmul.f32 0.002016129, %v5513_v15 }
 0x4a6   : > { %10584 = vmatpush3.msra.mxu1 %v5514_v16 }
 0x4a7   : > { %10586 = vmatmul.mubr.msk.f32.vlgmr.msra.gmra.mrb[60].mxu1 %vm14363_vm12, %v5521_v4  ;;  %10593 = vmatprep.subr.mxu1 %v12112_v7 }
 0x4a8   : > { %10595 = vmatprep.mubr.msk.f32.mxu1 %vm12114_vm2, %v12112_v7 }
 0x576   : > { %v5664_v18 = vpop.f32.mrb[54].mxu0 }
 0x577   : > { %v5668_v19 = vmax.f32 %v5664_v18, 0.0  ;;  %v10592_v21 = vpop.f32.mrb[55].mxu0 }
 0x579   : > { %10594 = vmatpush3.msk.msra.mxu1 %vm14360_vm14, %v5668_v19 }
 0x57a   : > { %v5592_v22 = vpop.f32.mrb[60].mxu1  ;;  %10596 = vmatmul.mubr.msk.f32.vlgmr.msra.gmra.mrb[62].mxu1 %vm5669_vm15, %v5597_v28  ;;  %10598 = vmatprep.subr.mxu1 %v12112_v7 }
 0x57b   : > { %v5596_v24 = vmax.f32 %v5592_v22, 0.0  ;;  %v10587_v25 = vpop.f32.mrb[61].mxu1  ;;  %10600 = vmatprep.mubr.msk.f32.mxu1 %vm12114_vm2, %v12112_v7 }
 0x57d   : > { %10599 = vmatpush3.msk.msra.mxu1 %vm14360_vm14, %v5596_v24 }
 0x57e   : > { %11599 = vmatprep.subr.bf16.mxu1 %v12113_v20 }
 0x582   : > { %10601 = vmatmul.mubr.msk.f32.vlgmr.msra.gmra.mrb[62].mxu1 %vm5669_vm15, %v5597_v28 }
 0x583   : > { %10716 = vmatprep.mubr.msk.f32.mxu1 %vm12114_vm2, %v12112_v7 }
 0x655   : > { %v5816_v29 = vpop.f32.mrb[62].mxu1 }
 0x656   : > { %v5820_v23 = vsub.f32 0.0, %v5816_v29  ;;  %v5826_v30 = vmul.f32 1.442695, %v5816_v29  ;;  %v10602_v26 = vpop.f32.mrb[63].mxu1  ;;  %vm5831_vm13 = vcmp.ge.f32.partialorder %v5816_v29, 0.0 }
 0x658   : > { %v5821_v31 = vmul.f32 1.442695, %v5820_v23  ;;  %12018 = vpow2.f32 %v5826_v30 }
 0x65a   : > { %12020 = vpow2.f32 %v5821_v31 }
 0x662   : > { %v12019_v17 = vpop.eup %12018 }
 0x663   : > { %v5828_v32 = vadd.f32 1.0, %v12019_v17 }
 0x664   : > { %v12021_v33 = vpop.eup %12020 }
 0x665   : > { %v5823_v35 = vadd.f32 1.0, %v12021_v33  ;;  %12022 = vrcp.f32 %v5828_v32 }
 0x667   : > { %12024 = vrcp.f32 %v5823_v35 }
 0x66f   : > { %v12023_v37 = vpop.eup %12022 }
 0x670   : > { %v5830_v60 = vmul.f32 %v12023_v37, %v12019_v17 }
 0x671   : > { %v12025_v59 = vpop.eup %12024 }
 0x672   : > { %v5832_v38 = vsel %vm5831_vm13, %v12025_v59, %v5830_v60 }
 0x673   : > { %5835 = vperm.xlu0 %11919, %v5832_v38  }
 0x6f2   : > { %v5836_v39 = vpop.permute.xlu0 %5835 }
 0x6f3   : > { %v13652_v40 = vmul.f32 %v5836_v39, %v5503_v45  ;;  %v13654_v41 = vmul.f32 %v5836_v39, %v5504_v56  ;;  %v5840_v42 = vmul.f32 %v5836_v39, %v5505_v10  ;;  %v5841_v43 = vmul.f32 %v5836_v39, %v13625_v50 }
 0x6f5   : > { %5842 = vst [vmem:[#allocation3] sm:$0xff] %v13652_v40  ;;  %5843 = vst [vmem:[#allocation3 + $0x8] sm:$0xff] %v13654_v41  ;;  %v5846_v44 = vrot.slane %v13652_v40, 4  ;;  %v5852_v46 = vrot.slane %v13654_v41, 4  ;;  %v5858_v51 = vrot.slane %v5840_v42, 4  ;;  %v5893_v61 = vsel %vm14361_vm1, %v5841_v43, -inf }
 0x6f6   : > { %5844 = vst [vmem:[#allocation3 + $0x10] sm:$0xff] %v5840_v42  ;;  %5845 = vst.msk [vmem:[#allocation3 + $0x18] sm:$0xff] %vm14361_vm1, %v5841_v43  ;;  %v5894_v63 = vrot.slane %v5893_v61, 4  ;;  %v5864_v24 = vsel %vm14361_vm1, %v5841_v43, 0.0 }
 0x6f7   : > { %v5882_v47 = vmax.f32 %v13654_v41, %v5852_v46  ;;  %v5876_v48 = vmax.f32 %v13652_v40, %v5846_v44  ;;  %v5888_v57 = vmax.f32 %v5840_v42, %v5858_v51  ;;  %v5847_v6 = vadd.f32 %v5846_v44, %v13652_v40 }
 0x6f8   : > { %v5895_v4 = vmax.f32 %v5893_v61, %v5894_v63  ;;  %v5853_v19 = vadd.f32 %v5852_v46, %v13654_v41  ;;  %v5859_v25 = vadd.f32 %v5858_v51, %v5840_v42  ;;  %v5865_v30 = vrot.slane %v5864_v24, 4 }
 0x6f9   : > { %v5883_v49 = vrot.slane %v5882_v47, 2  ;;  %v5877_v50 = vrot.slane %v5876_v48, 2  ;;  %v5889_v58 = vrot.slane %v5888_v57, 2  ;;  %v5848_v18 = vrot.slane %v5847_v6, 2 }
 0x6fa   : > { %v5896_v16 = vrot.slane %v5895_v4, 2  ;;  %v5854_v22 = vrot.slane %v5853_v19, 2  ;;  %v5860_v26 = vrot.slane %v5859_v25, 2  ;;  %v5866_v33 = vadd.f32 %v5865_v30, %v5864_v24 }
 0x6fb   : > { %v5884_v52 = vmax.f32 %v5882_v47, %v5883_v49  ;;  %v5878_v53 = vmax.f32 %v5876_v48, %v5877_v50  ;;  %v5890_v62 = vmax.f32 %v5888_v57, %v5889_v58  ;;  %v5849_v28 = vadd.f32 %v5848_v18, %v5847_v6 }
 0x6fc   : > { %v5897_v21 = vmax.f32 %v5895_v4, %v5896_v16  ;;  %v5855_v23 = vadd.f32 %v5854_v22, %v5853_v19  ;;  %v5861_v60 = vadd.f32 %v5860_v26, %v5859_v25  ;;  %v5867_v59 = vrot.slane %v5866_v33, 2 }
 0x6fd   : > { %v5885_v45 = vrot.slane %v5884_v52, 1  ;;  %v5879_v56 = vrot.slane %v5878_v53, 1  ;;  %v5891_v2 = vrot.slane %v5890_v62, 1  ;;  %v5850_v29 = vrot.slane %v5849_v28, 1 }
 0x6fe   : > { %v5898_v27 = vrot.slane %v5897_v21, 1  ;;  %v5856_v32 = vrot.slane %v5855_v23, 1  ;;  %v5862_v39 = vrot.slane %v5861_v60, 1  ;;  %v5868_v42 = vadd.f32 %v5867_v59, %v5866_v33 }
 0x6ff   : > { %v5886_v10 = vmax.f32 %v5884_v52, %v5885_v45  ;;  %v5880_v12 = vmax.f32 %v5878_v53, %v5879_v56  ;;  %v5892_v15 = vmax.f32 %v5890_v62, %v5891_v2  ;;  %v5851_v17 = vadd.f32 %v5850_v29, %v5849_v28 }
 0x700   : > { %v5899_v31 = vmax.f32 %v5897_v21, %v5898_v27  ;;  %v5857_v37 = vadd.f32 %v5856_v32, %v5855_v23  ;;  %v5863_v43 = vadd.f32 %v5862_v39, %v5861_v60  ;;  %v5869_v44 = vrot.slane %v5868_v42, 1 }
 0x701   : > { %5954 = vrot.lane.b32.xlu1 %v5886_v10, %s14354_s26  ;;  %5952 = vrot.lane.b32.xlu0 %v5880_v12, %s14354_s26  ;;  %s14359_s26 = smov 46   ;;  %v5871_v35 = vmul.f32 0.125, %v5851_v17 }
 0x702   : > { %v5872_v38 = vmul.f32 0.125, %v5857_v37  ;;  %v5873_v46 = vmul.f32 0.125, %v5863_v43  ;;  %v5870_v47 = vadd.f32 %v5869_v44, %v5868_v42 }
 0x704   : > { %v5874_v48 = vmul.f32 0.125, %v5870_v47 }
 0x705   : > { %5923 = vrot.lane.b32.xlu1 %v5880_v12, %s14351_s16  ;;  %5915 = vrot.lane.b32.xlu0 %v5880_v12, %s14353_s21  ;;  %s12191_s16 = smov 15   ;;  %s12193_s21 = smov 42  }
 0x709   : > { %5939 = vrot.lane.b32.xlu1 %v5880_v12, %s14386_s22  ;;  %5931 = vrot.lane.b32.xlu0 %v5880_v12, %s14387_s25 }
 0x70d   : > { %5971 = vrot.lane.b32.xlu1 %v5886_v10, %s14352_s28  ;;  %5963 = vrot.lane.b32.xlu0 %v5886_v10, %s14388_s18  ;;  %s14358_s28 = smov 108  }
 0x711   : > { %5993 = vrot.lane.b32.xlu1 %v5886_v10, %s14356_s20  ;;  %5995 = vrot.lane.b32.xlu0 %v5892_v15, %s14356_s20  ;;  %s12195_s20 = smov 77  }
 0x715   : > { %6034 = vrot.lane.b32.xlu1 %v5892_v15, %s12191_s16  ;;  %6004 = vrot.lane.b32.xlu0 %v5892_v15, %s14358_s28  ;;  %s14389_s28 = smov 7  }
 0x719   : > { %5979 = vrot.lane.b32.xlu1 %v5886_v10, %s12193_s21  ;;  %6020 = vrot.lane.b32.xlu0 %v5892_v15, %s14359_s26  ;;  %s14390_s26 = smov 11  }
 0x71d   : > { %6012 = vrot.lane.b32.xlu1 %v5892_v15, %s12195_s20  ;;  %6036 = vrot.lane.b32.xlu0 %v5899_v31, %s12191_s16 }
 0x721   : > { %5927 = vrot.lane.b32.xlu0 %v5871_v35, %s14387_s25  ;;  %5944 = vrot.lane.b32.xlu1 %v5871_v35, %s14389_s28  ;;  %s14391_s25 = smov 112  }
 0x725   : > { %5959 = vrot.lane.b32.xlu0 %v5872_v38, %s14388_s18  ;;  %5946 = vrot.lane.b32.xlu1 %v5872_v38, %s14389_s28  ;;  %s14392_s18 = smov 3  }
 0x729   : > { %5975 = vrot.lane.b32.xlu0 %v5872_v38, %s12193_s21  ;;  %5984 = vrot.lane.b32.xlu1 %v5872_v38, %s14390_s26  ;;  %s14395_s21 = smov 73  }
 0x72d   : > { %6008 = vrot.lane.b32.xlu0 %v5873_v46, %s12195_s20  ;;  %5986 = vrot.lane.b32.xlu1 %v5873_v46, %s14390_s26  ;;  %s14396_s20 = smov 108   ;;  %s14397_s26 = smov 46  }
 0x731   : > { %6041 = vrot.lane.b32.xlu0 %v5874_v48, %s14391_s25  ;;  %6025 = vrot.lane.b32.xlu1 %v5873_v46, %s12191_s16 }
 0x735   : > { %6057 = vrot.lane.b32.xlu0 %v5874_v48, %s14382_s24  ;;  %5909 = vrot.lane.b32.xlu1 %v5871_v35, %s14392_s18  ;;  %s12196_s18 = smov 126  }
 0x739   : > { %6053 = vrot.lane.b32.xlu0 %v5899_v31, %s14393_s0  ;;  %5919 = vrot.lane.b32.xlu1 %v5871_v35, %s14394_s1  ;;  %s14398_s1 = smov 127  }
 0x73d   : > { %5935 = vrot.lane.b32.xlu1 %v5871_v35, %s14386_s22  ;;  %s12198_s22 = smov 122  }
 0x741   : > { %5967 = vrot.lane.b32.xlu1 %v5872_v38, %s14395_s21  ;;  %s12197_s21 = smov 125  }
 0x745   : > { %6000 = vrot.lane.b32.xlu1 %v5873_v46, %s14396_s20  ;;  %s14399_s20 = smov 124  }
 0x749   : > { %6016 = vrot.lane.b32.xlu1 %v5873_v46, %s14397_s26  ;;  %s14400_s26 = smov 123  }
 0x74d   : > { %6027 = vrot.lane.b32.xlu1 %v5874_v48, %s12191_s16 }
 0x751   : > { %6045 = vrot.lane.b32.xlu1 %v5899_v31, %s14391_s25  ;;  %s14411_s25 = smov 23  }
 0x755   : > { %6049 = vrot.lane.b32.xlu1 %v5874_v48, %s14393_s0 }
 0x759   : > { %6061 = vrot.lane.b32.xlu1 %v5899_v31, %s14382_s24 }
 0x773   : > { %v5955_v49 = vpop.permute.xlu1 %5954  ;;  %v5953_v50 = vpop.permute.xlu0 %5952 }
 0x774   : > { %v5956_v51 = vsel %vm14362_vm0, %v5953_v50, %v5955_v49 }
 0x775   : > { %5958 = vst.msk [vmem:[#allocation4 + $0x1d] sm:$0x1] %vm5912_vm4, %v5956_v51 }
 0x777   : > { %v5924_v52 = vpop.permute.xlu1 %5923  ;;  %v5916_v53 = vpop.permute.xlu0 %5915 }
 0x778   : > { %5926 = vst.msk [vmem:[#allocation4 + $0x1a] sm:$0x1] %vm5912_vm4, %v5924_v52  ;;  %5918 = vst.msk [vmem:[#allocation4 + $0x19] sm:$0x1] %vm5912_vm4, %v5916_v53 }
 0x77b   : > { %v5940_v45 = vpop.permute.xlu1 %5939  ;;  %v5932_v56 = vpop.permute.xlu0 %5931 }
 0x77c   : > { %5942 = vst.msk [vmem:[#allocation4 + $0x1c] sm:$0x1] %vm5912_vm4, %v5940_v45  ;;  %5934 = vst.msk [vmem:[#allocation4 + $0x1b] sm:$0x1] %vm5912_vm4, %v5932_v56  ;;  %v9191_v45 = vld [vmem:[%s14289_s5 + $0x10] sm:$0xff] }
 0x77d   : > { %10615 = vmatprep.mubr.msk.f32.mxu0 %vm3120_vm3, %v9191_v45 }
 0x77f   : > { %v5972_v10 = vpop.permute.xlu1 %5971  ;;  %v5964_v12 = vpop.permute.xlu0 %5963 }
 0x780   : > { %5974 = vst.msk [vmem:[#allocation4 + $0x1f] sm:$0x1] %vm5912_vm4, %v5972_v10  ;;  %5966 = vst.msk [vmem:[#allocation4 + $0x1e] sm:$0x1] %vm5912_vm4, %v5964_v12 }
 0x783   : > { %v5994_v57 = vpop.permute.xlu1 %5993  ;;  %v5996_v58 = vpop.permute.xlu0 %5995 }
 0x784   : > { %v5997_v61 = vsel %vm5988_vm7, %v5994_v57, %v5996_v58 }
 0x785   : > { %5999 = vst.msk [vmem:[#allocation4 + $0x21] sm:$0x1] %vm5912_vm4, %v5997_v61 }
 0x787   : > { %v6035_v62 = vpop.permute.xlu1 %6034  ;;  %v6005_v63 = vpop.permute.xlu0 %6004  ;;  %v6070_v51 = vld [vmem:[#allocation4 + $0x18] sm:$0xff] }
 0x788   : > { %6007 = vst.msk [vmem:[#allocation4 + $0x22] sm:$0x1] %vm5912_vm4, %v6005_v63 }
 0x78b   : > { %v5980_v2 = vpop.permute.xlu1 %5979  ;;  %v6021_v4 = vpop.permute.xlu0 %6020 }
 0x78c   : > { %5982 = vst.msk [vmem:[#allocation4 + $0x20] sm:$0x1] %vm5912_vm4, %v5980_v2  ;;  %6023 = vst.msk [vmem:[#allocation4 + $0x24] sm:$0x1] %vm5912_vm4, %v6021_v4 }
 0x78f   : > { %v6013_v6 = vpop.permute.xlu1 %6012  ;;  %v6037_v15 = vpop.permute.xlu0 %6036 }
 0x790   : > { %6015 = vst.msk [vmem:[#allocation4 + $0x23] sm:$0x1] %vm5912_vm4, %v6013_v6  ;;  %v6038_v16 = vsel %vm6029_vm8, %v6035_v62, %v6037_v15 }
 0x791   : > { %6040 = vst.msk [vmem:[#allocation4 + $0x25] sm:$0x1] %vm5912_vm4, %v6038_v16 }
 0x793   : > { %v5928_v18 = vpop.permute.xlu0 %5927  ;;  %v5945_v19 = vpop.permute.xlu1 %5944 }
 0x794   : > { %5930 = vst.msk [vmem:[#allocation4 + $0x5] sm:$0x1] %vm5912_vm4, %v5928_v18 }
 0x797   : > { %v5960_v21 = vpop.permute.xlu0 %5959  ;;  %v5947_v28 = vpop.permute.xlu1 %5946 }
 0x798   : > { %5962 = vst.msk [vmem:[#allocation4 + $0x8] sm:$0x1] %vm5912_vm4, %v5960_v21  ;;  %v5948_v22 = vsel %vm14362_vm0, %v5945_v19, %v5947_v28 }
 0x799   : > { %5950 = vst.msk [vmem:[#allocation4 + $0x7] sm:$0x1] %vm5912_vm4, %v5948_v22  ;;  %v9192_v22 = vld [vmem:[%s14289_s5 + $0x18] sm:$0xff] }
 0x79b   : > { %v5976_v24 = vpop.permute.xlu0 %5975  ;;  %v5985_v25 = vpop.permute.xlu1 %5984 }
 0x79c   : > { %5978 = vst.msk [vmem:[#allocation4 + $0xa] sm:$0x1] %vm5912_vm4, %v5976_v24  ;;  %v6065_v24 = vld [vmem:[%s14289_s5] sm:$0xff] }
 0x79f   : > { %v6009_v27 = vpop.permute.xlu0 %6008  ;;  %v5987_v29 = vpop.permute.xlu1 %5986 }
 0x7a0   : > { %6011 = vst.msk [vmem:[#allocation4 + $0xd] sm:$0x1] %vm5912_vm4, %v6009_v27  ;;  %v5989_v23 = vsel %vm5988_vm7, %v5985_v25, %v5987_v29 }
 0x7a1   : > { %5991 = vst.msk [vmem:[#allocation4 + $0xb] sm:$0x1] %vm5912_vm4, %v5989_v23 }
 0x7a3   : > { %v6042_v30 = vpop.permute.xlu0 %6041  ;;  %v6026_v26 = vpop.permute.xlu1 %6025 }
 0x7a4   : > { %6044 = vst.msk [vmem:[#allocation4 + $0x10] sm:$0x1] %vm5912_vm4, %v6042_v30 }
 0x7a7   : > { %v6058_v31 = vpop.permute.xlu0 %6057  ;;  %v5910_v17 = vpop.permute.xlu1 %5909 }
 0x7a8   : > { %6060 = vst.msk [vmem:[#allocation4 + $0x12] sm:$0x1] %vm5912_vm4, %v6058_v31  ;;  %5913 = vst.msk [vmem:[#allocation4 + $0x3] sm:$0x1] %vm5912_vm4, %v5910_v17 }
 0x7ab   : > { %v6054_v32 = vpop.permute.xlu0 %6053  ;;  %v5920_v33 = vpop.permute.xlu1 %5919 }
 0x7ac   : > { %6056 = vst.msk [vmem:[#allocation4 + $0x27] sm:$0x1] %vm5912_vm4, %v6054_v32  ;;  %5922 = vst.msk [vmem:[#allocation4 + $0x4] sm:$0x1] %vm5912_vm4, %v5920_v33  ;;  %v6066_v32 = vld [vmem:[%s14289_s5 + $0x8] sm:$0xff]  ;;  %v9199_v33 = vld [vmem:[%s14289_s5 + $0x20] sm:$0xff] }
 0x7af   : > { %v5936_v35 = vpop.permute.xlu1 %5935 }
 0x7b0   : > { %5938 = vst.msk [vmem:[#allocation4 + $0x6] sm:$0x1] %vm5912_vm4, %v5936_v35 }
 0x7b3   : > { %v5968_v37 = vpop.permute.xlu1 %5967 }
 0x7b4   : > { %5970 = vst.msk [vmem:[#allocation4 + $0x9] sm:$0x1] %vm5912_vm4, %v5968_v37 }
 0x7b7   : > { %v6001_v60 = vpop.permute.xlu1 %6000  ;;  %v6067_v44 = vld [vmem:[#allocation4] sm:$0xff] }
 0x7b8   : > { %6003 = vst.msk [vmem:[#allocation4 + $0xc] sm:$0x1] %vm5912_vm4, %v6001_v60 }
 0x7bb   : > { %v6017_v59 = vpop.permute.xlu1 %6016 }
 0x7bc   : > { %6019 = vst.msk [vmem:[#allocation4 + $0xe] sm:$0x1] %vm5912_vm4, %v6017_v59 }
 0x7bf   : > { %v6028_v38 = vpop.permute.xlu1 %6027 }
 0x7c0   : > { %v6030_v39 = vsel %vm6029_vm8, %v6026_v26, %v6028_v38 }
 0x7c1   : > { %6032 = vst.msk [vmem:[#allocation4 + $0xf] sm:$0x1] %vm5912_vm4, %v6030_v39 }
 0x7c3   : > { %v6046_v42 = vpop.permute.xlu1 %6045 }
 0x7c4   : > { %6048 = vst.msk [vmem:[#allocation4 + $0x26] sm:$0x1] %vm5912_vm4, %v6046_v42 }
 0x7c7   : > { %v6050_v43 = vpop.permute.xlu1 %6049 }
 0x7c8   : > { %6052 = vst.msk [vmem:[#allocation4 + $0x11] sm:$0x1] %vm5912_vm4, %v6050_v43  ;;  %v6068_v46 = vld [vmem:[#allocation4 + $0x8] sm:$0xff] }
 0x7c9   : > { %v11920_v47 = vpack.i.bf16 %v6068_v46, %v6067_v44  ;;  %v11515_v48 = vpack.c.bf16 %v6068_v46, %v6067_v44 }
 0x7cb   : > { %11921 = vrot.lane.b32.xlu0 %v11920_v47, %s14398_s1  ;;  %v6062_v49 = vpop.permute.xlu1 %6061  ;;  %v6071_v56 = vld [vmem:[#allocation4 + $0x20] sm:$0xff] }
 0x7cc   : > { %6064 = vst.msk [vmem:[#allocation4 + $0x28] sm:$0x1] %vm5912_vm4, %v6062_v49  ;;  %v9200_v49 = vld [vmem:[%s14289_s5 + $0x28] sm:$0xff] }
 0x7cf   : > { %v6069_v50 = vld [vmem:[#allocation4 + $0x10] sm:$0xff] }
 0x7d0   : > { %v11925_v52 = vpack.i.bf16 %v6070_v51, %v6069_v50  ;;  %v11519_v53 = vpack.c.bf16 %v6070_v51, %v6069_v50  ;;  %v9204_v50 = vld [vmem:[%s14289_s5 + $0x30] sm:$0xff] }
 0x7d2   : > { %11926 = vrot.lane.b32.xlu1 %v11925_v52, %s14398_s1 }
 0x7d3   : > { %v6072_v10 = vld [vmem:[#allocation4 + $0x28] sm:$0xf] }
 0x7d4   : > { %v11930_v12 = vpack.i.bf16 %v6072_v10, %v6071_v56  ;;  %v11523_v57 = vpack.c.bf16 %v6072_v10, %v6071_v56 }
 0x7d6   : > { %11936 = vrot.lane.b32.xlu1 %v11920_v47, %s12196_s18  ;;  %11931 = vrot.lane.b32.xlu0 %v11930_v12, %s14398_s1  ;;  %s14409_s1 = smov 27  }
 0x7da   : > { %11946 = vrot.lane.b32.xlu1 %v11930_v12, %s12196_s18  ;;  %11941 = vrot.lane.b32.xlu0 %v11925_v52, %s12196_s18  ;;  %s14405_s18 = smov 62  }
 0x7de   : > { %11956 = vrot.lane.b32.xlu1 %v11925_v52, %s12197_s21  ;;  %11951 = vrot.lane.b32.xlu0 %v11920_v47, %s12197_s21 }
 0x7e2   : > { %11966 = vrot.lane.b32.xlu1 %v11920_v47, %s14399_s20  ;;  %11961 = vrot.lane.b32.xlu0 %v11930_v12, %s12197_s21  ;;  %s14406_s21 = smov 31  }
 0x7e6   : > { %11976 = vrot.lane.b32.xlu1 %v11930_v12, %s14399_s20  ;;  %11971 = vrot.lane.b32.xlu0 %v11925_v52, %s14399_s20 }
 0x7ea   : > { %11986 = vrot.lane.b32.xlu1 %v11925_v52, %s14400_s26  ;;  %11981 = vrot.lane.b32.xlu0 %v11920_v47, %s14400_s26 }
 0x7ee   : > { %11996 = vrot.lane.b32.xlu1 %v11920_v47, %s12198_s22  ;;  %11991 = vrot.lane.b32.xlu0 %v11930_v12, %s14400_s26  ;;  %s14407_s26 = smov 93  }
 0x7f2   : > { %12006 = vrot.lane.b32.xlu1 %v11930_v12, %s12198_s22  ;;  %12001 = vrot.lane.b32.xlu0 %v11925_v52, %s12198_s22  ;;  %s14408_s22 = smov 58  }
 0x83d   : > { %v11922_v58 = vpop.permute.xlu0 %11921 }
 0x83e   : > { %v11924_v61 = vunpack.i.h.bf16 %v11922_v58  ;;  %v11923_v62 = vunpack.i.l.bf16 %v11922_v58 }
 0x840   : > { %v11501_v63 = vpack.c.bf16 %v11924_v61, %v11923_v62 }
 0x842   : > { %11502 = vmatprep.subr.bf16.mxu0 %v11501_v63 }
 0x843   : > { %11504 = vmatpush3.bf16.msra.mxu0 %v11501_v63 }
 0x844   : > { %v11927_v2 = vpop.permute.xlu1 %11926 }
 0x845   : > { %v11929_v4 = vunpack.i.h.bf16 %v11927_v2  ;;  %v11928_v6 = vunpack.i.l.bf16 %v11927_v2  ;;  %v9205_v2 = vld [vmem:[%s14289_s5 + $0x38] sm:$0xff] }
 0x847   : > { %v11505_v15 = vpack.c.bf16 %v11929_v4, %v11928_v6  ;;  %v9209_v4 = vld [vmem:[%s14289_s5 + $0x40] sm:$0xff] }
 0x848   : > { %v11932_v16 = vpop.permute.xlu0 %11931  ;;  %v11937_v25 = vpop.permute.xlu1 %11936 }
 0x849   : > { %v11934_v18 = vunpack.i.h.bf16 %v11932_v16  ;;  %v11933_v19 = vunpack.i.l.bf16 %v11932_v16  ;;  %11506 = vmatprep.subr.bf16.mxu0 %v11505_v15  ;;  %v11939_v27 = vunpack.i.h.bf16 %v11937_v25  ;;  %v11938_v29 = vunpack.i.l.bf16 %v11937_v25 }
 0x84a   : > { %11508 = vmatpush3.bf16.msra.mxu0 %v11505_v15 }
 0x84b   : > { %v11509_v28 = vpack.c.bf16 %v11934_v18, %v11933_v19  ;;  %v11529_v30 = vpack.c.bf16 %v11939_v27, %v11938_v29 }
 0x84c   : > { %v11942_v23 = vpop.permute.xlu0 %11941  ;;  %v11947_v17 = vpop.permute.xlu1 %11946 }
 0x84d   : > { %11511 = vmatprep.subr.msk.bf16.mxu0 %vm13761_vm10, %v11509_v28  ;;  %v11944_v26 = vunpack.i.h.bf16 %v11942_v23  ;;  %v11943_v31 = vunpack.i.l.bf16 %v11942_v23  ;;  %v11949_v37 = vunpack.i.h.bf16 %v11947_v17  ;;  %v11948_v60 = vunpack.i.l.bf16 %v11947_v17 }
 0x84e   : > { %11514 = vmatpush3.bf16.msk.msra.mxu0 %vm13761_vm10, %v11509_v28 }
 0x84f   : > { %11516 = vmatprep.subr.bf16.mxu0 %v11515_v48  ;;  %v11533_v35 = vpack.c.bf16 %v11944_v26, %v11943_v31  ;;  %v11537_v38 = vpack.c.bf16 %v11949_v37, %v11948_v60  ;;  %v9214_v26 = vld [vmem:[%s14289_s5 + $0x50] sm:$0xff] }
 0x850   : > { %v11952_v59 = vpop.permute.xlu0 %11951  ;;  %v11957_v43 = vpop.permute.xlu1 %11956 }
 0x851   : > { %10616 = vmatmul.mubr.msk.f32.vlgmr.msra.gmra.mrb[56].mxu0 %vm3120_vm3, %v9192_v22  ;;  %v11954_v39 = vunpack.i.h.bf16 %v11952_v59  ;;  %v11953_v42 = vunpack.i.l.bf16 %v11952_v59  ;;  %v11959_v46 = vunpack.i.h.bf16 %v11957_v43  ;;  %v11958_v47 = vunpack.i.l.bf16 %v11957_v43 }
 0x852   : > { %11518 = vmatpush3.bf16.msra.mxu0 %v11515_v48  ;;  %10630 = vmatprep.mubr.msk.f32.mxu0 %vm3120_vm3, %v6065_v24 }
 0x853   : > { %11520 = vmatprep.subr.bf16.mxu0 %v11519_v53  ;;  %v11543_v44 = vpack.c.bf16 %v11954_v39, %v11953_v42  ;;  %v11547_v51 = vpack.c.bf16 %v11959_v46, %v11958_v47  ;;  %v9219_v46 = vld [vmem:[%s14289_s5 + $0x60] sm:$0xff] }
 0x854   : > { %v11962_v48 = vpop.permute.xlu0 %11961  ;;  %v11967_v45 = vpop.permute.xlu1 %11966 }
 0x855   : > { %v11964_v52 = vunpack.i.h.bf16 %v11962_v48  ;;  %v11969_v10 = vunpack.i.h.bf16 %v11967_v45  ;;  %v11968_v12 = vunpack.i.l.bf16 %v11967_v45 }
 0x856   : > { %11522 = vmatpush3.bf16.msra.mxu0 %v11519_v53  ;;  %v11963_v53 = vunpack.i.l.bf16 %v11962_v48 }
 0x857   : > { %11525 = vmatprep.subr.msk.bf16.mxu0 %vm13761_vm10, %v11523_v57  ;;  %v11557_v58 = vpack.c.bf16 %v11969_v10, %v11968_v12 }
 0x858   : > { %v11551_v56 = vpack.c.bf16 %v11964_v52, %v11963_v53  ;;  %v11977_v63 = vpop.permute.xlu1 %11976  ;;  %v6816_v52 = vmul.u32 2, %v12759_v9 }
 0x859   : > { %v11979_v15 = vunpack.i.h.bf16 %v11977_v63  ;;  %v11978_v16 = vunpack.i.l.bf16 %v11977_v63 }
 0x85a   : > { %11528 = vmatpush3.bf16.msk.msra.mxu0 %vm13761_vm10, %v11523_v57  ;;  %v11972_v57 = vpop.permute.xlu0 %11971  ;;  %v6821_v53 = vadd.s32 1, %v6816_v52  ;;  %vm6817_vm11 = vcmp.eq.s32.totalorder %v12757_v8, %v6816_v52  ;;  %vm6818_vm13 = vcmp.eq.s32.totalorder %v12765_v11, %v6816_v52 }
 0x85b   : > { %11530 = vmatprep.subr.bf16.mxu0 %v11529_v30  ;;  %v11974_v61 = vunpack.i.h.bf16 %v11972_v57  ;;  %v11973_v62 = vunpack.i.l.bf16 %v11972_v57  ;;  %v11565_v19 = vpack.c.bf16 %v11979_v15, %v11978_v16 }
 0x85c   : > { %v11987_v24 = vpop.permute.xlu1 %11986  ;;  %vm6822_vm5 = vcmp.eq.s32.totalorder %v12757_v8, %v6821_v53  ;;  %vm6823_vm6 = vcmp.eq.s32.totalorder %v12765_v11, %v6821_v53  ;;  %vm6824_vm14 = vcmp.eq.s32.totalorder %v12779_v13, %v6821_v53  ;;  %vm6825_vm1 = vcmp.eq.s32.totalorder %v12782_v14, %v6821_v53 }
 0x85d   : > { %10631 = vmatmul.mubr.msk.f32.vlgmr.msra.gmra.mrb[56].mxu0 %vm3120_vm3, %v6066_v32  ;;  %v11561_v6 = vpack.c.bf16 %v11974_v61, %v11973_v62  ;;  %v11989_v27 = vunpack.i.h.bf16 %v11987_v24  ;;  %v11988_v29 = vunpack.i.l.bf16 %v11987_v24  ;;  %vm6826_vm4 = vmor %vm6817_vm11, %vm6822_vm5  ;;  %vm6852_vm11 = vcmask 1046528  }
 0x85e   : > { %11532 = vmatpush3.bf16.msra.mxu0 %v11529_v30  ;;  %10645 = vmatprep.mubr.msk.f32.mxu0 %vm3120_vm3, %v9199_v33  ;;  %v11982_v18 = vpop.permute.xlu0 %11981  ;;  %v9210_v30 = vld [vmem:[%s14289_s5 + $0x48] sm:$0xff]  ;;  %vm6827_vm7 = vmor %vm6818_vm13, %vm6823_vm6  ;;  %v9224_v21 = vsel %vm6826_vm4, 1.0, %v12112_v7  ;;  %vm7107_vm5 = vcmask 367856   ;;  %vm7198_vm6 = vcmask 490856   ;;  %vm7295_vm4 = vcmask 613856  }
 0x85f   : > { %11534 = vmatprep.subr.bf16.mxu0 %v11533_v35  ;;  %v11984_v28 = vunpack.i.h.bf16 %v11982_v18  ;;  %v11983_v22 = vunpack.i.l.bf16 %v11982_v18  ;;  %v11575_v31 = vpack.c.bf16 %v11989_v27, %v11988_v29  ;;  %v9225_v45 = vsel %vm6827_vm7, 1.0, %v12112_v7  ;;  %vm13867_vm13 = vmpackc.low %vm6852_vm11, %vm12156_vm9 }
 0x860   : > { %v11997_v33 = vpop.permute.xlu1 %11996  ;;  %v6839_v10 = vmul.f32 0.5, %v9225_v45  ;;  %vm6848_vm9 = vcmask 252928   ;;  %vm7386_vm7 = vcmask 736856   ;;  %vm7665_vm11 = vcmask 1048512  }
 0x861   : > { %v11571_v25 = vpack.c.bf16 %v11984_v28, %v11983_v22  ;;  %v11999_v37 = vunpack.i.h.bf16 %v11997_v33  ;;  %v11998_v60 = vunpack.i.l.bf16 %v11997_v33 }
 0x862   : > { %11536 = vmatpush3.bf16.msra.mxu0 %v11533_v35  ;;  %v11992_v23 = vpop.permute.xlu0 %11991 }
 0x863   : > { %11539 = vmatprep.subr.msk.bf16.mxu0 %vm13761_vm10, %v11537_v38  ;;  %v11994_v17 = vunpack.i.h.bf16 %v11992_v23  ;;  %v11993_v32 = vunpack.i.l.bf16 %v11992_v23 }
 0x864   : > { %v12007_v43 = vpop.permute.xlu1 %12006 }
 0x865   : > { %v11579_v35 = vpack.c.bf16 %v11994_v17, %v11993_v32  ;;  %v12009_v48 = vunpack.i.h.bf16 %v12007_v43 }
 0x866   : > { %11542 = vmatpush3.bf16.msk.msra.mxu0 %vm13761_vm10, %v11537_v38  ;;  %v12002_v59 = vpop.permute.xlu0 %12001  ;;  %v11585_v38 = vpack.c.bf16 %v11999_v37, %v11998_v60 }
 0x867   : > { %11544 = vmatprep.subr.bf16.mxu0 %v11543_v44  ;;  %v12004_v39 = vunpack.i.h.bf16 %v12002_v59  ;;  %v12003_v42 = vunpack.i.l.bf16 %v12002_v59 }
 0x869   : > { %10646 = vmatmul.mubr.msk.f32.vlgmr.msra.gmra.mrb[56].mxu0 %vm3120_vm3, %v9200_v49  ;;  %v11589_v47 = vpack.c.bf16 %v12004_v39, %v12003_v42  ;;  %v12008_v49 = vunpack.i.l.bf16 %v12007_v43 }
 0x86a   : > { %11546 = vmatpush3.bf16.msra.mxu0 %v11543_v44  ;;  %10660 = vmatprep.mubr.msk.f32.mxu0 %vm3120_vm3, %v9204_v50  ;;  %v9215_v44 = vld [vmem:[%s14289_s5 + $0x58] sm:$0xff] }
 0x86b   : > { %11548 = vmatprep.subr.bf16.mxu0 %v11547_v51  ;;  %v11593_v50 = vpack.c.bf16 %v12009_v48, %v12008_v49 }
 0x86e   : > { %11550 = vmatpush3.bf16.msra.mxu0 %v11547_v51  ;;  %v9220_v51 = vld [vmem:[%s14289_s5 + $0x68] sm:$0xff] }
 0x86f   : > { %11553 = vmatprep.subr.msk.bf16.mxu0 %vm13761_vm10, %v11551_v56 }
 0x872   : > { %11556 = vmatpush3.bf16.msk.msra.mxu0 %vm13761_vm10, %v11551_v56  ;;  %v6838_v56 = vmul.f32 0.5, %v9224_v21 }
 0x873   : > { %11558 = vmatprep.subr.bf16.mxu0 %v11557_v58 }
 0x874   : > { %v13859_v12 = vpack.c.bf16 %v6839_v10, %v6838_v56 }
 0x875   : > { %10661 = vmatmul.mubr.msk.f32.vlgmr.msra.gmra.mrb[56].mxu0 %vm3120_vm3, %v9205_v2 }
 0x876   : > { %11560 = vmatpush3.bf16.msra.mxu0 %v11557_v58  ;;  %10675 = vmatprep.mubr.msk.f32.mxu0 %vm3120_vm3, %v9209_v4 }
 0x877   : > { %11562 = vmatprep.subr.bf16.mxu0 %v11561_v6  ;;  %11601 = vmatpush3.bf16.msra.mxu1 %v13859_v12 }
 0x878   : > { %11602 = vmatprep.subr.bf16.mxu1 %v12113_v20 }
 0x87a   : > { %11564 = vmatpush3.bf16.msra.mxu0 %v11561_v6 }
 0x87b   : > { %11567 = vmatprep.subr.msk.bf16.mxu0 %vm13761_vm10, %v11565_v19 }
 0x87e   : > { %11570 = vmatpush3.bf16.msk.msra.mxu0 %vm13761_vm10, %v11565_v19 }
 0x87f   : > { %11572 = vmatprep.subr.bf16.mxu0 %v11571_v25 }
 0x881   : > { %10676 = vmatmul.mubr.msk.f32.vlgmr.msra.gmra.mrb[56].mxu0 %vm3120_vm3, %v9210_v30 }
 0x882   : > { %11574 = vmatpush3.bf16.msra.mxu0 %v11571_v25  ;;  %10690 = vmatprep.mubr.msk.f32.mxu0 %vm3120_vm3, %v9214_v26 }
 0x883   : > { %11576 = vmatprep.subr.bf16.mxu0 %v11575_v31 }
 0x886   : > { %11578 = vmatpush3.bf16.msra.mxu0 %v11575_v31 }
 0x887   : > { %11581 = vmatprep.subr.msk.bf16.mxu0 %vm13761_vm10, %v11579_v35 }
 0x88a   : > { %11584 = vmatpush3.bf16.msk.msra.mxu0 %vm13761_vm10, %v11579_v35 }
 0x88b   : > { %11586 = vmatprep.subr.bf16.mxu0 %v11585_v38 }
 0x88d   : > { %10691 = vmatmul.mubr.msk.f32.vlgmr.msra.gmra.mrb[56].mxu0 %vm3120_vm3, %v9215_v44 }
 0x88e   : > { %11588 = vmatpush3.bf16.msra.mxu0 %v11585_v38  ;;  %10705 = vmatprep.mubr.msk.f32.mxu0 %vm3120_vm3, %v9219_v46 }
 0x88f   : > { %11590 = vmatprep.subr.bf16.mxu0 %v11589_v47 }
 0x892   : > { %11592 = vmatpush3.bf16.msra.mxu0 %v11589_v47 }
 0x893   : > { %11595 = vmatprep.subr.msk.bf16.mxu0 %vm13761_vm10, %v11593_v50 }
 0x896   : > { %11598 = vmatpush3.bf16.msk.msra.mxu0 %vm13761_vm10, %v11593_v50  ;;  %vm6820_vm10 = vcmp.eq.s32.totalorder %v12782_v14, %v6816_v52 }
 0x897   : > { %11669 = vmatprep.subr.bf16.mxu0 %v12113_v20  ;;  %vm6829_vm12 = vmor %vm6820_vm10, %vm6825_vm1  ;;  %vm7568_vm10 = vcmask 982856  }
 0x898   : > { %v9227_v57 = vsel %vm6829_vm12, 1.0, %v12112_v7  ;;  %vm14417_vm12 = vcmask 64512  }
 0x899   : > { %10706 = vmatmul.mubr.msk.f32.vlgmr.msra.gmra.mrb[56].mxu0 %vm3120_vm3, %v9220_v51  ;;  %vm6819_vm3 = vcmp.eq.s32.totalorder %v12779_v13, %v6816_v52  ;;  %v6841_v61 = vmul.f32 0.5, %v9227_v57 }
 0x89a   : > { %10826 = vmatprep.mubr.msk.f32.mxu0 %vm12114_vm2, %v12112_v7  ;;  %vm6828_vm0 = vmor %vm6819_vm3, %vm6824_vm14  ;;  %11671 = vmatpush3.bf16.msra.mxu0 %v13859_v12  ;;  %vm7959_vm14 = vcmask 97280   ;;  %vm7477_vm3 = vcmask 859856  }
 0x89b   : > { %v9226_v11 = vsel %vm6828_vm0, 1.0, %v12112_v7  ;;  %11672 = vmatprep.subr.bf16.mxu0 %v12113_v20 }
 0x89c   : > { %v6840_v58 = vmul.f32 0.5, %v9226_v11 }
 0x89e   : > { %v13872_v14 = vpack.c.bf16 %v6841_v61, %v6840_v58 }
 0x8a0   : > { %11605 = vmatpush3.bf16.msk.msra.mxu1 %vm13867_vm13, %v13872_v14  ;;  %11675 = vmatpush3.bf16.msk.msra.mxu0 %vm13867_vm13, %v13872_v14 }
 0x8a1   : > { %11606 = vmatprep.subr.bf16.mxu1 %v12113_v20  ;;  %11683 = vmatprep.subr.bf16.mxu0 %v12113_v20 }
 0x96c   : > { %v10707_v62 = vpop.f32.mrb[56].mxu0 }
 0x96d   : > { %v6804_v63 = vmul.f32 1.442695, %v10707_v62  ;;  %v6779_v2 = vpop.f32.mrb[57].mxu0  ;;  %v6791_v4 = vsub.f32 0.0, %v10707_v62  ;;  %vm6813_vm1 = vcmp.ge.f32.partialorder %v10707_v62, 0.0 }
 0x96e   : > { %v6790_v6 = vsub.f32 0.0, %v6779_v2  ;;  %v6802_v15 = vmul.f32 1.442695, %v6779_v2  ;;  %vm6812_vm0 = vcmp.ge.f32.partialorder %v6779_v2, 0.0 }
 0x96f   : > { %v6794_v18 = vmul.f32 1.442695, %v6791_v4 }
 0x970   : > { %v6792_v16 = vmul.f32 1.442695, %v6790_v6  ;;  %12026 = vpow2.f32 %v6802_v15  ;;  %v12047_v15 = vld [vmem:[#allocation3 + $0x10] sm:$0xff] }
 0x971   : > { %12028 = vpow2.f32 %v6804_v63 }
 0x972   : > { %12030 = vpow2.f32 %v6792_v16 }
 0x973   : > { %12032 = vpow2.f32 %v6794_v18 }
 0x97a   : > { %v12027_v19 = vpop.eup %12026 }
 0x97b   : > { %v12029_v28 = vpop.eup %12028  ;;  %v6806_v22 = vadd.f32 1.0, %v12027_v19 }
 0x97c   : > { %v12031_v24 = vpop.eup %12030  ;;  %v6807_v27 = vadd.f32 1.0, %v12029_v28 }
 0x97d   : > { %v6796_v25 = vadd.f32 1.0, %v12031_v24  ;;  %12034 = vrcp.f32 %v6806_v22  ;;  %v12033_v29 = vpop.eup %12032 }
 0x97e   : > { %v6797_v23 = vadd.f32 1.0, %v12033_v29  ;;  %v7850_v29 = vld [vmem:[#allocation3 + $0x10] sm:$0xff] }
 0x97f   : > { %12036 = vrcp.f32 %v6796_v25 }
 0x980   : > { %12038 = vrcp.f32 %v6807_v27 }
 0x981   : > { %12040 = vrcp.f32 %v6797_v23 }
 0x987   : > { %v12035_v30 = vpop.eup %12034 }
 0x988   : > { %v6809_v26 = vmul.f32 %v12035_v30, %v12027_v19 }
 0x989   : > { %v12037_v31 = vpop.eup %12036 }
 0x98a   : > { %v6814_v17 = vsel %vm6812_vm0, %v12037_v31, %v6809_v26  ;;  %v12039_v37 = vpop.eup %12038  ;;  %v8039_v26 = vld [vmem:[#allocation3 + $0x18] sm:$0xff]  ;;  %vm7757_vm0 = vcmask 179256  }
 0x98b   : > { %v7022_v32 = vrot.slane %v6814_v17, %v12906_v3  ;;  %v6931_v33 = vrot.slane %v6814_v17, %v12885_v55  ;;  %v6846_v35 = vrot.slane %v6814_v17, %v12877_v54  ;;  %v7205_v59 = vrot.slane %v6814_v17, %v12892_v0  ;;  %v12041_v42 = vpop.eup %12040 }
 0x98c   : > { %v7113_v38 = vrot.slane %v6814_v17, %v12912_v5  ;;  %v6811_v39 = vmul.f32 %v12039_v37, %v12029_v28  ;;  %v7392_v43 = vrot.slane %v6814_v17, %v12939_v34  ;;  %v7301_v44 = vrot.slane %v6814_v17, %v12896_v1 }
 0x98d   : > { %7024 = vrot.lane.b32.xlu1 %v7022_v32, %s14405_s18  ;;  %6933 = vrot.lane.b32.xlu0 %v6931_v33, %s14406_s21  ;;  %v6847_v60 = vmul.f32 %v6846_v35, %v13652_v40  ;;  %v7483_v48 = vrot.slane %v6814_v17, %v12944_v36  ;;  %s12199_s18 = smov 97   ;;  %s12200_s21 = smov 35  }
 0x98e   : > { %v6815_v46 = vsel %vm6813_vm1, %v12041_v42, %v6811_v39  ;;  %vm7939_vm1 = vcmask 425256  }
 0x98f   : > { %10717 = vmatmul.mubr.msk.f32.vlgmr.msra.gmra.mrb[64].mxu1 %vm6848_vm9, %v6847_v60  ;;  %v7575_v47 = vrot.slane %v6815_v46, %v12877_v54  ;;  %v7672_v49 = vrot.slane %v6815_v46, %v12885_v55  ;;  %v7763_v50 = vrot.slane %v6815_v46, %v12906_v3  ;;  %v8043_v3 = vrot.slane %v6815_v46, %v12896_v1 }
 0x990   : > { %11608 = vmatpush3.bf16.msra.mxu1 %v13859_v12  ;;  %10727 = vmatprep.mubr.msk.f32.mxu1 %vm12114_vm2, %v12112_v7  ;;  %v7854_v56 = vrot.slane %v6815_v46, %v12912_v5  ;;  %v7946_v11 = vrot.slane %v6815_v46, %v12892_v0  ;;  %v8225_v61 = vrot.slane %v6815_v46, %v12944_v36  ;;  %v12046_v36 = vld [vmem:[#allocation3 + $0x8] sm:$0xff] }
 0x991   : > { %7207 = vrot.lane.b32.xlu1 %v7205_v59, %s14399_s20  ;;  %7115 = vrot.lane.b32.xlu0 %v7113_v38, %s14407_s26  ;;  %s14410_s20 = smov 89   ;;  %s14412_s26 = smov 66   ;;  %v8134_v63 = vrot.slane %v6815_v46, %v12939_v34 }
 0x992   : > { %11609 = vmatprep.subr.bf16.mxu1 %v12113_v20 }
 0x994   : > { %11612 = vmatpush3.bf16.msk.msra.mxu1 %vm13867_vm13, %v13872_v14 }
 0x995   : > { %7394 = vrot.lane.b32.xlu1 %v7392_v43, %s14408_s22  ;;  %7303 = vrot.lane.b32.xlu0 %v7301_v44, %s14409_s1  ;;  %s12201_s22 = smov 4   ;;  %s12205_s1 = smov 105  }
 0x996   : > { %11613 = vmatprep.subr.bf16.mxu1 %v12113_v20 }
 0x999   : > { %7577 = vrot.lane.b32.xlu1 %v7575_v47, %s14378_s19  ;;  %7485 = vrot.lane.b32.xlu0 %v7483_v48, %s14410_s20  ;;  %s14414_s20 = smov 39  }
 0x99d   : > { %7674 = vrot.lane.b32.xlu1 %v7672_v49, %s14411_s25  ;;  %s12206_s25 = smov 43  }
 0x9a1   : > { %7765 = vrot.lane.b32.xlu1 %v7763_v50, %s14379_s15  ;;  %s14413_s15 = smov 19  }
 0x9ff   : > { %v6934_v51 = vpop.permute.xlu0 %6933  ;;  %v7025_v53 = vpop.permute.xlu1 %7024 }
 0xa00   : > { %v6936_v52 = vmul.f32 %v6934_v51, %v13652_v40  ;;  %v7027_v21 = vmul.f32 %v7025_v53, %v13652_v40 }
 0xa02   : > { %6938 = vrot.lane.b32.xlu0 %v6936_v52, %s12199_s18 }
 0xa03   : > { %v7116_v54 = vpop.permute.xlu0 %7115  ;;  %v7208_v55 = vpop.permute.xlu1 %7207 }
 0xa04   : > { %v7118_v45 = vmul.f32 %v7116_v54, %v13652_v40  ;;  %v7211_v10 = vmul.f32 %v7208_v55, %v13654_v41  ;;  %v7210_v58 = vmul.f32 %v7208_v55, %v13652_v40 }
 0xa06   : > { %7120 = vrot.lane.b32.xlu1 %v7118_v45, %s12200_s21  ;;  %7029 = vrot.lane.b32.xlu0 %v7027_v21, %s14412_s26  ;;  %s12207_s21 = smov 12   ;;  %s14416_s26 = smov 109  }
 0xa07   : > { %v7395_v57 = vpop.permute.xlu1 %7394  ;;  %v7304_v1 = vpop.permute.xlu0 %7303 }
 0xa08   : > { %v7397_v62 = vmul.f32 %v7395_v57, %v13654_v41  ;;  %v7306_v0 = vmul.f32 %v7304_v1, %v13654_v41 }
 0xa0a   : > { %8045 = vrot.lane.b32.xlu1 %v8043_v3, %s14413_s15  ;;  %7856 = vrot.lane.b32.xlu0 %v7854_v56, %s14380_s29  ;;  %s12202_s29 = smov 70   ;;  %s12208_s15 = smov 47  }
 0xa0b   : > { %v7578_v5 = vpop.permute.xlu1 %7577  ;;  %v7486_v40 = vpop.permute.xlu0 %7485 }
 0xa0c   : > { %v7580_v2 = vmul.f32 %v7578_v5, %v13654_v41  ;;  %v7488_v6 = vmul.f32 %v12046_v36, %v7486_v40  ;;  %v7581_v34 = vmul.f32 %v12047_v15, %v7578_v5 }
 0xa0e   : > { %7216 = vrot.lane.b32.xlu1 %v7211_v10, %s12201_s22  ;;  %7948 = vrot.lane.b32.xlu0 %v7946_v11, %s14381_s27  ;;  %s12203_s27 = smov 8  }
 0xa0f   : > { %v7675_v4 = vpop.permute.xlu1 %7674 }
 0xa10   : > { %v7677_v16 = vmul.f32 %v12047_v15, %v7675_v4  ;;  %v8318_v4 = vld [vmem:[%s14291_s7] sm:$0xff] }
 0xa12   : > { %8227 = vrot.lane.b32.xlu1 %v8225_v61, %s14393_s0  ;;  %7214 = vrot.lane.b32.xlu0 %v7210_v58, %s12201_s22  ;;  %s12204_s0 = smov 101   ;;  %s12209_s22 = smov 78  }
 0xa13   : > { %v7766_v18 = vpop.permute.xlu1 %7765 }
 0xa14   : > { %v7768_v19 = vmul.f32 %v12047_v15, %v7766_v18 }
 0xa16   : > { %7399 = vrot.lane.b32.xlu1 %v7397_v62, %s12202_s29  ;;  %8136 = vrot.lane.b32.xlu0 %v8134_v63, %s14382_s24  ;;  %s14415_s24 = smov 74   ;;  %s14418_s29 = smov 30  }
 0xa1a   : > { %7584 = vrot.lane.b32.xlu1 %v7580_v2, %s12203_s27  ;;  %7308 = vrot.lane.b32.xlu0 %v7306_v0, %s12204_s0  ;;  %s12210_s0 = smov 60  }
 0xa1e   : > { %7679 = vrot.lane.b32.xlu1 %v7677_v16, %s12205_s1  ;;  %7490 = vrot.lane.b32.xlu0 %v7488_v6, %s14414_s20  ;;  %s12211_s20 = smov 75  }
 0xa22   : > { %7586 = vrot.lane.b32.xlu0 %v7581_v34, %s12203_s27  ;;  %s14419_s27 = smov 45  }
 0xa26   : > { %7770 = vrot.lane.b32.xlu0 %v7768_v19, %s14415_s24  ;;  %s12212_s24 = smov 22  }
 0xa62   : > { %v6922_v41 = vpop.f32.mrb[64].mxu1 }
 0xa63   : > { %6926 = vst.msk [vmem:[#allocation5] sm:$0xff] %vm6029_vm8, %v6922_v41  ;;  %v10718_v28 = vpop.f32.mrb[65].mxu1  ;;  %vm7016_vm8 = vcmask 244856  }
 0xa74   : > { %v6939_v22 = vpop.permute.xlu0 %6938 }
 0xa75   : > { %10728 = vmatmul.mubr.msk.f32.vlgmr.msra.gmra.mrb[66].mxu1 %vm6848_vm9, %v6939_v22 }
 0xa76   : > { %11615 = vmatpush3.bf16.msra.mxu1 %v13859_v12  ;;  %10738 = vmatprep.mubr.msk.f32.mxu1 %vm12114_vm2, %v12112_v7 }
 0xa77   : > { %11616 = vmatprep.subr.bf16.mxu1 %v12113_v20 }
 0xa78   : > { %v7121_v24 = vpop.permute.xlu1 %7120  ;;  %v7030_v25 = vpop.permute.xlu0 %7029 }
 0xa7a   : > { %11619 = vmatpush3.bf16.msk.msra.mxu1 %vm13867_vm13, %v13872_v14 }
 0xa7b   : > { %11620 = vmatprep.subr.bf16.mxu1 %v12113_v20 }
 0xa7c   : > { %v8046_v27 = vpop.permute.xlu1 %8045  ;;  %v7857_v23 = vpop.permute.xlu0 %7856 }
 0xa7d   : > { %v7859_v30 = vmul.f32 %v7857_v23, %v7850_v29  ;;  %10739 = vmatmul.mubr.msk.f32.vlgmr.msra.gmra.mrb[68].mxu1 %vm6848_vm9, %v7030_v25  ;;  %v8048_v37 = vmul.f32 %v8046_v27, %v8039_v26 }
 0xa7e   : > { %11622 = vmatpush3.bf16.msra.mxu1 %v13859_v12  ;;  %10749 = vmatprep.mubr.msk.f32.mxu1 %vm12114_vm2, %v12112_v7 }
 0xa7f   : > { %7861 = vrot.lane.b32.xlu1 %v7859_v30, %s12206_s25  ;;  %11623 = vmatprep.subr.bf16.mxu1 %v12113_v20 }
 0xa80   : > { %v7217_v31 = vpop.permute.xlu1 %7216  ;;  %v7949_v17 = vpop.permute.xlu0 %7948 }
 0xa81   : > { %v7951_v32 = vmul.f32 %v7949_v17, %v7850_v29  ;;  %v7952_v33 = vmul.f32 %v8039_v26, %v7949_v17 }
 0xa82   : > { %11626 = vmatpush3.bf16.msk.msra.mxu1 %vm13867_vm13, %v13872_v14 }
 0xa83   : > { %7957 = vrot.lane.b32.xlu1 %v7952_v33, %s12207_s21  ;;  %7955 = vrot.lane.b32.xlu0 %v7951_v32, %s12207_s21 }
 0xa84   : > { %v7215_v35 = vpop.permute.xlu0 %7214  ;;  %11627 = vmatprep.subr.bf16.mxu1 %v12113_v20  ;;  %v8228_v60 = vpop.permute.xlu1 %8227 }
 0xa85   : > { %10750 = vmatmul.mubr.msk.f32.vlgmr.msra.gmra.mrb[70].mxu1 %vm6848_vm9, %v7121_v24  ;;  %v8230_v38 = vmul.f32 %v8228_v60, %v8039_v26  ;;  %v7218_v42 = vsel %vm5669_vm15, %v7215_v35, %v7217_v31 }
 0xa86   : > { %11629 = vmatpush3.bf16.msra.mxu1 %v13859_v12  ;;  %10760 = vmatprep.mubr.msk.f32.mxu1 %vm12114_vm2, %v12112_v7 }
 0xa87   : > { %8050 = vrot.lane.b32.xlu0 %v8048_v37, %s14416_s26  ;;  %11630 = vmatprep.subr.bf16.mxu1 %v12113_v20  ;;  %s12214_s26 = smov 82  }
 0xa88   : > { %v8137_v59 = vpop.permute.xlu0 %8136  ;;  %v7400_v48 = vpop.permute.xlu1 %7399 }
 0xa89   : > { %v8139_v39 = vmul.f32 %v8137_v59, %v8039_v26 }
 0xa8a   : > { %11633 = vmatpush3.bf16.msk.msra.mxu1 %vm13867_vm13, %v13872_v14 }
 0xa8b   : > { %8232 = vrot.lane.b32.xlu0 %v8230_v38, %s12208_s15  ;;  %8141 = vrot.lane.b32.xlu1 %v8139_v39, %s12209_s22  ;;  %s14421_s15 = smov 37   ;;  %s14422_s22 = smov 67  }
 0xa8c   : > { %v7309_v43 = vpop.permute.xlu0 %7308  ;;  %11634 = vmatprep.subr.bf16.mxu1 %v12113_v20  ;;  %v7585_v49 = vpop.permute.xlu1 %7584 }
 0xa8d   : > { %10761 = vmatmul.mubr.msk.f32.vlgmr.msra.gmra.mrb[72].mxu1 %vm6848_vm9, %v7218_v42 }
 0xa8e   : > { %11636 = vmatpush3.bf16.msra.mxu1 %v13859_v12  ;;  %10771 = vmatprep.mubr.msk.f32.mxu1 %vm12114_vm2, %v12112_v7 }
 0xa8f   : > { %11637 = vmatprep.subr.bf16.mxu1 %v12113_v20 }
 0xa90   : > { %v7491_v44 = vpop.permute.xlu0 %7490  ;;  %v7680_v51 = vpop.permute.xlu1 %7679 }
 0xa92   : > { %11640 = vmatpush3.bf16.msk.msra.mxu1 %vm13867_vm13, %v13872_v14 }
 0xa93   : > { %11641 = vmatprep.subr.bf16.mxu1 %v12113_v20 }
 0xa94   : > { %v7587_v46 = vpop.permute.xlu0 %7586 }
 0xa95   : > { %10772 = vmatmul.mubr.msk.f32.vlgmr.msra.gmra.mrb[74].mxu1 %vm6848_vm9, %v7309_v43  ;;  %v7588_v50 = vsel %vm14417_vm12, %v7585_v49, %v7587_v46  ;;  %vm8037_vm12 = vcmask 548256   ;;  %v8314_v46 = vld [vmem:[%s14290_s6] sm:$0xff] }
 0xa96   : > { %11643 = vmatpush3.bf16.msra.mxu1 %v13859_v12  ;;  %10782 = vmatprep.mubr.msk.f32.mxu1 %vm12114_vm2, %v12112_v7 }
 0xa97   : > { %11644 = vmatprep.subr.bf16.mxu1 %v12113_v20 }
 0xa98   : > { %v7771_v47 = vpop.permute.xlu0 %7770 }
 0xa99   : > { %10827 = vmatmul.mubr.msk.f32.vlgmr.msra.gmra.mrb[58].mxu0 %vm6848_vm9, %v7771_v47  ;;  %v8315_v47 = vld [vmem:[%s14290_s6 + $0x8] sm:$0xff] }
 0xa9a   : > { %11647 = vmatpush3.bf16.msk.msra.mxu1 %vm13867_vm13, %v13872_v14  ;;  %11685 = vmatpush3.bf16.msra.mxu0 %v13859_v12 }
 0xa9b   : > { %11648 = vmatprep.subr.bf16.mxu1 %v12113_v20  ;;  %11686 = vmatprep.subr.bf16.mxu0 %v12113_v20 }
 0xa9c   : > { %10848 = vmatprep.mubr.msk.f32.mxu0 %vm12114_vm2, %v12112_v7 }
 0xa9d   : > { %10783 = vmatmul.mubr.msk.f32.vlgmr.msra.gmra.mrb[76].mxu1 %vm6848_vm9, %v7400_v48 }
 0xa9e   : > { %11650 = vmatpush3.bf16.msra.mxu1 %v13859_v12  ;;  %10793 = vmatprep.mubr.msk.f32.mxu1 %vm12114_vm2, %v12112_v7 }
 0xa9f   : > { %11651 = vmatprep.subr.bf16.mxu1 %v12113_v20  ;;  %11689 = vmatpush3.bf16.msk.msra.mxu0 %vm13867_vm13, %v13872_v14 }
 0xaa0   : > { %11697 = vmatprep.subr.bf16.mxu0 %v12113_v20 }
 0xaa2   : > { %11654 = vmatpush3.bf16.msk.msra.mxu1 %vm13867_vm13, %v13872_v14 }
 0xaa3   : > { %11655 = vmatprep.subr.bf16.mxu1 %v12113_v20 }
 0xaa5   : > { %10794 = vmatmul.mubr.msk.f32.vlgmr.msra.gmra.mrb[78].mxu1 %vm6848_vm9, %v7491_v44 }
 0xaa6   : > { %11657 = vmatpush3.bf16.msra.mxu1 %v13859_v12  ;;  %10804 = vmatprep.mubr.msk.f32.mxu1 %vm12114_vm2, %v12112_v7 }
 0xaa7   : > { %11658 = vmatprep.subr.bf16.mxu1 %v12113_v20 }
 0xaaa   : > { %11661 = vmatpush3.bf16.msk.msra.mxu1 %vm13867_vm13, %v13872_v14 }
 0xaab   : > { %11662 = vmatprep.subr.bf16.mxu1 %v12113_v20 }
 0xaad   : > { %10805 = vmatmul.mubr.msk.f32.vlgmr.msra.gmra.mrb[80].mxu1 %vm6848_vm9, %v7588_v50 }
 0xaae   : > { %11664 = vmatpush3.bf16.msra.mxu1 %v13859_v12  ;;  %10815 = vmatprep.mubr.msk.f32.mxu1 %vm12114_vm2, %v12112_v7 }
 0xaaf   : > { %11665 = vmatprep.subr.bf16.mxu1 %v12113_v20 }
 0xab2   : > { %11668 = vmatpush3.bf16.msk.msra.mxu1 %vm13867_vm13, %v13872_v14 }
 0xab3   : > { %11676 = vmatprep.subr.bf16.mxu1 %v12113_v20 }
 0xab5   : > { %10816 = vmatmul.mubr.msk.f32.vlgmr.msra.gmra.mrb[82].mxu1 %vm6848_vm9, %v7680_v51 }
 0xab6   : > { %11678 = vmatpush3.bf16.msra.mxu1 %v13859_v12  ;;  %10837 = vmatprep.mubr.msk.f32.mxu1 %vm12114_vm2, %v12112_v7 }
 0xab7   : > { %11679 = vmatprep.subr.bf16.mxu1 %v12113_v20 }
 0xaba   : > { %11682 = vmatpush3.bf16.msk.msra.mxu1 %vm13867_vm13, %v13872_v14 }
 0xabb   : > { %11690 = vmatprep.subr.bf16.mxu1 %v12113_v20 }
 0xaf1   : > { %v7862_v52 = vpop.permute.xlu1 %7861 }
 0xaf2   : > { %10838 = vmatmul.mubr.msk.f32.vlgmr.msra.gmra.mrb[84].mxu1 %vm6848_vm9, %v7862_v52 }
 0xaf3   : > { %11692 = vmatpush3.bf16.msra.mxu1 %v13859_v12  ;;  %10859 = vmatprep.mubr.msk.f32.mxu1 %vm12114_vm2, %v12112_v7 }
 0xaf4   : > { %11693 = vmatprep.subr.bf16.mxu1 %v12113_v20 }
 0xaf5   : > { %v7958_v53 = vpop.permute.xlu1 %7957  ;;  %v7956_v54 = vpop.permute.xlu0 %7955 }
 0xaf6   : > { %v7960_v21 = vsel %vm7959_vm14, %v7956_v54, %v7958_v53  ;;  %vm8128_vm14 = vcmask 671256   ;;  %v8507_v54 = vld [vmem:[%s14294_s10] sm:$0xff] }
 0xaf7   : > { %11696 = vmatpush3.bf16.msk.msra.mxu1 %vm13867_vm13, %v13872_v14  ;;  %10849 = vmatmul.mubr.msk.f32.vlgmr.msra.gmra.mrb[60].mxu0 %vm6848_vm9, %v7960_v21  ;;  %v8508_v21 = vld [vmem:[%s14294_s10 + $0x8] sm:$0xff] }
 0xaf8   : > { %11699 = vmatpush3.bf16.msra.mxu0 %v13859_v12  ;;  %11704 = vmatprep.subr.bf16.mxu1 %v12113_v20 }
 0xaf9   : > { %v8051_v45 = vpop.permute.xlu0 %8050  ;;  %11700 = vmatprep.subr.bf16.mxu0 %v12113_v20  ;;  %10870 = vmatprep.mubr.msk.f32.mxu0 %vm12114_vm2, %v12112_v7 }
 0xafa   : > { %10860 = vmatmul.mubr.msk.f32.vlgmr.msra.gmra.mrb[86].mxu1 %vm6848_vm9, %v8051_v45 }
 0xafb   : > { %11706 = vmatpush3.bf16.msra.mxu1 %v13859_v12  ;;  %10881 = vmatprep.mubr.msk.f32.mxu1 %vm12114_vm2, %v12112_v7 }
 0xafc   : > { %11703 = vmatpush3.bf16.msk.msra.mxu0 %vm13867_vm13, %v13872_v14  ;;  %11707 = vmatprep.subr.bf16.mxu1 %v12113_v20 }
 0xafd   : > { %v8142_v55 = vpop.permute.xlu1 %8141  ;;  %v8233_v3 = vpop.permute.xlu0 %8232 }
 0xaff   : > { %10871 = vmatmul.mubr.msk.f32.vlgmr.msra.gmra.mrb[62].mxu0 %vm6848_vm9, %v8142_v55  ;;  %11710 = vmatpush3.bf16.msk.msra.mxu1 %vm13867_vm13, %v13872_v14  ;;  %vm14423_vm13 = vcmask 56320  }
 0xb00   : > { %8396 = vmatprep.mubr.f32.mxu0 %v12112_v7 }
 0xb02   : > { %10882 = vmatmul.mubr.msk.f32.vlgmr.msra.gmra.mrb[88].mxu1 %vm6848_vm9, %v8233_v3  ;;  %vm7848_vm9 = vcmask 302256   ;;  %v8328_v3 = vld [vmem:[%s14292_s8] sm:$0xf] }
 0xb48   : > { %v7008_v12 = vpop.f32.mrb[66].mxu1 }
 0xb49   : > { %7013 = vrot.lane.b32.xlu0 %v7008_v12, %s12191_s16  ;;  %v10729_v56 = vpop.f32.mrb[67].mxu1  ;;  %s12213_s16 = smov 90   ;;  %v11712_v12 = vpack.c.bf16 %v8508_v21, %v8507_v54 }
 0xb4a   : > { %v8509_v56 = vld [vmem:[%s14294_s10 + $0x10] sm:$0xff] }
 0xb50   : > { %v7099_v10 = vpop.f32.mrb[68].mxu1 }
 0xb51   : > { %7104 = vrot.lane.b32.xlu0 %v7099_v10, %s14418_s29  ;;  %v10740_v11 = vpop.f32.mrb[69].mxu1  ;;  %v8510_v10 = vld [vmem:[%s14294_s10 + $0x18] sm:$0xff]  ;;  %s456_s29 = sand.u32 1, %s12102_s30  }
 0xb52   : > { %v11715_v11 = vpack.c.bf16 %v8510_v10, %v8509_v56 }
 0xb58   : > { %v7190_v57 = vpop.f32.mrb[70].mxu1 }
 0xb59   : > { %7195 = vrot.lane.b32.xlu0 %v7190_v57, %s14419_s27  ;;  %v10751_v58 = vpop.f32.mrb[71].mxu1  ;;  %v8511_v57 = vld [vmem:[%s14294_s10 + $0x20] sm:$0xff] }
 0xb5a   : > { %v8512_v58 = vld [vmem:[%s14294_s10 + $0x28] sm:$0xff] }
 0xb60   : > { %v7287_v61 = vpop.f32.mrb[72].mxu1 }
 0xb61   : > { %7292 = vrot.lane.b32.xlu0 %v7287_v61, %s12210_s0  ;;  %v10762_v13 = vpop.f32.mrb[73].mxu1  ;;  %v11718_v61 = vpack.c.bf16 %v8512_v58, %v8511_v57 }
 0xb62   : > { %v8513_v13 = vld [vmem:[%s14294_s10 + $0x30] sm:$0xff] }
 0xb68   : > { %v7378_v14 = vpop.f32.mrb[74].mxu1 }
 0xb69   : > { %7383 = vrot.lane.b32.xlu0 %v7378_v14, %s12211_s20  ;;  %v10773_v1 = vpop.f32.mrb[75].mxu1  ;;  %v8514_v14 = vld [vmem:[%s14294_s10 + $0x38] sm:$0xff]  ;;  %s9274_s20 = sshll.u32 %s12312_s17, 4  ;;  %s12215_s17 = smov [#allocation6]  }
 0xb6a   : > { %v11721_v1 = vpack.c.bf16 %v8514_v14, %v8513_v13 }
 0xb6c   : > { %v7840_v5 = vpop.f32.mrb[58].mxu0 }
 0xb6d   : > { %7845 = vrot.lane.b32.xlu1 %v7840_v5, %s12212_s24  ;;  %v10828_v62 = vpop.f32.mrb[59].mxu0  ;;  %v8515_v5 = vld [vmem:[%s14294_s10 + $0x40] sm:$0xff]  ;;  %s457_s24 = scalar_lea.vmem [#allocation6], %s456_s29 }
 0xb6e   : > { %v8516_v62 = vld [vmem:[%s14294_s10 + $0x48] sm:$0xff] }
 0xb70   : > { %v7469_v63 = vpop.f32.mrb[76].mxu1 }
 0xb71   : > { %7474 = vrot.lane.b32.xlu0 %v7469_v63, %s12213_s16  ;;  %v10784_v0 = vpop.f32.mrb[77].mxu1  ;;  %v11724_v63 = vpack.c.bf16 %v8516_v62, %v8515_v5  ;;  %v8697_v62 = vld [vmem:[%s14296_s12] sm:$0xff]  ;;  %s9012_s16 = sshll.u32 %s457_s24, 4  ;;  %s14244_s16 = int_to_ptr.vmem [resolvable:$true] %s9012_s16 }
 0xb72   : > { %v8517_v0 = vld [vmem:[%s14294_s10 + $0x50] sm:$0xff] }
 0xb78   : > { %v7560_v2 = vpop.f32.mrb[78].mxu1 }
 0xb79   : > { %7565 = vrot.lane.b32.xlu0 %v7560_v2, %s12205_s1  ;;  %v10795_v40 = vpop.f32.mrb[79].mxu1  ;;  %s14420_s1 = smov 52   ;;  %v8518_v2 = vld [vmem:[%s14294_s10 + $0x58] sm:$0xff] }
 0xb7a   : > { %v11727_v40 = vpack.c.bf16 %v8518_v2, %v8517_v0 }
 0xb7d   : > { %8321 = vperm.xlu0 %11919, %v8318_v4   ;;  %v8519_v4 = vld [vmem:[%s14294_s10 + $0x60] sm:$0xff] }
 0xb80   : > { %v7657_v36 = vpop.f32.mrb[80].mxu1 }
 0xb81   : > { %v10806_v6 = vpop.f32.mrb[81].mxu1 }
 0xb88   : > { %v7749_v15 = vpop.f32.mrb[82].mxu1 }
 0xb89   : > { %v10817_v16 = vpop.f32.mrb[83].mxu1 }
 0xb8a   : > { %v8522_v16 = vld [vmem:[%s14294_s10 + $0x78] sm:$0xff] }
 0xbbb   : > { %v7014_v34 = vpop.permute.xlu0 %7013 }
 0xbbc   : > { %7017 = vst.msk [vmem:[#allocation5] sm:$0xff] %vm7016_vm8, %v7014_v34  ;;  %vm8219_vm8 = vcmask 794256  }
 0xbc3   : > { %v7105_v18 = vpop.permute.xlu0 %7104 }
 0xbc4   : > { %7108 = vst.msk [vmem:[#allocation5] sm:$0xff] %vm7107_vm5, %v7105_v18  ;;  %vm8310_vm5 = vcmask 917256   ;;  %v8523_v18 = vld [vmem:[%s14294_s10 + $0x80] sm:$0xff] }
 0xbc5   : > { %v7931_v19 = vpop.f32.mrb[84].mxu1 }
 0xbc6   : > { %v10839_v41 = vpop.f32.mrb[85].mxu1 }
 0xbca   : > { %v8029_v28 = vpop.f32.mrb[60].mxu0 }
 0xbcb   : > { %v7196_v22 = vpop.permute.xlu0 %7195  ;;  %8034 = vrot.lane.b32.xlu1 %v8029_v28, %s14420_s1  ;;  %v10850_v24 = vpop.f32.mrb[61].mxu0  ;;  %v8525_v28 = vld [vmem:[%s14294_s10 + $0x90] sm:$0xff]  ;;  %s14242_s1 = scalar_lea.hbm %s14298_s14, %s9274_s20 }
 0xbcc   : > { %7199 = vst.msk [vmem:[#allocation5] sm:$0xff] %vm7198_vm6, %v7196_v22  ;;  %vm14424_vm6 = vcmask 64512   ;;  %v8526_v22 = vld [vmem:[%s14294_s10 + $0x98] sm:$0xff] }
 0xbcd   : > { %v8120_v25 = vpop.f32.mrb[86].mxu1  ;;  %v11739_v24 = vpack.c.bf16 %v8526_v22, %v8525_v28 }
 0xbce   : > { %v10861_v27 = vpop.f32.mrb[87].mxu1 }
 0xbcf   : > { %v8528_v27 = vld [vmem:[%s14294_s10 + $0xa8] sm:$0xff] }
 0xbd2   : > { %v8211_v29 = vpop.f32.mrb[62].mxu0 }
 0xbd3   : > { %8216 = vrot.lane.b32.xlu1 %v8211_v29, %s12214_s26  ;;  %v10872_v23 = vpop.f32.mrb[63].mxu0  ;;  %v7293_v30 = vpop.permute.xlu0 %7292  ;;  %s9000_s26 = scalar_lea.sflag [#allocation7], %s456_s29 }
 0xbd4   : > { %7296 = vst.msk [vmem:[#allocation5] sm:$0xff] %vm7295_vm4, %v7293_v30  ;;  %v8529_v23 = vld [vmem:[%s14294_s10 + $0xb0] sm:$0xff]  ;;  %v8530_v30 = vld [vmem:[%s14294_s10 + $0xb8] sm:$0xff]  ;;  %vm14425_vm4 = vcmask 916480  }
 0xbd5   : > { %v8302_v26 = vpop.f32.mrb[88].mxu1 }
 0xbd6   : > { %v10883_v31 = vpop.f32.mrb[89].mxu1 }
 0xbd7   : > { %7662 = vrot.lane.b32.xlu1 %v7657_v36, %s14378_s19  ;;  %v8520_v36 = vld [vmem:[%s14294_s10 + $0x68] sm:$0xff]  ;;  %v8531_v31 = vld [vmem:[%s14294_s10 + $0xc0] sm:$0xff] }
 0xbd8   : > { %v11730_v6 = vpack.c.bf16 %v8520_v36, %v8519_v4  ;;  %v8772_v4 = vld [vmem:[%s14296_s12 + $0x8] sm:$0xff] }
 0xbdb   : > { %v7384_v17 = vpop.permute.xlu0 %7383  ;;  %7754 = vrot.lane.b32.xlu1 %v7749_v15, %s14389_s28  ;;  %v8521_v15 = vld [vmem:[%s14294_s10 + $0x70] sm:$0xff] }
 0xbdc   : > { %7387 = vst.msk [vmem:[#allocation5] sm:$0xff] %vm7386_vm7, %v7384_v17  ;;  %v11733_v34 = vpack.c.bf16 %v8522_v16, %v8521_v15  ;;  %v8532_v17 = vld [vmem:[%s14294_s10 + $0xc8] sm:$0xff]  ;;  %vm14426_vm7 = vmmov %vm14425_vm4  ;;  %v8922_v16 = vld [vmem:[%s14296_s12 + $0x18] sm:$0xff] }
 0xbdf   : > { %7936 = vrot.lane.b32.xlu1 %v7931_v19, %s14421_s15  ;;  %v7846_v35 = vpop.permute.xlu1 %7845  ;;  %v8524_v19 = vld [vmem:[%s14294_s10 + $0x88] sm:$0xff]  ;;  %s12048_s15 = scalar_lea.vmem %s14244_s16, 16 }
 0xbe0   : > { %v11736_v41 = vpack.c.bf16 %v8524_v19, %v8523_v18  ;;  %v8696_v18 = vld [vmem:[%s14297_s13] sm:$0x1]  ;;  %p12049_p11 = scmp.ne.s32.totalorder %s14244_s16, %s12048_s15 }
 0xbe2   : > { %p12050_p12 = pnand %p12049_p11, %p12329_p5 }
 0xbe3   : > { %v7475_v32 = vpop.permute.xlu0 %7474  ;;  %8125 = vrot.lane.b32.xlu1 %v8120_v25, %s14422_s22  ;;  %v8527_v25 = vld [vmem:[%s14294_s10 + $0xa0] sm:$0xff]  ;;  %s12052_s22 = sshll.u32 %s12215_s17, 4  ;;  %s12053_s22 = int_to_ptr.vmem [resolvable:$false] %s12052_s22 }
 0xbe4   : > { %7478 = vst.msk [vmem:[#allocation5] sm:$0xff] %vm7477_vm3, %v7475_v32  ;;  %v11742_v29 = vpack.c.bf16 %v8528_v27, %v8527_v25  ;;  %v11748_v32 = vpack.c.bf16 %v8532_v17, %v8531_v31  ;;  %vm14427_vm3 = vmmov %vm14425_vm4  ;;  %p12051_p13 = pneg %p12050_p12  ;;  %s12054_s19 = scalar_lea.vmem %s12053_s22, 32 }
 0xbe5   : > { %p12055_p0 = scmp.lt.s32.totalorder %s14244_s16, %s12053_s22  ;;  %p12056_p1 = scmp.lt.s32.totalorder %s12054_s19, %s12048_s15 }
 0xbe7   : > { %8307 = vrot.lane.b32.xlu1 %v8302_v26, %s12199_s18  ;;  %v11745_v26 = vpack.c.bf16 %v8530_v30, %v8529_v23  ;;  %p12057_p2 = por %p12056_p1, %p12055_p0 }
 0xbe9   : > { %p12058_p3 = pnand %p12057_p2, %p12051_p13 }
 0xbeb   : > { %v7566_v33 = vpop.permute.xlu0 %7565 }
 0xbec   : > { %7569 = vst.msk [vmem:[#allocation5] sm:$0xff] %vm7568_vm10, %v7566_v33  ;;  %v8533_v33 = vld [vmem:[%s14294_s10 + $0xd0] sm:$0xff]  ;;  %vm8479_vm10 = vcmp.eq.s32.totalorder %v12757_v8, %v12759_v9 }
 0xbfc   : > { %v8322_v50 = vpop.permute.xlu0 %8321 }
 0xc3d   : > { %v8035_v37 = vpop.permute.xlu1 %8034 }
 0xc45   : > { %v8217_v60 = vpop.permute.xlu1 %8216 }
 0xc49   : > { %v7663_v59 = vpop.permute.xlu1 %7662 }
 0xc4a   : > { %7666 = vst.msk [vmem:[#allocation5] sm:$0xff] %vm7665_vm11, %v7663_v59  ;;  %vm14428_vm11 = vcmask 1043456  }
 0xc4b   : > { %7667 = vst.msk [vmem:[#allocation5 + $0x8] sm:$0xff] %vm14423_vm13, %v7663_v59  ;;  %v8536_v59 = vld [vmem:[%s14294_s10 + $0xe8] sm:$0xff]  ;;  %vm8483_vm13 = vcmask 27648  }
 0xc4d   : > { %v7755_v38 = vpop.permute.xlu1 %7754 }
 0xc4e   : > { %7758 = vst.msk [vmem:[#allocation5 + $0x8] sm:$0xff] %vm7757_vm0, %v7755_v38 }
 0xc4f   : > { %7849 = vst.msk [vmem:[#allocation5 + $0x8] sm:$0xff] %vm7848_vm9, %v7846_v35  ;;  %v8534_v35 = vld [vmem:[%s14294_s10 + $0xd8] sm:$0xff] }
 0xc51   : > { %v7937_v39 = vpop.permute.xlu1 %7936  ;;  %v8312_v44 = vld [vmem:[#allocation5] sm:$0xff] }
 0xc52   : > { %7940 = vst.msk [vmem:[#allocation5 + $0x8] sm:$0xff] %vm7939_vm1, %v7937_v39  ;;  %v8316_v48 = vmul.f32 %v8314_v46, %v8312_v44  ;;  %v8476_v46 = vld [vmem:[%s14293_s9] sm:$0xf]  ;;  %vm14429_vm1 = vmmov %vm14424_vm6 }
 0xc53   : > { %8038 = vst.msk [vmem:[#allocation5 + $0x8] sm:$0xff] %vm8037_vm12, %v8035_v37  ;;  %v11751_v37 = vpack.c.bf16 %v8534_v35, %v8533_v33  ;;  %vm14431_vm12 = vmmov %vm14429_vm1 }
 0xc54   : > { %v8324_v52 = vsub.f32 %v8316_v48, %v8322_v50 }
 0xc55   : > { %v8126_v42 = vpop.permute.xlu1 %8125 }
 0xc56   : > { %8129 = vst.msk [vmem:[#allocation5 + $0x8] sm:$0xff] %vm8128_vm14, %v8126_v42  ;;  %v8326_v55 = vmax.f32 %v8324_v52, 0.0  ;;  %vm14432_vm14 = vmmov %vm14429_vm1 }
 0xc57   : > { %8220 = vst.msk [vmem:[#allocation5 + $0x8] sm:$0xff] %vm8219_vm8, %v8217_v60  ;;  %v8535_v60 = vld [vmem:[%s14294_s10 + $0xe0] sm:$0xff]  ;;  %vm8997_vm8 = vcmask 8192  }
 0xc58   : > { %v11754_v38 = vpack.c.bf16 %v8536_v59, %v8535_v60 }
 0xc59   : > { %v8308_v43 = vpop.permute.xlu1 %8307 }
 0xc5a   : > { %8311 = vst.msk [vmem:[#allocation5 + $0x8] sm:$0xff] %vm8310_vm5, %v8308_v43 }
 0xc61   : > { %v8313_v49 = vld [vmem:[#allocation5 + $0x8] sm:$0xff] }
 0xc62   : > { %v8317_v51 = vmul.f32 %v8315_v47, %v8313_v49 }
 0xc64   : > { %v8325_v53 = vsub.f32 %v8317_v51, %v8322_v50 }
 0xc66   : > { %v8327_v45 = vmax.f32 %v8325_v53, 0.0  ;;  %v9263_v53 = vsel %vm8479_vm10, 1.0, %v12112_v7 }
 0xc68   : > { %8332 = vmatprep.subr.mxu0 %v8327_v45 }
 0xc69   : > { %8333 = vmatpush1.msra.mxu0 %v8326_v55 }
 0xc6a   : > { %9260 = vmatmul.mubr.msk.f32.vlgmr.msra.gmra.mrb[64].mxu0 %vm14424_vm6, %v8328_v3  ;;  %11711 = vmatprep.subr.bf16.mxu0 %v12113_v20 }
 0xc6b   : > { %11713 = vmatpush1.bf16.msra.mxu0 %v11712_v12 }
 0xc6c   : > { %11714 = vmatprep.subr.bf16.mxu0 %v12113_v20 }
 0xc6f   : > { %11716 = vmatpush1.bf16.msra.mxu0 %v11715_v11 }
 0xc70   : > { %11717 = vmatprep.subr.bf16.mxu0 %v12113_v20 }
 0xc73   : > { %11719 = vmatpush1.bf16.msra.mxu0 %v11718_v61 }
 0xc74   : > { %11720 = vmatprep.subr.bf16.mxu0 %v12113_v20 }
 0xc77   : > { %11722 = vmatpush1.bf16.msra.mxu0 %v11721_v1 }
 0xc78   : > { %11723 = vmatprep.subr.bf16.mxu0 %v12113_v20 }
 0xc7b   : > { %11725 = vmatpush1.bf16.msra.mxu0 %v11724_v63 }
 0xc7c   : > { %11726 = vmatprep.subr.bf16.mxu0 %v12113_v20 }
 0xc7f   : > { %11728 = vmatpush1.bf16.msra.mxu0 %v11727_v40 }
 0xc80   : > { %11729 = vmatprep.subr.bf16.mxu0 %v12113_v20 }
 0xc83   : > { %11731 = vmatpush1.bf16.msra.mxu0 %v11730_v6  ;;  %v8847_v6 = vld [vmem:[%s14296_s12 + $0x10] sm:$0xff] }
 0xc84   : > { %11732 = vmatprep.subr.bf16.mxu0 %v12113_v20 }
 0xc87   : > { %11734 = vmatpush1.bf16.msra.mxu0 %v11733_v34 }
 0xc88   : > { %11735 = vmatprep.subr.bf16.mxu0 %v12113_v20 }
 0xc8b   : > { %11737 = vmatpush1.bf16.msra.mxu0 %v11736_v41 }
 0xc8c   : > { %11738 = vmatprep.subr.bf16.mxu0 %v12113_v20 }
 0xc8f   : > { %11740 = vmatpush1.bf16.msra.mxu0 %v11739_v24 }
 0xc90   : > { %11741 = vmatprep.subr.bf16.mxu0 %v12113_v20 }
 0xc93   : > { %11743 = vmatpush1.bf16.msra.mxu0 %v11742_v29 }
 0xc94   : > { %11744 = vmatprep.subr.bf16.mxu0 %v12113_v20 }
 0xc97   : > { %11746 = vmatpush1.bf16.msra.mxu0 %v11745_v26 }
 0xc98   : > { %11747 = vmatprep.subr.bf16.mxu0 %v12113_v20 }
 0xc9b   : > { %11749 = vmatpush1.bf16.msra.mxu0 %v11748_v32 }
 0xc9c   : > { %11750 = vmatprep.subr.bf16.mxu0 %v12113_v20 }
 0xc9f   : > { %11752 = vmatpush1.bf16.msra.mxu0 %v11751_v37 }
 0xca0   : > { %11753 = vmatprep.subr.bf16.mxu0 %v12113_v20  ;;  %v9267_v20 = vld [vmem:[%s14295_s11] ss:$0 sm:$0xff] }
 0xca3   : > { %11755 = vmatpush1.bf16.msra.mxu0 %v11754_v38 }
 0xd3d   : > { %v8398_v39 = vpop.f32.mrb[64].mxu0 }
 0xd3e   : > { %v8400_v42 = vpop.f32.mrb[65].mxu0  ;;  %v8505_v44 = vmul.f32 0.999995, %v8398_v39 }
 0xd3f   : > { %v8506_v43 = vmul.f32 0.999995, %v8400_v42  ;;  %9261 = vmatprep.subr.msk.mxu1 %vm14425_vm4, %v8400_v42  ;;  %9262 = vmatprep.mubr.msk.f32.mxu1 %vm14426_vm7, %v8400_v42 }
 0xd40   : > { %8407 = vmatpush1.xpose.msra.mxu1 %v8398_v39 }
 0xd41   : > { %9266 = vmatprep.mubr.msk.f32.mxu0 %vm14427_vm3, %v8506_v43  ;;  %10884 = vmatprep.subr.mxu1 %v12112_v7 }
 0xd42   : > { %8605 = vmatmul.mubr.f32.vlgmr.msra.gmra.mrb[66].mxu0 %v8505_v44 }
 0xd43   : > { %8471 = vmatmul.mubr.f32.vlgmr.msra.gmra.mrb[90].mxu1 %v8398_v39 }
 0xd44   : > { %10886 = vmatprep.mubr.msk.f32.mxu1 %vm12114_vm2, %v12112_v7 }
 0xe15   : > { %v8606_v47 = vpop.f32.mrb[66].mxu0 }
 0xe16   : > { %v8617_v48 = vsub.f32 %v8606_v47, %v9267_v20  ;;  %v8472_v49 = vpop.f32.mrb[90].mxu1  ;;  %v8608_v50 = vpop.f32.mrb[67].mxu0 }
 0xe17   : > { %v8477_v51 = vmul.f32 %v8476_v46, %v8472_v49  ;;  %v8474_v52 = vpop.f32.mrb[91].mxu1 }
 0xe18   : > { %10885 = vmatpush3.msk.msra.mxu1 %vm14428_vm11, %v8617_v48 }
 0xe19   : > { %v8478_v54 = vmax.f32 %v8477_v51, 0.0  ;;  %10889 = vmatprep.subr.mxu1 %v12112_v7 }
 0xe1b   : > { %v8482_v21 = vadd.f32 %v9263_v53, %v8478_v54 }
 0xe1d   : > { %v8484_v45 = vsel %vm8483_vm13, %v8482_v21, 0.0 }
 0xe1e   : > { %8485 = vadd.xlane.f32.xlu1 %v8484_v45  ;;  %v8491_v55 = vrot.slane %v8484_v45, 4 }
 0xe20   : > { %v8492_v3 = vadd.f32 %v8491_v55, %v8484_v45 }
 0xe22   : > { %v8493_v12 = vrot.slane %v8492_v3, 2 }
 0xe24   : > { %v8494_v8 = vadd.f32 %v8493_v12, %v8492_v3 }
 0xe26   : > { %v8495_v9 = vrot.slane %v8494_v8, 1 }
 0xe28   : > { %v8496_v56 = vadd.f32 %v8495_v9, %v8494_v8 }
 0xe2a   : > { %vm8497_vm0 = vcmp.eq.f32.partialorder %v8496_v56, 0.0 }
 0xe2b   : > { %v9265_v10 = vsel %vm8497_vm0, 1.0, %v12112_v7 }
 0xe2c   : > { %v8500_v58 = vadd.f32 %v9265_v10, %v8496_v56 }
 0xeab   : > { %v8486_v11 = vpop.xlane.xlu1 %8485 }
 0xeac   : > { %vm8487_vm9 = vcmp.eq.f32.partialorder %v8486_v11, 0.0 }
 0xead   : > { %v9264_v57 = vsel %vm8487_vm9, 1.0, %v12112_v7 }
 0xeae   : > { %v8490_v61 = vadd.f32 %v9264_v57, %v8486_v11 }
 0xeb0   : > { %12042 = vrsqrt.f32 %v8490_v61 }
 0xeb1   : > { %12044 = vrsqrt.f32 %v8500_v58 }
 0xeba   : > { %v12043_v13 = vpop.eup %12042 }
 0xebb   : > { %v8502_v14 = vmul.f32 %v12043_v13, %v8482_v21  ;;  %v12045_v1 = vpop.eup %12044 }
 0xebd   : > { %v8504_v5 = vmul.f32 %v12045_v1, %v8502_v14 }
 0xebf   : > { %10887 = vmatmul.mubr.msk.f32.vlgmr.msra.gmra.mrb[92].mxu1 %vm5669_vm15, %v8504_v5  ;;  %vm14430_vm15 = vmmov %vm14429_vm1 }
 0xec0   : > { %10891 = vmatprep.mubr.msk.f32.mxu1 %vm12114_vm2, %v12112_v7  ;;  %10890 = vmatpush3.msra.mxu1 %v8697_v62 }
 0xec1   : > { %10894 = vmatprep.subr.mxu1 %v12112_v7 }
 0xf92   : > { %v8690_v63 = vpop.f32.mrb[92].mxu1 }
 0xf93   : > { %v8694_v0 = vmax.f32 %v8690_v63, 0.0  ;;  %v10888_v2 = vpop.f32.mrb[93].mxu1 }
 0xf95   : > { %v8695_v40 = vmul.f32 0.999995, %v8694_v0 }
 0xf97   : > { %10892 = vmatmul.mubr.msk.f32.vlgmr.msra.gmra.mrb[94].mxu1 %vm14429_vm1, %v8695_v40  ;;  %v8773_v36 = vrot.slane %v8695_v40, 1  ;;  %v8848_v15 = vrot.slane %v8695_v40, 2  ;;  %v8923_v34 = vrot.slane %v8695_v40, 3 }
 0xf98   : > { %10895 = vmatpush3.msra.mxu1 %v8772_v4  ;;  %10896 = vmatprep.mubr.msk.f32.mxu1 %vm12114_vm2, %v12112_v7 }
 0xf99   : > { %10899 = vmatprep.subr.mxu1 %v12112_v7 }
 0xf9f   : > { %10897 = vmatmul.mubr.msk.f32.vlgmr.msra.gmra.mrb[94].mxu1 %vm14430_vm15, %v8773_v36 }
 0xfa0   : > { %10900 = vmatpush3.msra.mxu1 %v8847_v6  ;;  %10901 = vmatprep.mubr.msk.f32.mxu1 %vm12114_vm2, %v12112_v7 }
 0xfa1   : > { %10904 = vmatprep.subr.mxu1 %v12112_v7 }
 0xfa7   : > { %10902 = vmatmul.mubr.msk.f32.vlgmr.msra.gmra.mrb[94].mxu1 %vm14431_vm12, %v8848_v15 }
 0xfa8   : > { %10905 = vmatpush3.msra.mxu1 %v8922_v16  ;;  %10906 = vmatprep.mubr.msk.f32.mxu1 %vm12114_vm2, %v12112_v7 }
 0xfaf   : > { %10907 = vmatmul.mubr.msk.f32.vlgmr.msra.gmra.mrb[94].mxu1 %vm14432_vm14, %v8923_v34 }
0x1082   : > { %v8992_v19 = vpop.f32.mrb[94].mxu1 }
0x1083   : > { %v11756_v41 = vadd.f32 %v8992_v19, %v8696_v18  ;;  %v10908_v28 = vpop.f32.mrb[95].mxu1 }
0x1085   : > { %8998 = vst.msk [vmem:[%s457_s24] sm:$0x1] %vm8997_vm8, %v11756_v41 }
0x1086   : > { %12061 = shalt.err (!%p12058_p3)
}
0x1087   : > { %s12062_s28 = scalar_lea.hbm %s14242_s1, 16  ;;  %s12066_s27 = scalar_lea.hbm %s14298_s14, 32 }
0x1088   : > { %p12063_p4 = scmp.ne.s32.totalorder %s14242_s1, %s12062_s28  ;;  %p12067_p9 = scmp.lt.u32.totalorder %s14242_s1, %s14298_s14 }
0x1089   : > { %p12068_p10 = scmp.lt.u32.totalorder %s12066_s27, %s12062_s28  ;;  %p12070_p12 = scmp.lt.u32.totalorder %s12062_s28, %s14242_s1 }
0x108a   : > { %p12064_p7 = pnand %p12063_p4, %p12329_p5 }
0x108b   : > { %p12069_p11 = por %p12068_p10, %p12067_p9 }
0x108c   : > { %p12065_p8 = pneg %p12064_p7 }
0x108d   : > { %p12071_p13 = por %p12070_p12, %p12069_p11 }
0x108f   : > { %p12072_p0 = pnand %p12071_p13, %p12065_p8 }
0x1091   : > { %12075 = shalt.err (!%p12072_p0)
}
0x1092   : > { %11777 = dma.vmem_to_hbm [thread:$0]  (%p12329_p5), %s14244_s16, 16, %s14242_s1, %s9000_s26  }
0x1093 PF: > { %s14433_s24 = sld [smem:[#allocation11_spill]]  ;;  %s14434_s25 = sld [smem:[#allocation9_spill]] }
0x1099   : > { %p11783_p1 = scmp.ge.s32.totalorder %s14433_s24, 2  ;;  %s9024_s15 = sand.u32 1, %s14434_s25  }
0x109a   : > { %s9025_s17 = scalar_lea.sflag [#allocation7], %s9024_s15 }
0x109b   : > { %p11780_p2 = pnand %p11783_p1, %p12333_p6 }
0x109d   : > { %12093 = dma.done.wait (!%p11780_p2), %s9025_s17, 16  }
0x109e   : > { %12095 = vsyncadd (!%p11780_p2), %s9025_s17, 4294967280  ;;  %s14436_s16 = sld [smem:[#allocation12_spill]]  ;;  %s14437_s22 = sld [smem:[#allocation10_spill]] }
0x109f   : > { %s14438_s15 = sld [smem:[#allocation13_spill]]  ;;  %s14439_s29 = smov %s12102_s30 }
0x10a4   : > { %p24_p3 = scmp.ge.s32.totalorder %s14436_s16, 4   ;;  %s14440_s30 = smov %s14437_s22 }
0x10a6   :  { %26 = sbr.rel (!%p24_p3) target bundleno = 6 (0x6), region = 117 }
0x10ad   :  { %9029 = vsyncpa [#allocation7], 1 }
0x10ae   :  { %9031 = vsyncpa [#allocation7 + $0x1], 1 }

</bundles_post_ra>
